<compile_context>
chip_gen: v6e
topology: v6e:2x2x1
jax: 0.10.0
libtpu: 0.0.40
codegen_flags: <defaults>
</compile_context>

<pallas_src>
import functools

import jax
import jax.numpy as jnp
from jax import lax
from jax.experimental import pallas as pl
from jax.experimental.pallas import tpu as pltpu

_EPS = 1e-5  # PyTorch BatchNorm2d default eps


# ---------------------------------------------------------------------------
# Small helpers
# ---------------------------------------------------------------------------
def _round_up(n, m):
    return ((n + m - 1) // m) * m


# TODO(synk): switch to pl.cdiv grids + masked tail tiles so tile_h need not divide H
# (for H prime or W > target_rows this degenerates to 1-row tiles).
def _largest_divisor_leq(n, target):
    target = max(1, min(n, int(target)))
    for d in range(target, 0, -1):
        if n % d == 0:
            return d
    return 1


def _vmem_limit(*byte_counts):
    """Scoped-VMEM limit from actual block bytes (double-buffered) + headroom, <=64MiB (v7x)."""
    need = 2 * sum(int(b) for b in byte_counts)
    return int(min(64 * 2 ** 20, max(32 * 2 ** 20, need + (8 << 20))))


def _mosaic_params(vmem_limit_bytes):
    return pltpu.CompilerParams(dimension_semantics=("parallel", "parallel"),
                                vmem_limit_bytes=vmem_limit_bytes)


# ---------------------------------------------------------------------------
# Pallas kernels
# ---------------------------------------------------------------------------
def _conv3x3_kernel(x_ref, w_ref, y_ref, stats_ref):
    """3x3 / pad-1 conv on one row tile as a single MXU matmul (K = 9*Cin_p).

    x_ref:     (1, H+2, W+2, Cin_p)   whole zero-padded image (resident across row tiles)
    w_ref:     (9*Cin_p, Cmid_p)      fused per-tap weights, tap order (kh, kw)
    y_ref:     (1, th, W, Cmid_p)     raw (pre-BN) conv output tile
    stats_ref: (1, 1, 2, Cmid_p)      packed per-tile [sum; sumsq] (f32)
    """
    th = y_ref.shape[1]
    w = y_ref.shape[2]
    cin = x_ref.shape[3]
    cmid = w_ref.shape[1]

    r0 = pl.program_id(1) * th
    if th % 8 == 0:
        r0 = pl.multiple_of(r0, 8)
    win = x_ref[0, pl.ds(r0, th + 2), :, :]                    # (th+2, W+2, Cin_p)

    # In-VMEM im2col: concat the 9 shifted views along the lane-aligned channel axis,
    # giving a single (th*W, 9*Cin_p) operand that fills the MXU K dimension.
    taps = [win[kh:kh + th, kw:kw + w, :] for kh in range(3) for kw in range(3)]
    patch = jnp.concatenate(taps, axis=-1).reshape(th * w, 9 * cin)

    acc = jnp.dot(patch, w_ref[...], preferred_element_type=jnp.float32)
    y_ref[...] = acc.reshape(1, th, w, cmid).astype(y_ref.dtype)

    s = jnp.sum(acc, axis=0, keepdims=True)
    q = jnp.sum(acc * acc, axis=0, keepdims=True)
    stats_ref[...] = jnp.concatenate([s, q], axis=0).reshape(1, 1, 2, cmid)


def _upconv_kernel(a_ref, w_ref, o_ref, stats_ref):
    """Sub-pixel ConvTranspose(k=3, s=2, p=1, op=1) on one row tile via 4 fused MXU dots.

    a_ref:     (1, H+1, W+1, Cmid_p)  BN1+ReLU'd activations with an exact-zero halo
    w_ref:     (9*Cmid_p, Cout_p)     packed taps: [ee(1) | eo(2) | oe(2) | oo(4)]
    o_ref:     (4, 1, th, W, Cout_p)  parity planes (ee, eo, oe, oo), pre-BN2
    stats_ref: (1, 1, 2, Cout_p)      packed per-tile [sum; sumsq] (f32)
    """
    th = o_ref.shape[2]
    w = o_ref.shape[3]
    cmid = a_ref.shape[3]
    cout = w_ref.shape[1]

    r0 = pl.program_id(1) * th
    if th % 8 == 0:
        r0 = pl.multiple_of(r0, 8)
    win = a_ref[0, pl.ds(r0, th + 1), :, :]                    # (th+1, W+1, Cmid_p)

    a00 = win[0:th, 0:w, :].reshape(th * w, cmid)              # a[i,   j  ]
    a01 = win[0:th, 1:w + 1, :].reshape(th * w, cmid)          # a[i,   j+1]
    a10 = win[1:th + 1, 0:w, :].reshape(th * w, cmid)          # a[i+1, j  ]
    a11 = win[1:th + 1, 1:w + 1, :].reshape(th * w, cmid)      # a[i+1, j+1]

    dot = functools.partial(jnp.dot, preferred_element_type=jnp.float32)

    def emit(k, plane, s, q):
        # Store each parity plane immediately and fold its stats, bounding f32 liveness.
        o_ref[k, 0] = plane.reshape(th, w, cout).astype(o_ref.dtype)
        s = s + jnp.sum(plane, axis=0, keepdims=True)
        q = q + jnp.sum(plane * plane, axis=0, keepdims=True)
        return s, q

    s = jnp.zeros((1, cout), jnp.float32)
    q = jnp.zeros((1, cout), jnp.float32)
    s, q = emit(0, dot(a00, w_ref[0:cmid]), s, q)
    s, q = emit(1, dot(jnp.concatenate([a00, a01], axis=-1),
                       w_ref[cmid:3 * cmid]), s, q)
    s, q = emit(2, dot(jnp.concatenate([a00, a10], axis=-1),
                       w_ref[3 * cmid:5 * cmid]), s, q)
    s, q = emit(3, dot(jnp.concatenate([a00, a01, a10, a11], axis=-1),
                       w_ref[5 * cmid:9 * cmid]), s, q)

    stats_ref[...] = jnp.concatenate([s, q], axis=0).reshape(1, 1, 2, cout)


# ---------------------------------------------------------------------------
# pallas_call wrappers
# ---------------------------------------------------------------------------
def _conv3x3(xp, w_fused, tile_h):
    n, hp2, wp2, cin_p = xp.shape
    h, w = hp2 - 2, wp2 - 2
    cmid_p = w_fused.shape[1]
    n_t = h // tile_h
    isz = jnp.dtype(xp.dtype).itemsize
    vmem = _vmem_limit(hp2 * wp2 * cin_p * isz,                 # resident padded image
                       w_fused.size * isz,                      # fused weight
                       10 * tile_h * w * cin_p * isz,           # im2col patch (~9x) temp
                       tile_h * w * cmid_p * (isz + 4))         # output tile + f32 acc
    return pl.pallas_call(
        _conv3x3_kernel,
        out_shape=(jax.ShapeDtypeStruct((n, h, w, cmid_p), xp.dtype),
                   jax.ShapeDtypeStruct((n, n_t, 2, cmid_p), jnp.float32)),
        grid=(n, n_t),
        in_specs=[pl.BlockSpec((1, hp2, wp2, cin_p), lambda i, j: (i, 0, 0, 0)),
                  pl.BlockSpec(w_fused.shape, lambda i, j: (0, 0))],
        out_specs=(pl.BlockSpec((1, tile_h, w, cmid_p), lambda i, j: (i, j, 0, 0)),
                   pl.BlockSpec((1, 1, 2, cmid_p), lambda i, j: (i, j, 0, 0))),
        compiler_params=_mosaic_params(vmem),
    )(xp, w_fused)


def _upconv(a1p, w_fused, tile_h):
    n, hp1, wp1, cmid_p = a1p.shape
    h, w = hp1 - 1, wp1 - 1
    cout_p = w_fused.shape[1]
    n_t = h // tile_h
    isz = jnp.dtype(a1p.dtype).itemsize
    vmem = _vmem_limit(hp1 * wp1 * cmid_p * isz,                # resident padded image
                       w_fused.size * isz,                      # packed weight
                       6 * tile_h * w * cmid_p * isz,           # a00..a11 + oo concat temps
                       4 * tile_h * w * cout_p * isz            # 4 parity-plane out tiles
                       + tile_h * w * cout_p * 4)               # one live f32 plane
    return pl.pallas_call(
        _upconv_kernel,
        out_shape=(jax.ShapeDtypeStruct((4, n, h, w, cout_p), a1p.dtype),
                   jax.ShapeDtypeStruct((n, n_t, 2, cout_p), jnp.float32)),
        grid=(n, n_t),
        in_specs=[pl.BlockSpec((1, hp1, wp1, cmid_p), lambda i, j: (i, 0, 0, 0)),
                  pl.BlockSpec(w_fused.shape, lambda i, j: (0, 0))],
        out_specs=(pl.BlockSpec((4, 1, tile_h, w, cout_p), lambda i, j: (0, i, j, 0, 0)),
                   pl.BlockSpec((1, 1, 2, cout_p), lambda i, j: (i, j, 0, 0))),
        compiler_params=_mosaic_params(vmem),
    )(a1p, w_fused)


# ---------------------------------------------------------------------------
# BN finalization (tiny per-channel reduction, plain JAX)
# ---------------------------------------------------------------------------
def _finalize_bn(stats, count, gamma, beta):
    """stats: (N, nT, 2, C) packed per-tile [sum; sumsq] -> folded affine (scale, shift)."""
    s = jnp.sum(stats[:, :, 0, :], axis=(0, 1))
    q = jnp.sum(stats[:, :, 1, :], axis=(0, 1))
    mean = s / count
    # TODO(synk): E[y^2]-mean^2 can cancel for strongly non-centered activations; switch to
    # Welford / two-pass if this ever feeds training at large spatial extents.
    var = jnp.maximum(q / count - mean * mean, 0.0)
    scale = gamma / jnp.sqrt(var + _EPS)
    shift = beta - mean * scale
    return scale.astype(jnp.float32), shift.astype(jnp.float32)


# ---------------------------------------------------------------------------
# Forward
# ---------------------------------------------------------------------------
def decoder_block_forward(x_nchw, params, *, target_rows=256, lane_multiple=128,
                          compute_dtype=jnp.bfloat16):
    """Pallas implementation of DecoderBlock.forward (NCHW in, NCHW out, f32).

    target_rows:   ~ MXU M rows per grid step.  256 is safe for v7x's 64 MiB VMEM; push to
                   512-1024 on v5e/v6e (128 MiB VMEM).
    lane_multiple: channel padding granularity.  128 fills the v5e MXU; 256 preferred on
                   v6e/v7x (2x256^2 MXUs).
    """
    n, cin, h, w = x_nchw.shape
    cmid = params["gamma1"].shape[0]
    cout = params["gamma2"].shape[0]
    cin_p = _round_up(cin, lane_multiple)
    cmid_p = _round_up(cmid, lane_multiple)
    cout_p = _round_up(cout, lane_multiple)
    cdt = compute_dtype

    tile_h = _largest_divisor_leq(h, max(1, target_rows // w))

    # TODO(synk): for feature maps too large to keep one image resident in VMEM, switch the
    # activation in_spec to halo'd pl.Element row windows (or manual make_async_copy
    # double-buffering, depth 3 on v5e) instead of the whole-image block.

    # ---- stage 1: Conv2d(3x3, s=1, p=1, bias=False) + packed batch stats --------------
    # Single spatial(+channel) zero-pad pass; the kernel never sees overlapping HBM copies.
    x = jnp.transpose(x_nchw, (0, 2, 3, 1))                                   # NHWC
    xp = jnp.pad(x, ((0, 0), (1, 1), (1, 1), (0, cin_p - cin))).astype(cdt)

    w1 = jnp.transpose(params["w1"], (2, 3, 1, 0))                            # (3,3,Cin,Cmid)
    w1 = jnp.pad(w1, ((0, 0), (0, 0), (0, cin_p - cin), (0, cmid_p - cmid)))
    w1_fused = w1.reshape(9 * cin_p, cmid_p).astype(cdt)

    y1, st1 = _conv3x3(xp, w1_fused, tile_h)          # (N,H,W,Cmid_p), (N,nT,2,Cmid_p)

    gamma1 = jnp.pad(params["gamma1"], (0, cmid_p - cmid), constant_values=1.0)
    beta1 = jnp.pad(params["beta1"], (0, cmid_p - cmid))
    scale1, shift1 = _finalize_bn(st1, n * h * w, gamma1, beta1)

    # ---- stage 2: BN1+ReLU fused into the halo-pad pass, then sub-pixel up-conv --------
    # Padding AFTER the activation keeps the out-of-range taps exactly zero, so the up-conv
    # kernel needs no per-step boundary masks.
    a1 = jnp.maximum(y1.astype(jnp.float32) * scale1 + shift1, 0.0)
    a1p = jnp.pad(a1, ((0, 0), (0, 1), (0, 1), (0, 0))).astype(cdt)

    # ConvTranspose sub-pixel taps.  Output (2i+p, 2j+q):
    #   ee: a[i,j]@wt[1,1]
    #   eo: a[i,j]@wt[1,2] + a[i,j+1]@wt[1,0]
    #   oe: a[i,j]@wt[2,1] + a[i+1,j]@wt[0,1]
    #   oo: a[i,j]@wt[2,2] + a[i,j+1]@wt[2,0] + a[i+1,j]@wt[0,2] + a[i+1,j+1]@wt[0,0]
    tap_idx = ((1, 1),
               (1, 2), (1, 0),
               (2, 1), (0, 1),
               (2, 2), (2, 0), (0, 2), (0, 0))
    wt2 = params["wt2"]                                                       # (Cmid,Cout,3,3) IOHW
    w2 = jnp.stack([wt2[:, :, kh, kw] for kh, kw in tap_idx], axis=0)         # (9,Cmid,Cout)
    w2 = jnp.pad(w2, ((0, 0), (0, cmid_p - cmid), (0, cout_p - cout)))
    w2_fused = w2.reshape(9 * cmid_p, cout_p).astype(cdt)

    y2, st2 = _upconv(a1p, w2_fused, tile_h)          # (4,N,H,W,Cout_p), (N,nT,2,Cout_p)

    gamma2 = jnp.pad(params["gamma2"], (0, cout_p - cout), constant_values=1.0)
    beta2 = jnp.pad(params["beta2"], (0, cout_p - cout))
    # Note: BN2 stats come from the f32 pre-cast planes while the affine is applied to the
    # stored (possibly bf16) planes — negligible, documented mismatch.
    scale2, shift2 = _finalize_bn(st2, 4 * n * h * w, gamma2, beta2)

    # ---- stage 3: BN2 + ReLU fused with the parity interleave (single XLA pass) --------
    out = jnp.maximum(y2.astype(jnp.float32) * scale2 + shift2, 0.0)[..., :cout]
    out = out.reshape(2, 2, n, h, w, cout)                                    # (p,q,n,i,j,c)
    out = jnp.transpose(out, (2, 5, 3, 0, 4, 1))                              # (n,c,i,p,j,q)
    return out.reshape(n, cout, 2 * h, 2 * w)


# ---------------------------------------------------------------------------
# Parameters
# ---------------------------------------------------------------------------
def make_params(key, in_channels, mid_channels, out_channels):
    """Deterministic synthetic parameters with the same shapes as the PyTorch module."""
    k = jax.random.split(key, 6)
    w1 = 0.2 * jax.random.normal(k[0], (mid_channels, in_channels, 3, 3), jnp.float32)    # OIHW
    wt2 = 0.2 * jax.random.normal(k[1], (mid_channels, out_channels, 3, 3), jnp.float32)  # IOHW
    gamma1 = 1.0 + 0.1 * jax.random.normal(k[2], (mid_channels,), jnp.float32)
    beta1 = 0.1 * jax.random.normal(k[3], (mid_channels,), jnp.float32)
    gamma2 = 1.0 + 0.1 * jax.random.normal(k[4], (out_channels,), jnp.float32)
    beta2 = 0.1 * jax.random.normal(k[5], (out_channels,), jnp.float32)
    return dict(w1=w1, wt2=wt2, gamma1=gamma1, beta1=beta1, gamma2=gamma2, beta2=beta2)


# ---------------------------------------------------------------------------
# Pure-JAX reference (for correctness check)
# ---------------------------------------------------------------------------
def _bn_train_ref(y, gamma, beta):
    mean = y.mean(axis=(0, 2, 3), keepdims=True)
    var = y.var(axis=(0, 2, 3), keepdims=True)
    return ((y - mean) / jnp.sqrt(var + _EPS) * gamma.reshape(1, -1, 1, 1)
            + beta.reshape(1, -1, 1, 1))


def reference_forward(x_nchw, params):
    dn = ("NCHW", "OIHW", "NCHW")
    y = lax.conv_general_dilated(x_nchw, params["w1"], (1, 1),
                                 ((1, 1), (1, 1)), dimension_numbers=dn)
    y = jnp.maximum(_bn_train_ref(y, params["gamma1"], params["beta1"]), 0.0)
    w2 = jnp.transpose(jnp.flip(params["wt2"], axis=(2, 3)), (1, 0, 2, 3))    # OIHW, flipped
    y = lax.conv_general_dilated(y, w2, (1, 1), ((1, 2), (1, 2)),
                                 lhs_dilation=(2, 2), dimension_numbers=dn)
    y = jnp.maximum(_bn_train_ref(y, params["gamma2"], params["beta2"]), 0.0)
    return y


if __name__ == "__main__":
    key = jax.random.PRNGKey(0)
    kx, kp = jax.random.split(key)

    N, Cin, H, W = 2, 4, 16, 16
    mid, out_c = 8, 4

    x = jax.random.normal(kx, (N, Cin, H, W), jnp.float32)
    params = make_params(kp, Cin, mid, out_c)
    y_ref = reference_forward(x, params)

    # f32 MXU operands: near-exact against the reference.
    fwd_f32 = jax.jit(functools.partial(decoder_block_forward,
                                        compute_dtype=jnp.float32))
    y32 = jax.block_until_ready(fwd_f32(x, params))
    assert y32.shape == (N, out_c, 2 * H, 2 * W), y32.shape
    err32 = float(jnp.max(jnp.abs(y32 - y_ref)))
    assert err32 < 1e-2, f"f32 max abs err {err32}"

    # Default path: bf16 MXU operands, f32 accumulation / stats (looser tolerance).
    fwd_bf16 = jax.jit(decoder_block_forward)
    y16 = jax.block_until_ready(fwd_bf16(x, params))
    assert y16.shape == (N, out_c, 2 * H, 2 * W), y16.shape
    err16 = float(jnp.max(jnp.abs(y16 - y_ref)))
    assert err16 < 1e-1, f"bf16 max abs err {err16}"

    print("KERNEL_OK")
</pallas_src>

<mosaic_0001>
module attributes {stable_mosaic.version = 11 : i64} {
  func.func @_conv3x3_kernel(%arg0: i32, %arg1: i32, %arg2: memref<1x18x18x128xf32, #tpu.memory_space<vmem>>, %arg3: memref<1152x128xf32, #tpu.memory_space<vmem>>, %arg4: memref<1x16x16x128xf32, #tpu.memory_space<vmem>>, %arg5: memref<1x1x2x128xf32, #tpu.memory_space<vmem>>) attributes {dimension_semantics = [#tpu.dimension_semantics<parallel>, #tpu.dimension_semantics<parallel>], iteration_bounds = array<i64: 2, 1>, scalar_prefetch = 0 : i64, scratch_operands = 0 : i64, tpu.core_type = #tpu.core_type<tc>, window_params = [{transform_indices = @transform_0, window_bounds = array<i64: 1, 18, 18, 128>}, {pipeline_mode = #tpu.pipeline_mode<synchronous>, transform_indices = @transform_1, window_bounds = array<i64: 1152, 128>}, {transform_indices = @transform_2, window_bounds = array<i64: 1, 16, 16, 128>}, {transform_indices = @transform_3, window_bounds = array<i64: 1, 1, 2, 128>}]} {
    %c16_i32 = arith.constant 16 : i32
    %0 = arith.muli %arg1, %c16_i32 : i32
    %1 = tpu.assume_multiple %0, 8 : i32
    %c0 = arith.constant 0 : index
    %2 = arith.index_cast %1 : i32 to index
    %c0_0 = arith.constant 0 : index
    %c0_1 = arith.constant 0 : index
    %3 = vector.load %arg2[%c0, %2, %c0_0, %c0_1] : memref<1x18x18x128xf32, #tpu.memory_space<vmem>>, vector<1x18x18x128xf32>
    %4 = vector.shape_cast %3 : vector<1x18x18x128xf32> to vector<18x18x128xf32>
    %5 = vector.extract_strided_slice %4 {offsets = [0, 0, 0], sizes = [16, 16, 128], strides = [1, 1, 1]} : vector<18x18x128xf32> to vector<16x16x128xf32>
    %6 = vector.extract_strided_slice %4 {offsets = [0, 1, 0], sizes = [16, 16, 128], strides = [1, 1, 1]} : vector<18x18x128xf32> to vector<16x16x128xf32>
    %7 = vector.extract_strided_slice %4 {offsets = [0, 2, 0], sizes = [16, 16, 128], strides = [1, 1, 1]} : vector<18x18x128xf32> to vector<16x16x128xf32>
    %8 = vector.extract_strided_slice %4 {offsets = [1, 0, 0], sizes = [16, 16, 128], strides = [1, 1, 1]} : vector<18x18x128xf32> to vector<16x16x128xf32>
    %9 = vector.extract_strided_slice %4 {offsets = [1, 1, 0], sizes = [16, 16, 128], strides = [1, 1, 1]} : vector<18x18x128xf32> to vector<16x16x128xf32>
    %10 = vector.extract_strided_slice %4 {offsets = [1, 2, 0], sizes = [16, 16, 128], strides = [1, 1, 1]} : vector<18x18x128xf32> to vector<16x16x128xf32>
    %11 = vector.extract_strided_slice %4 {offsets = [2, 0, 0], sizes = [16, 16, 128], strides = [1, 1, 1]} : vector<18x18x128xf32> to vector<16x16x128xf32>
    %12 = vector.extract_strided_slice %4 {offsets = [2, 1, 0], sizes = [16, 16, 128], strides = [1, 1, 1]} : vector<18x18x128xf32> to vector<16x16x128xf32>
    %13 = vector.extract_strided_slice %4 {offsets = [2, 2, 0], sizes = [16, 16, 128], strides = [1, 1, 1]} : vector<18x18x128xf32> to vector<16x16x128xf32>
    %14 = tpu.concatenate %5, %6, %7, %8, %9, %10, %11, %12, %13 in 2 : vector<16x16x128xf32>, vector<16x16x128xf32>, vector<16x16x128xf32>, vector<16x16x128xf32>, vector<16x16x128xf32>, vector<16x16x128xf32>, vector<16x16x128xf32>, vector<16x16x128xf32>, vector<16x16x128xf32> -> vector<16x16x1152xf32>
    %15 = vector.shape_cast %14 : vector<16x16x1152xf32> to vector<256x1152xf32>
    %c0_2 = arith.constant 0 : index
    %c0_3 = arith.constant 0 : index
    %16 = vector.load %arg3[%c0_2, %c0_3] : memref<1152x128xf32, #tpu.memory_space<vmem>>, vector<1152x128xf32>
    %cst = arith.constant dense<0.000000e+00> : vector<256x128xf32>
    %17 = tpu.matmul %15, %16, %cst {dimension_numbers = #tpu.dot_dimension_numbers<[1], [0], [0], [1], [0, 0, 1, 1], [], []>} : vector<256x1152xf32>, vector<1152x128xf32>, vector<256x128xf32> -> vector<256x128xf32>
    %18 = vector.shape_cast %17 : vector<256x128xf32> to vector<1x16x16x128xf32>
    %c0_4 = arith.constant 0 : index
    %c0_5 = arith.constant 0 : index
    %c0_6 = arith.constant 0 : index
    %c0_7 = arith.constant 0 : index
    %19 = vector.load %arg4[%c0_4, %c0_5, %c0_6, %c0_7] : memref<1x16x16x128xf32, #tpu.memory_space<vmem>>, vector<1x16x16x128xf32>
    tpu.vector_store %arg4[%c0_4, %c0_5, %c0_6, %c0_7], %18 {strides = array<i32>} : memref<1x16x16x128xf32, #tpu.memory_space<vmem>>, vector<1x16x16x128xf32>,
    %cst_8 = arith.constant dense<0.000000e+00> : vector<128xf32>
    %20 = vector.multi_reduction <add>, %17, %cst_8 [0] : vector<256x128xf32> to vector<128xf32>
    %21 = vector.shape_cast %20 : vector<128xf32> to vector<1x128xf32>
    %22 = arith.mulf %17, %17 : vector<256x128xf32>
    %cst_9 = arith.constant dense<0.000000e+00> : vector<128xf32>
    %23 = vector.multi_reduction <add>, %22, %cst_9 [0] : vector<256x128xf32> to vector<128xf32>
    %24 = vector.shape_cast %23 : vector<128xf32> to vector<1x128xf32>
    %25 = tpu.concatenate %21, %24 in 0 : vector<1x128xf32>, vector<1x128xf32> -> vector<2x128xf32>
    %26 = vector.shape_cast %25 : vector<2x128xf32> to vector<1x1x2x128xf32>
    %c0_10 = arith.constant 0 : index
    %c0_11 = arith.constant 0 : index
    %c0_12 = arith.constant 0 : index
    %c0_13 = arith.constant 0 : index
    %27 = vector.load %arg5[%c0_10, %c0_11, %c0_12, %c0_13] : memref<1x1x2x128xf32, #tpu.memory_space<vmem>>, vector<1x1x2x128xf32>
    tpu.vector_store %arg5[%c0_10, %c0_11, %c0_12, %c0_13], %26 {strides = array<i32>} : memref<1x1x2x128xf32, #tpu.memory_space<vmem>>, vector<1x1x2x128xf32>,
    return
  }
  func.func @transform_0(%arg0: i32, %arg1: i32) -> (i32, i32, i32, i32) {
    %c0_i32 = arith.constant 0 : i32
    %c0_i32_0 = arith.constant 0 : i32
    %c0_i32_1 = arith.constant 0 : i32
    %c0_i32_2 = arith.constant 0 : i32
    return %arg0, %c0_i32, %c0_i32_0, %c0_i32_1 : i32, i32, i32, i32
  }
  func.func @transform_1(%arg0: i32, %arg1: i32) -> (i32, i32) {
    %c0_i32 = arith.constant 0 : i32
    %c0_i32_0 = arith.constant 0 : i32
    %c0_i32_1 = arith.constant 0 : i32
    return %c0_i32, %c0_i32_0 : i32, i32
  }
  func.func @transform_2(%arg0: i32, %arg1: i32) -> (i32, i32, i32, i32) {
    %c0_i32 = arith.constant 0 : i32
    %c0_i32_0 = arith.constant 0 : i32
    %c0_i32_1 = arith.constant 0 : i32
    return %arg0, %arg1, %c0_i32, %c0_i32_0 : i32, i32, i32, i32
  }
  func.func @transform_3(%arg0: i32, %arg1: i32) -> (i32, i32, i32, i32) {
    %c0_i32 = arith.constant 0 : i32
    %c0_i32_0 = arith.constant 0 : i32
    %c0_i32_1 = arith.constant 0 : i32
    return %arg0, %arg1, %c0_i32, %c0_i32_0 : i32, i32, i32, i32
  }
}

module attributes {stable_mosaic.version = 11 : i64} {
  func.func @_upconv_kernel(%arg0: i32, %arg1: i32, %arg2: memref<1x17x17x128xf32, #tpu.memory_space<vmem>>, %arg3: memref<1152x128xf32, #tpu.memory_space<vmem>>, %arg4: memref<4x1x16x16x128xf32, #tpu.memory_space<vmem>>, %arg5: memref<1x1x2x128xf32, #tpu.memory_space<vmem>>) attributes {dimension_semantics = [#tpu.dimension_semantics<parallel>, #tpu.dimension_semantics<parallel>], iteration_bounds = array<i64: 2, 1>, scalar_prefetch = 0 : i64, scratch_operands = 0 : i64, tpu.core_type = #tpu.core_type<tc>, window_params = [{transform_indices = @transform_0, window_bounds = array<i64: 1, 17, 17, 128>}, {pipeline_mode = #tpu.pipeline_mode<synchronous>, transform_indices = @transform_1, window_bounds = array<i64: 1152, 128>}, {transform_indices = @transform_2, window_bounds = array<i64: 4, 1, 16, 16, 128>}, {transform_indices = @transform_3, window_bounds = array<i64: 1, 1, 2, 128>}]} {
    %c16_i32 = arith.constant 16 : i32
    %0 = arith.muli %arg1, %c16_i32 : i32
    %1 = tpu.assume_multiple %0, 8 : i32
    %c0 = arith.constant 0 : index
    %2 = arith.index_cast %1 : i32 to index
    %c0_0 = arith.constant 0 : index
    %c0_1 = arith.constant 0 : index
    %3 = vector.load %arg2[%c0, %2, %c0_0, %c0_1] : memref<1x17x17x128xf32, #tpu.memory_space<vmem>>, vector<1x17x17x128xf32>
    %4 = vector.shape_cast %3 : vector<1x17x17x128xf32> to vector<17x17x128xf32>
    %5 = vector.extract_strided_slice %4 {offsets = [0, 0, 0], sizes = [16, 16, 128], strides = [1, 1, 1]} : vector<17x17x128xf32> to vector<16x16x128xf32>
    %6 = vector.shape_cast %5 : vector<16x16x128xf32> to vector<256x128xf32>
    %7 = vector.extract_strided_slice %4 {offsets = [0, 1, 0], sizes = [16, 16, 128], strides = [1, 1, 1]} : vector<17x17x128xf32> to vector<16x16x128xf32>
    %8 = vector.shape_cast %7 : vector<16x16x128xf32> to vector<256x128xf32>
    %9 = vector.extract_strided_slice %4 {offsets = [1, 0, 0], sizes = [16, 16, 128], strides = [1, 1, 1]} : vector<17x17x128xf32> to vector<16x16x128xf32>
    %10 = vector.shape_cast %9 : vector<16x16x128xf32> to vector<256x128xf32>
    %11 = vector.extract_strided_slice %4 {offsets = [1, 1, 0], sizes = [16, 16, 128], strides = [1, 1, 1]} : vector<17x17x128xf32> to vector<16x16x128xf32>
    %12 = vector.shape_cast %11 : vector<16x16x128xf32> to vector<256x128xf32>
    %cst = arith.constant 0.000000e+00 : f32
    %13 = vector.broadcast %cst : f32 to vector<1x128xf32>
    %cst_2 = arith.constant 0.000000e+00 : f32
    %14 = vector.broadcast %cst_2 : f32 to vector<1x128xf32>
    %c0_3 = arith.constant 0 : index
    %c0_4 = arith.constant 0 : index
    %15 = vector.load %arg3[%c0_3, %c0_4] : memref<1152x128xf32, #tpu.memory_space<vmem>>, vector<128x128xf32>
    %cst_5 = arith.constant dense<0.000000e+00> : vector<256x128xf32>
    %16 = tpu.matmul %6, %15, %cst_5 {dimension_numbers = #tpu.dot_dimension_numbers<[1], [0], [0], [1], [0, 0, 1, 1], [], []>} : vector<256x128xf32>, vector<128x128xf32>, vector<256x128xf32> -> vector<256x128xf32>
    %17 = vector.shape_cast %16 : vector<256x128xf32> to vector<16x16x128xf32>
    %c0_6 = arith.constant 0 : index
    %c0_7 = arith.constant 0 : index
    %c0_8 = arith.constant 0 : index
    %c0_9 = arith.constant 0 : index
    %c0_10 = arith.constant 0 : index
    %18 = vector.load %arg4[%c0_6, %c0_7, %c0_8, %c0_9, %c0_10] : memref<4x1x16x16x128xf32, #tpu.memory_space<vmem>>, vector<1x1x16x16x128xf32>
    %19 = vector.shape_cast %18 : vector<1x1x16x16x128xf32> to vector<16x16x128xf32>
    %20 = vector.shape_cast %17 : vector<16x16x128xf32> to vector<1x1x16x16x128xf32>
    tpu.vector_store %arg4[%c0_6, %c0_7, %c0_8, %c0_9, %c0_10], %20 {strides = array<i32>} : memref<4x1x16x16x128xf32, #tpu.memory_space<vmem>>, vector<1x1x16x16x128xf32>,
    %cst_11 = arith.constant dense<0.000000e+00> : vector<128xf32>
    %21 = vector.multi_reduction <add>, %16, %cst_11 [0] : vector<256x128xf32> to vector<128xf32>
    %22 = vector.shape_cast %21 : vector<128xf32> to vector<1x128xf32>
    %23 = arith.addf %13, %22 : vector<1x128xf32>
    %24 = arith.mulf %16, %16 : vector<256x128xf32>
    %cst_12 = arith.constant dense<0.000000e+00> : vector<128xf32>
    %25 = vector.multi_reduction <add>, %24, %cst_12 [0] : vector<256x128xf32> to vector<128xf32>
    %26 = vector.shape_cast %25 : vector<128xf32> to vector<1x128xf32>
    %27 = arith.addf %14, %26 : vector<1x128xf32>
    %28 = tpu.concatenate %6, %8 in 1 : vector<256x128xf32>, vector<256x128xf32> -> vector<256x256xf32>
    %c128 = arith.constant 128 : index
    %c0_13 = arith.constant 0 : index
    %29 = vector.load %arg3[%c128, %c0_13] : memref<1152x128xf32, #tpu.memory_space<vmem>>, vector<256x128xf32>
    %cst_14 = arith.constant dense<0.000000e+00> : vector<256x128xf32>
    %30 = tpu.matmul %28, %29, %cst_14 {dimension_numbers = #tpu.dot_dimension_numbers<[1], [0], [0], [1], [0, 0, 1, 1], [], []>} : vector<256x256xf32>, vector<256x128xf32>, vector<256x128xf32> -> vector<256x128xf32>
    %31 = vector.shape_cast %30 : vector<256x128xf32> to vector<16x16x128xf32>
    %c1 = arith.constant 1 : index
    %c0_15 = arith.constant 0 : index
    %c0_16 = arith.constant 0 : index
    %c0_17 = arith.constant 0 : index
    %c0_18 = arith.constant 0 : index
    %32 = vector.load %arg4[%c1, %c0_15, %c0_16, %c0_17, %c0_18] : memref<4x1x16x16x128xf32, #tpu.memory_space<vmem>>, vector<1x1x16x16x128xf32>
    %33 = vector.shape_cast %32 : vector<1x1x16x16x128xf32> to vector<16x16x128xf32>
    %34 = vector.shape_cast %31 : vector<16x16x128xf32> to vector<1x1x16x16x128xf32>
    tpu.vector_store %arg4[%c1, %c0_15, %c0_16, %c0_17, %c0_18], %34 {strides = array<i32>} : memref<4x1x16x16x128xf32, #tpu.memory_space<vmem>>, vector<1x1x16x16x128xf32>,
    %cst_19 = arith.constant dense<0.000000e+00> : vector<128xf32>
    %35 = vector.multi_reduction <add>, %30, %cst_19 [0] : vector<256x128xf32> to vector<128xf32>
    %36 = vector.shape_cast %35 : vector<128xf32> to vector<1x128xf32>
    %37 = arith.addf %23, %36 : vector<1x128xf32>
    %38 = arith.mulf %30, %30 : vector<256x128xf32>
    %cst_20 = arith.constant dense<0.000000e+00> : vector<128xf32>
    %39 = vector.multi_reduction <add>, %38, %cst_20 [0] : vector<256x128xf32> to vector<128xf32>
    %40 = vector.shape_cast %39 : vector<128xf32> to vector<1x128xf32>
    %41 = arith.addf %27, %40 : vector<1x128xf32>
    %42 = tpu.concatenate %6, %10 in 1 : vector<256x128xf32>, vector<256x128xf32> -> vector<256x256xf32>
    %c384 = arith.constant 384 : index
    %c0_21 = arith.constant 0 : index
    %43 = vector.load %arg3[%c384, %c0_21] : memref<1152x128xf32, #tpu.memory_space<vmem>>, vector<256x128xf32>
    %cst_22 = arith.constant dense<0.000000e+00> : vector<256x128xf32>
    %44 = tpu.matmul %42, %43, %cst_22 {dimension_numbers = #tpu.dot_dimension_numbers<[1], [0], [0], [1], [0, 0, 1, 1], [], []>} : vector<256x256xf32>, vector<256x128xf32>, vector<256x128xf32> -> vector<256x128xf32>
    %45 = vector.shape_cast %44 : vector<256x128xf32> to vector<16x16x128xf32>
    %c2 = arith.constant 2 : index
    %c0_23 = arith.constant 0 : index
    %c0_24 = arith.constant 0 : index
    %c0_25 = arith.constant 0 : index
    %c0_26 = arith.constant 0 : index
    %46 = vector.load %arg4[%c2, %c0_23, %c0_24, %c0_25, %c0_26] : memref<4x1x16x16x128xf32, #tpu.memory_space<vmem>>, vector<1x1x16x16x128xf32>
    %47 = vector.shape_cast %46 : vector<1x1x16x16x128xf32> to vector<16x16x128xf32>
    %48 = vector.shape_cast %45 : vector<16x16x128xf32> to vector<1x1x16x16x128xf32>
    tpu.vector_store %arg4[%c2, %c0_23, %c0_24, %c0_25, %c0_26], %48 {strides = array<i32>} : memref<4x1x16x16x128xf32, #tpu.memory_space<vmem>>, vector<1x1x16x16x128xf32>,
    %cst_27 = arith.constant dense<0.000000e+00> : vector<128xf32>
    %49 = vector.multi_reduction <add>, %44, %cst_27 [0] : vector<256x128xf32> to vector<128xf32>
    %50 = vector.shape_cast %49 : vector<128xf32> to vector<1x128xf32>
    %51 = arith.addf %37, %50 : vector<1x128xf32>
    %52 = arith.mulf %44, %44 : vector<256x128xf32>
    %cst_28 = arith.constant dense<0.000000e+00> : vector<128xf32>
    %53 = vector.multi_reduction <add>, %52, %cst_28 [0] : vector<256x128xf32> to vector<128xf32>
    %54 = vector.shape_cast %53 : vector<128xf32> to vector<1x128xf32>
    %55 = arith.addf %41, %54 : vector<1x128xf32>
    %56 = tpu.concatenate %6, %8, %10, %12 in 1 : vector<256x128xf32>, vector<256x128xf32>, vector<256x128xf32>, vector<256x128xf32> -> vector<256x512xf32>
    %c640 = arith.constant 640 : index
    %c0_29 = arith.constant 0 : index
    %57 = vector.load %arg3[%c640, %c0_29] : memref<1152x128xf32, #tpu.memory_space<vmem>>, vector<512x128xf32>
    %cst_30 = arith.constant dense<0.000000e+00> : vector<256x128xf32>
    %58 = tpu.matmul %56, %57, %cst_30 {dimension_numbers = #tpu.dot_dimension_numbers<[1], [0], [0], [1], [0, 0, 1, 1], [], []>} : vector<256x512xf32>, vector<512x128xf32>, vector<256x128xf32> -> vector<256x128xf32>
    %59 = vector.shape_cast %58 : vector<256x128xf32> to vector<16x16x128xf32>
    %c3 = arith.constant 3 : index
    %c0_31 = arith.constant 0 : index
    %c0_32 = arith.constant 0 : index
    %c0_33 = arith.constant 0 : index
    %c0_34 = arith.constant 0 : index
    %60 = vector.load %arg4[%c3, %c0_31, %c0_32, %c0_33, %c0_34] : memref<4x1x16x16x128xf32, #tpu.memory_space<vmem>>, vector<1x1x16x16x128xf32>
    %61 = vector.shape_cast %60 : vector<1x1x16x16x128xf32> to vector<16x16x128xf32>
    %62 = vector.shape_cast %59 : vector<16x16x128xf32> to vector<1x1x16x16x128xf32>
    tpu.vector_store %arg4[%c3, %c0_31, %c0_32, %c0_33, %c0_34], %62 {strides = array<i32>} : memref<4x1x16x16x128xf32, #tpu.memory_space<vmem>>, vector<1x1x16x16x128xf32>,
    %cst_35 = arith.constant dense<0.000000e+00> : vector<128xf32>
    %63 = vector.multi_reduction <add>, %58, %cst_35 [0] : vector<256x128xf32> to vector<128xf32>
    %64 = vector.shape_cast %63 : vector<128xf32> to vector<1x128xf32>
    %65 = arith.addf %51, %64 : vector<1x128xf32>
    %66 = arith.mulf %58, %58 : vector<256x128xf32>
    %cst_36 = arith.constant dense<0.000000e+00> : vector<128xf32>
    %67 = vector.multi_reduction <add>, %66, %cst_36 [0] : vector<256x128xf32> to vector<128xf32>
    %68 = vector.shape_cast %67 : vector<128xf32> to vector<1x128xf32>
    %69 = arith.addf %55, %68 : vector<1x128xf32>
    %70 = tpu.concatenate %65, %69 in 0 : vector<1x128xf32>, vector<1x128xf32> -> vector<2x128xf32>
    %71 = vector.shape_cast %70 : vector<2x128xf32> to vector<1x1x2x128xf32>
    %c0_37 = arith.constant 0 : index
    %c0_38 = arith.constant 0 : index
    %c0_39 = arith.constant 0 : index
    %c0_40 = arith.constant 0 : index
    %72 = vector.load %arg5[%c0_37, %c0_38, %c0_39, %c0_40] : memref<1x1x2x128xf32, #tpu.memory_space<vmem>>, vector<1x1x2x128xf32>
    tpu.vector_store %arg5[%c0_37, %c0_38, %c0_39, %c0_40], %71 {strides = array<i32>} : memref<1x1x2x128xf32, #tpu.memory_space<vmem>>, vector<1x1x2x128xf32>,
    return
  }
  func.func @transform_0(%arg0: i32, %arg1: i32) -> (i32, i32, i32, i32) {
    %c0_i32 = arith.constant 0 : i32
    %c0_i32_0 = arith.constant 0 : i32
    %c0_i32_1 = arith.constant 0 : i32
    %c0_i32_2 = arith.constant 0 : i32
    return %arg0, %c0_i32, %c0_i32_0, %c0_i32_1 : i32, i32, i32, i32
  }
  func.func @transform_1(%arg0: i32, %arg1: i32) -> (i32, i32) {
    %c0_i32 = arith.constant 0 : i32
    %c0_i32_0 = arith.constant 0 : i32
    %c0_i32_1 = arith.constant 0 : i32
    return %c0_i32, %c0_i32_0 : i32, i32
  }
  func.func @transform_2(%arg0: i32, %arg1: i32) -> (i32, i32, i32, i32, i32) {
    %c0_i32 = arith.constant 0 : i32
    %c0_i32_0 = arith.constant 0 : i32
    %c0_i32_1 = arith.constant 0 : i32
    %c0_i32_2 = arith.constant 0 : i32
    return %c0_i32, %arg0, %arg1, %c0_i32_0, %c0_i32_1 : i32, i32, i32, i32, i32
  }
  func.func @transform_3(%arg0: i32, %arg1: i32) -> (i32, i32, i32, i32) {
    %c0_i32 = arith.constant 0 : i32
    %c0_i32_0 = arith.constant 0 : i32
    %c0_i32_1 = arith.constant 0 : i32
    return %arg0, %arg1, %c0_i32, %c0_i32_0 : i32, i32, i32, i32
  }
}

</mosaic_0001>

<bundles_post_ra>
// kernel: decoder_block_forward.2
= control target key start
LH: loop header
LB: loop body
LE: loop exit
PB: predicated region body
PF: predicated region fallthrough
CT: control target
= control target key end

     0   :  { %s2363_s12 = smov 0   ;;  %s2365_s13 = smov 0   ;;  %s3979_s0 = inlined_call_operand.vmem [shape: f32[2,18,18,128], index: 0, kind: input, shape index: {}]   ;;  %s3980_s1 = inlined_call_operand.vmem [shape: f32[1152,128], index: 1, kind: input, shape index: {}]   ;;  %s3981_s2 = inlined_call_operand.vmem [shape: f32[2,16,16,128], index: 2, kind: output, shape index: {0}]   ;;  %s3982_s3 = inlined_call_operand.vmem [shape: f32[2,1,2,128], index: 3, kind: output, shape index: {1}]  }
   0x1   :  { %s2367_s14 = smov 0  }
   0x2 LB: > { %s26_s15 = sadd.s32 1, %s2336_s13  ;;  %p2124_p0 = scmp.ge.s32.totalorder %s2340_s14, 1  ;;  %s2340_s14 = sphi %s2367_s14, %s14_s14   ;;  %s2336_s13 = sphi %s2365_s13, %s4129_s13   ;;  %s2332_s12 = sphi %s2363_s12, %s4128_s12  }
   0x3   : > { %p28_p1 = scmp.ge.s32.totalorder %s26_s15, 2  ;;  %p156_p2 = scmp.lt.s32.totalorder %s2340_s14, 3 }
   0x5   : > { %s4131_s15 = smov (%p28_p1, %s26_s15), 0  ;;  %p157_p3 = pnand %p2124_p0, %p156_p2 }
   0x7   : > { %160 = sbr.rel (%p157_p3) target bundleno = 611 (0x263), region = 28 }
   0xc   : > { %v595_v0 = vld [vmem:[%s3980_s1 + $0x78] sm:$0xff]  ;;  %v2342_v2 = vmov 0.0   ;;  %v594_v3 = vld [vmem:[%s3980_s1 + $0x70] sm:$0xff]  ;;  %v593_v5 = vld [vmem:[%s3980_s1 + $0x68] sm:$0xff]  ;;  %p192_p4 = scmp.lt.s32.totalorder %s2332_s12, 1  ;;  %vm320_vm0 = vcmask 1046528  }
   0xd   : > { %v627_v1 = vld [vmem:[%s3980_s1 + $0x178] sm:$0xff]  ;;  %724 = vmatprep.subr.mxu0 %v2342_v2  ;;  %949 = vmatprep.subr.mxu1 %v2342_v2  ;;  %v626_v4 = vld [vmem:[%s3980_s1 + $0x170] sm:$0xff]  ;;  %v625_v6 = vld [vmem:[%s3980_s1 + $0x168] sm:$0xff]  ;;  %vm433_vm1 = vcmask 1045504   ;;  %vm1987_vm2 = vcmask 1040384  }
   0xe   : > { %725 = vmatpush1.msra.mxu0 %v595_v0  ;;  %950 = vmatpush1.msra.mxu1 %v627_v1  ;;  %v592_v7 = vld [vmem:[%s3980_s1 + $0x60] sm:$0xff]  ;;  %v591_v9 = vld [vmem:[%s3980_s1 + $0x58] sm:$0xff]  ;;  %v590_v11 = vld [vmem:[%s3980_s1 + $0x50] sm:$0xff]  ;;  %s4133_s12 = smov (!%p192_p4, %s2332_s12), 1 }
   0xf   : > { %726 = vmatprep.subr.mxu0 %v2342_v2  ;;  %951 = vmatprep.subr.mxu1 %v2342_v2  ;;  %v624_v8 = vld [vmem:[%s3980_s1 + $0x160] sm:$0xff]  ;;  %v623_v10 = vld [vmem:[%s3980_s1 + $0x158] sm:$0xff]  ;;  %v622_v12 = vld [vmem:[%s3980_s1 + $0x150] sm:$0xff]  ;;  %s2292_s24 = smul.u32 432, %s4133_s12  ;;  %s2128_s20 = sshll.u32 %s4133_s12, 1 }
  0x10   : > { %727 = vmatpush1.msra.mxu0 %v594_v3  ;;  %952 = vmatpush1.msra.mxu1 %v626_v4  ;;  %v589_v13 = vld [vmem:[%s3980_s1 + $0x48] sm:$0xff]  ;;  %v588_v15 = vld [vmem:[%s3980_s1 + $0x40] sm:$0xff]  ;;  %v587_v17 = vld [vmem:[%s3980_s1 + $0x38] sm:$0xff]  ;;  %s214_s23 = scalar_lea.vmem %s3982_s3, %s2128_s20 }
  0x11   : > { %728 = vmatprep.subr.mxu0 %v2342_v2  ;;  %953 = vmatprep.subr.mxu1 %v2342_v2  ;;  %v621_v14 = vld [vmem:[%s3980_s1 + $0x148] sm:$0xff]  ;;  %v620_v16 = vld [vmem:[%s3980_s1 + $0x140] sm:$0xff]  ;;  %v619_v18 = vld [vmem:[%s3980_s1 + $0x138] sm:$0xff]  ;;  %s2605_s8 = scalar_lea.vmem %s3979_s0, %s2292_s24 }
  0x12   : > { %729 = vmatpush1.msra.mxu0 %v593_v5  ;;  %954 = vmatpush1.msra.mxu1 %v625_v6  ;;  %v586_v19 = vld [vmem:[%s3980_s1 + $0x30] sm:$0xff]  ;;  %v585_v21 = vld [vmem:[%s3980_s1 + $0x28] sm:$0xff]  ;;  %v584_v23 = vld [vmem:[%s3980_s1 + $0x20] sm:$0xff] }
  0x13   : > { %730 = vmatprep.subr.mxu0 %v2342_v2  ;;  %955 = vmatprep.subr.mxu1 %v2342_v2  ;;  %v618_v20 = vld [vmem:[%s3980_s1 + $0x130] sm:$0xff]  ;;  %v617_v22 = vld [vmem:[%s3980_s1 + $0x128] sm:$0xff]  ;;  %v616_v24 = vld [vmem:[%s3980_s1 + $0x120] sm:$0xff] }
  0x14   : > { %731 = vmatpush1.msra.mxu0 %v592_v7  ;;  %956 = vmatpush1.msra.mxu1 %v624_v8  ;;  %v583_v25 = vld [vmem:[%s3980_s1 + $0x18] sm:$0xff]  ;;  %v582_v27 = vld [vmem:[%s3980_s1 + $0x10] sm:$0xff]  ;;  %v581_v29 = vld [vmem:[%s3980_s1 + $0x8] sm:$0xff] }
  0x15   : > { %732 = vmatprep.subr.mxu0 %v2342_v2  ;;  %957 = vmatprep.subr.mxu1 %v2342_v2  ;;  %v615_v26 = vld [vmem:[%s3980_s1 + $0x118] sm:$0xff]  ;;  %v614_v28 = vld [vmem:[%s3980_s1 + $0x110] sm:$0xff]  ;;  %v613_v30 = vld [vmem:[%s3980_s1 + $0x108] sm:$0xff] }
  0x16   : > { %733 = vmatpush1.msra.mxu0 %v591_v9  ;;  %958 = vmatpush1.msra.mxu1 %v623_v10  ;;  %v580_v31 = vld [vmem:[%s3980_s1] sm:$0xff]  ;;  %v611_v33 = vld [vmem:[%s3980_s1 + $0xf8] sm:$0xff]  ;;  %v610_v35 = vld [vmem:[%s3980_s1 + $0xf0] sm:$0xff] }
  0x17   : > { %734 = vmatprep.subr.mxu0 %v2342_v2  ;;  %959 = vmatprep.subr.mxu1 %v2342_v2  ;;  %v612_v32 = vld [vmem:[%s3980_s1 + $0x100] sm:$0xff]  ;;  %v643_v34 = vld [vmem:[%s3980_s1 + $0x1f8] sm:$0xff]  ;;  %v642_v36 = vld [vmem:[%s3980_s1 + $0x1f0] sm:$0xff] }
  0x18   : > { %735 = vmatpush1.msra.mxu0 %v590_v11  ;;  %960 = vmatpush1.msra.mxu1 %v622_v12  ;;  %v609_v37 = vld [vmem:[%s3980_s1 + $0xe8] sm:$0xff]  ;;  %v608_v39 = vld [vmem:[%s3980_s1 + $0xe0] sm:$0xff]  ;;  %v607_v41 = vld [vmem:[%s3980_s1 + $0xd8] sm:$0xff] }
  0x19   : > { %736 = vmatprep.subr.mxu0 %v2342_v2  ;;  %961 = vmatprep.subr.mxu1 %v2342_v2  ;;  %v641_v38 = vld [vmem:[%s3980_s1 + $0x1e8] sm:$0xff]  ;;  %v640_v40 = vld [vmem:[%s3980_s1 + $0x1e0] sm:$0xff]  ;;  %v639_v42 = vld [vmem:[%s3980_s1 + $0x1d8] sm:$0xff] }
  0x1a   : > { %737 = vmatpush1.msra.mxu0 %v589_v13  ;;  %962 = vmatpush1.msra.mxu1 %v621_v14  ;;  %v606_v43 = vld [vmem:[%s3980_s1 + $0xd0] sm:$0xff]  ;;  %v605_v45 = vld [vmem:[%s3980_s1 + $0xc8] sm:$0xff]  ;;  %v604_v47 = vld [vmem:[%s3980_s1 + $0xc0] sm:$0xff] }
  0x1b   : > { %738 = vmatprep.subr.mxu0 %v2342_v2  ;;  %963 = vmatprep.subr.mxu1 %v2342_v2  ;;  %v638_v44 = vld [vmem:[%s3980_s1 + $0x1d0] sm:$0xff]  ;;  %v637_v46 = vld [vmem:[%s3980_s1 + $0x1c8] sm:$0xff]  ;;  %v636_v48 = vld [vmem:[%s3980_s1 + $0x1c0] sm:$0xff] }
  0x1c   : > { %739 = vmatpush1.msra.mxu0 %v588_v15  ;;  %964 = vmatpush1.msra.mxu1 %v620_v16  ;;  %v603_v49 = vld [vmem:[%s3980_s1 + $0xb8] sm:$0xff]  ;;  %v602_v51 = vld [vmem:[%s3980_s1 + $0xb0] sm:$0xff]  ;;  %v601_v53 = vld [vmem:[%s3980_s1 + $0xa8] sm:$0xff] }
  0x1d   : > { %740 = vmatprep.subr.mxu0 %v2342_v2  ;;  %965 = vmatprep.subr.mxu1 %v2342_v2  ;;  %v635_v50 = vld [vmem:[%s3980_s1 + $0x1b8] sm:$0xff]  ;;  %v634_v52 = vld [vmem:[%s3980_s1 + $0x1b0] sm:$0xff]  ;;  %v633_v54 = vld [vmem:[%s3980_s1 + $0x1a8] sm:$0xff] }
  0x1e   : > { %741 = vmatpush1.msra.mxu0 %v587_v17  ;;  %966 = vmatpush1.msra.mxu1 %v619_v18  ;;  %v600_v55 = vld [vmem:[%s3980_s1 + $0xa0] sm:$0xff]  ;;  %v2617_v58 = vld [vmem:[%s2605_s8 + $0x8] sm:$0xff]  ;;  %v599_v59 = vld [vmem:[%s3980_s1 + $0x98] sm:$0xff] }
  0x1f   : > { %742 = vmatprep.subr.mxu0 %v2342_v2  ;;  %967 = vmatprep.subr.mxu1 %v2342_v2  ;;  %v632_v56 = vld [vmem:[%s3980_s1 + $0x1a0] sm:$0xff]  ;;  %v631_v60 = vld [vmem:[%s3980_s1 + $0x198] sm:$0xff]  ;;  %v598_v61 = vld [vmem:[%s3980_s1 + $0x90] sm:$0xff]  ;;  %v322_v0 = vrot.slane %v2617_v58, 1  ;;  %v435_v6 = vrot.slane %v2617_v58, 2 }
  0x20   : > { %743 = vmatpush1.msra.mxu0 %v586_v19  ;;  %968 = vmatpush1.msra.mxu1 %v618_v20  ;;  %v218_v57 = vld [vmem:[%s2605_s8] sm:$0xff]  ;;  %v630_v62 = vld [vmem:[%s3980_s1 + $0x190] sm:$0xff]  ;;  %v597_v3 = vld [vmem:[%s3980_s1 + $0x88] sm:$0xff] }
  0x21   : > { %744 = vmatprep.subr.mxu0 %v2342_v2  ;;  %969 = vmatprep.subr.mxu1 %v2342_v2  ;;  %v321_v63 = vrot.slane %v218_v57, 1  ;;  %v220_v1 = vld [vmem:[%s2605_s8 + $0x10] sm:$0x3]  ;;  %v629_v4 = vld [vmem:[%s3980_s1 + $0x188] sm:$0xff]  ;;  %v434_v5 = vrot.slane %v218_v57, 2  ;;  %v596_v8 = vld [vmem:[%s3980_s1 + $0x80] sm:$0xff] }
  0x22   : > { %745 = vmatpush1.msra.mxu0 %v585_v21  ;;  %970 = vmatpush1.msra.mxu1 %v617_v22  ;;  %v324_v7 = vrot.slane %v220_v1, 1  ;;  %v2653_v10 = vld [vmem:[%s2605_s8 + $0x20] sm:$0xff]  ;;  %v221_v12 = vld [vmem:[%s2605_s8 + $0x18] sm:$0xff]  ;;  %v437_v14 = vrot.slane %v220_v1, 2  ;;  %v223_v19 = vld [vmem:[%s2605_s8 + $0x28] sm:$0x3] }
  0x23   : > { %746 = vmatprep.subr.mxu0 %v2342_v2  ;;  %971 = vmatprep.subr.mxu1 %v2342_v2  ;;  %v323_v9 = vsel %vm320_vm0, %v321_v63, %v322_v0  ;;  %v628_v11 = vld [vmem:[%s3980_s1 + $0x180] sm:$0xff]  ;;  %v436_v13 = vsel %vm433_vm1, %v434_v5, %v435_v6  ;;  %v326_v16 = vrot.slane %v221_v12, 1  ;;  %v327_v17 = vrot.slane %v2653_v10, 1  ;;  %v659_v18 = vld [vmem:[%s3980_s1 + $0x278] sm:$0xff] }
  0x24   : > { %747 = vmatpush1.msra.mxu0 %v584_v23  ;;  %972 = vmatpush1.msra.mxu1 %v616_v24  ;;  %v325_v15 = vsel %vm320_vm0, %v322_v0, %v324_v7  ;;  %v438_v20 = vsel %vm433_vm1, %v435_v6, %v437_v14  ;;  %v439_v21 = vrot.slane %v221_v12, 2  ;;  %v440_v22 = vrot.slane %v2653_v10, 2  ;;  %v658_v23 = vld [vmem:[%s3980_s1 + $0x270] sm:$0xff]  ;;  %v687_v63 = vld [vmem:[%s3980_s1 + $0x358] sm:$0xff]  ;;  %v652_v7 = vld [vmem:[%s3980_s1 + $0x240] sm:$0xff] }
  0x25   : > { %748 = vmatprep.subr.mxu0 %v2342_v2  ;;  %973 = vmatprep.subr.mxu1 %v2342_v2  ;;  %v2676_v24 = vsel %vm320_vm0, %v326_v16, %v327_v17  ;;  %v232_v6 = vld [vmem:[%s2605_s8 + $0x70] sm:$0x3]  ;;  %v651_v16 = vld [vmem:[%s3980_s1 + $0x238] sm:$0xff] }
  0x26   : > { %749 = vmatpush1.msra.mxu0 %v583_v25  ;;  %974 = vmatpush1.msra.mxu1 %v615_v26  ;;  %v329_v25 = vrot.slane %v223_v19, 1  ;;  %v2680_v26 = vld [vmem:[%s2605_s8 + $0x30] sm:$0xff]  ;;  %v344_v14 = vrot.slane %v232_v6, 1 }
  0x27   : > { %750 = vmatprep.subr.mxu0 %v2342_v2  ;;  %975 = vmatprep.subr.mxu1 %v2342_v2 }
  0x28   : > { %751 = vmatpush1.msra.mxu0 %v582_v27  ;;  %976 = vmatpush1.msra.mxu1 %v614_v28  ;;  %v2683_v27 = vld [vmem:[%s2605_s8 + $0x38] sm:$0xff]  ;;  %v657_v28 = vld [vmem:[%s3980_s1 + $0x268] sm:$0xff] }
  0x29   : > { %752 = vmatprep.subr.mxu0 %v2342_v2  ;;  %977 = vmatprep.subr.mxu1 %v2342_v2 }
  0x2a   : > { %753 = vmatpush1.msra.mxu0 %v581_v29  ;;  %978 = vmatpush1.msra.mxu1 %v613_v30  ;;  %v691_v29 = vld [vmem:[%s3980_s1 + $0x378] sm:$0xff]  ;;  %v2695_v30 = vsel %vm433_vm1, %v439_v21, %v440_v22 }
  0x2b   : > { %754 = vmatprep.subr.mxu0 %v2342_v2  ;;  %979 = vmatprep.subr.mxu1 %v2342_v2 }
  0x2c   : > { %755 = vmatpush1.msra.mxu0 %v580_v31  ;;  %980 = vmatpush1.msra.mxu1 %v612_v32  ;;  %v442_v31 = vrot.slane %v223_v19, 2  ;;  %v2700_v32 = vsel %vm320_vm0, %v327_v17, %v329_v25  ;;  %v685_v17 = vld [vmem:[%s3980_s1 + $0x348] sm:$0xff]  ;;  %v457_v19 = vrot.slane %v232_v6, 2  ;;  %v650_v25 = vld [vmem:[%s3980_s1 + $0x230] sm:$0xff] }
  0x2d   : > { %756 = vmatprep.subr.mxu0 %v2342_v2  ;;  %981 = vmatprep.subr.mxu1 %v2342_v2 }
  0x2e   : > { %757 = vmatpush2.msra.mxu0 %v611_v33  ;;  %982 = vmatpush2.msra.mxu1 %v643_v34  ;;  %v331_v33 = vrot.slane %v2680_v26, 1  ;;  %v332_v34 = vrot.slane %v2683_v27, 1 }
  0x2f   : > { %758 = vmatprep.subr.mxu0 %v2342_v2  ;;  %983 = vmatprep.subr.mxu1 %v2342_v2 }
  0x30   : > { %759 = vmatpush2.msra.mxu0 %v610_v35  ;;  %984 = vmatpush2.msra.mxu1 %v642_v36  ;;  %v226_v35 = vld [vmem:[%s2605_s8 + $0x40] sm:$0x3] }
  0x31   : > { %760 = vmatprep.subr.mxu0 %v2342_v2  ;;  %985 = vmatprep.subr.mxu1 %v2342_v2  ;;  %v656_v36 = vld [vmem:[%s3980_s1 + $0x260] sm:$0xff] }
  0x32   : > { %761 = vmatpush2.msra.mxu0 %v609_v37  ;;  %986 = vmatpush2.msra.mxu1 %v641_v38  ;;  %v690_v37 = vld [vmem:[%s3980_s1 + $0x370] sm:$0xff]  ;;  %v2715_v38 = vsel %vm433_vm1, %v440_v22, %v442_v31 }
  0x33   : > { %762 = vmatprep.subr.mxu0 %v2342_v2  ;;  %987 = vmatprep.subr.mxu1 %v2342_v2 }
  0x34   : > { %763 = vmatpush2.msra.mxu0 %v608_v39  ;;  %988 = vmatpush2.msra.mxu1 %v640_v40  ;;  %v444_v39 = vrot.slane %v2680_v26, 2  ;;  %v445_v40 = vrot.slane %v2683_v27, 2 }
  0x35   : > { %764 = vmatprep.subr.mxu0 %v2342_v2  ;;  %989 = vmatprep.subr.mxu1 %v2342_v2 }
  0x36   : > { %765 = vmatpush2.msra.mxu0 %v607_v41  ;;  %990 = vmatpush2.msra.mxu1 %v639_v42  ;;  %v2721_v41 = vsel %vm320_vm0, %v331_v33, %v332_v34  ;;  %v2724_v42 = vld [vmem:[%s2605_s8 + $0x48] sm:$0xff] }
  0x37   : > { %766 = vmatprep.subr.mxu0 %v2342_v2  ;;  %991 = vmatprep.subr.mxu1 %v2342_v2 }
  0x38   : > { %767 = vmatpush2.msra.mxu0 %v606_v43  ;;  %992 = vmatpush2.msra.mxu1 %v638_v44  ;;  %v334_v43 = vrot.slane %v226_v35, 1  ;;  %v2728_v44 = vld [vmem:[%s2605_s8 + $0x50] sm:$0xff] }
  0x39   : > { %768 = vmatprep.subr.mxu0 %v2342_v2  ;;  %993 = vmatprep.subr.mxu1 %v2342_v2 }
  0x3a   : > { %769 = vmatpush2.msra.mxu0 %v605_v45  ;;  %994 = vmatpush2.msra.mxu1 %v637_v46  ;;  %v655_v45 = vld [vmem:[%s3980_s1 + $0x258] sm:$0xff]  ;;  %v689_v46 = vld [vmem:[%s3980_s1 + $0x368] sm:$0xff] }
  0x3b   : > { %770 = vmatprep.subr.mxu0 %v2342_v2  ;;  %995 = vmatprep.subr.mxu1 %v2342_v2 }
  0x3c   : > { %771 = vmatpush2.msra.mxu0 %v604_v47  ;;  %996 = vmatpush2.msra.mxu1 %v636_v48  ;;  %v2741_v47 = vsel %vm433_vm1, %v444_v39, %v445_v40  ;;  %v447_v48 = vrot.slane %v226_v35, 2  ;;  %v2865_v35 = vld [vmem:[%s2605_s8 + $0x90] sm:$0xff]  ;;  %v649_v39 = vld [vmem:[%s3980_s1 + $0x228] sm:$0xff] }
  0x3d   : > { %772 = vmatprep.subr.mxu0 %v2342_v2  ;;  %997 = vmatprep.subr.mxu1 %v2342_v2 }
  0x3e   : > { %773 = vmatpush2.msra.mxu0 %v603_v49  ;;  %998 = vmatpush2.msra.mxu1 %v635_v50  ;;  %v2745_v49 = vsel %vm320_vm0, %v332_v34, %v334_v43  ;;  %v336_v50 = vrot.slane %v2724_v42, 1 }
  0x3f   : > { %774 = vmatprep.subr.mxu0 %v2342_v2  ;;  %999 = vmatprep.subr.mxu1 %v2342_v2 }
  0x40   : > { %775 = vmatpush2.msra.mxu0 %v602_v51  ;;  %1000 = vmatpush2.msra.mxu1 %v634_v52  ;;  %v337_v51 = vrot.slane %v2728_v44, 1  ;;  %v229_v52 = vld [vmem:[%s2605_s8 + $0x58] sm:$0x3] }
  0x41   : > { %776 = vmatprep.subr.mxu0 %v2342_v2  ;;  %1001 = vmatprep.subr.mxu1 %v2342_v2  ;;  %v452_v1 = vrot.slane %v229_v52, 2 }
  0x42   : > { %777 = vmatpush2.msra.mxu0 %v601_v53  ;;  %1002 = vmatpush2.msra.mxu1 %v633_v54  ;;  %v654_v53 = vld [vmem:[%s3980_s1 + $0x250] sm:$0xff]  ;;  %v688_v54 = vld [vmem:[%s3980_s1 + $0x360] sm:$0xff] }
  0x43   : > { %778 = vmatprep.subr.mxu0 %v2342_v2  ;;  %1003 = vmatprep.subr.mxu1 %v2342_v2 }
  0x44   : > { %779 = vmatpush2.msra.mxu0 %v600_v55  ;;  %1004 = vmatpush2.msra.mxu1 %v632_v56  ;;  %v2762_v55 = vsel %vm433_vm1, %v445_v40, %v447_v48  ;;  %v449_v56 = vrot.slane %v2724_v42, 2  ;;  %v683_v40 = vld [vmem:[%s3980_s1 + $0x338] sm:$0xff]  ;;  %v351_v48 = vrot.slane %v2865_v35, 1 }
  0x45   : > { %780 = vmatprep.subr.mxu0 %v2342_v2  ;;  %1005 = vmatprep.subr.mxu1 %v2342_v2 }
  0x46   : > { %781 = vmatpush2.msra.mxu0 %v599_v59  ;;  %1006 = vmatpush2.msra.mxu1 %v631_v60  ;;  %v2771_v59 = vld [vmem:[%s2605_s8 + $0x60] sm:$0xff]  ;;  %v339_v60 = vrot.slane %v229_v52, 1 }
  0x47   : > { %782 = vmatprep.subr.mxu0 %v2342_v2  ;;  %1007 = vmatprep.subr.mxu1 %v2342_v2  ;;  %v648_v52 = vld [vmem:[%s3980_s1 + $0x220] sm:$0xff] }
  0x48   : > { %783 = vmatpush2.msra.mxu0 %v598_v61  ;;  %1008 = vmatpush2.msra.mxu1 %v630_v62  ;;  %v2775_v61 = vld [vmem:[%s2605_s8 + $0x68] sm:$0xff] }
  0x49   : > { %784 = vmatprep.subr.mxu0 %v2342_v2  ;;  %1009 = vmatprep.subr.mxu1 %v2342_v2  ;;  %v653_v62 = vld [vmem:[%s3980_s1 + $0x248] sm:$0xff]  ;;  %v342_v5 = vrot.slane %v2775_v61, 1 }
  0x4a   : > { %785 = vmatpush2.msra.mxu0 %v597_v3  ;;  %1010 = vmatpush2.msra.mxu1 %v629_v4  ;;  %v2792_v3 = vsel %vm320_vm0, %v337_v51, %v339_v60  ;;  %v341_v4 = vrot.slane %v2771_v59, 1 }
  0x4b   : > { %786 = vmatprep.subr.mxu0 %v2342_v2  ;;  %1011 = vmatprep.subr.mxu1 %v2342_v2 }
  0x4c   : > { %787 = vmatpush2.msra.mxu0 %v596_v8  ;;  %788 = vmatprep.mubr.f32.mxu0 %v323_v9  ;;  %v686_v8 = vld [vmem:[%s3980_s1 + $0x350] sm:$0xff] }
  0x4d   : > { %1012 = vmatpush2.msra.mxu1 %v628_v11  ;;  %1013 = vmatprep.mubr.f32.mxu1 %v221_v12  ;;  %v455_v11 = vrot.slane %v2775_v61, 2 }
  0x4e   : > { %789 = vmatmul.mubr.f32.vlgmr.msra.gmra.mxu0 %v218_v57  ;;  %1014 = vmatmul.mubr.f32.vlgmr.msra.gmra.mxu1 %v436_v13  ;;  %v450_v57 = vrot.slane %v2728_v44, 2  ;;  %v2818_v13 = vld [vmem:[%s2605_s8 + $0x78] sm:$0xff] }
  0x4f   : > { %1174 = vmatprep.subr.mxu0 %v2342_v2  ;;  %793 = vmatprep.mubr.f32.mxu0 %v325_v15  ;;  %v2822_v15 = vld [vmem:[%s2605_s8 + $0x80] sm:$0xff]  ;;  %v346_v21 = vrot.slane %v2818_v13, 1  ;;  %v459_v31 = vrot.slane %v2818_v13, 2 }
  0x50   : > { %1175 = vmatpush1.msra.mxu0 %v659_v18  ;;  %1018 = vmatprep.mubr.f32.mxu1 %v2653_v10  ;;  %v2788_v0 = vsel %vm433_vm1, %v449_v56, %v450_v57  ;;  %v2809_v9 = vsel %vm433_vm1, %v450_v57, %v452_v1  ;;  %v347_v22 = vrot.slane %v2822_v15, 1  ;;  %v460_v33 = vrot.slane %v2822_v15, 2  ;;  %v2916_v1 = vld [vmem:[%s2605_s8 + $0xb0] sm:$0xff] }
  0x51   : > { %1176 = vmatprep.subr.mxu0 %v2342_v2  ;;  %1399 = vmatprep.subr.mxu1 %v2342_v2  ;;  %v464_v56 = vrot.slane %v2865_v35, 2 }
  0x52   : > { %794 = vmatmul.mubr.f32.gmra.mxu0 %v2617_v58  ;;  %1019 = vmatmul.mubr.f32.gmra.mxu1 %v438_v20  ;;  %v2768_v58 = vsel %vm320_vm0, %v336_v50, %v337_v51  ;;  %v2839_v20 = vsel %vm320_vm0, %v342_v5, %v344_v14  ;;  %v2862_v34 = vsel %vm320_vm0, %v346_v21, %v347_v22  ;;  %v238_v51 = vld [vmem:[%s2605_s8 + $0xa0] sm:$0x3]  ;;  %v241_v14 = vld [vmem:[%s2605_s8 + $0xb8] sm:$0x3] }
  0x53   : > { %1177 = vmatpush1.msra.mxu0 %v658_v23  ;;  %798 = vmatprep.mubr.f32.mxu0 %v2676_v24  ;;  %v235_v23 = vld [vmem:[%s2605_s8 + $0x88] sm:$0x3]  ;;  %v2882_v43 = vsel %vm433_vm1, %v459_v31, %v460_v33 }
  0x54   : > { %1023 = vmatprep.mubr.f32.mxu1 %v2680_v26  ;;  %1178 = vmatprep.subr.mxu0 %v2342_v2  ;;  %v2963_v31 = vld [vmem:[%s2605_s8 + $0xc8] sm:$0xff] }
  0x55   : > { %1179 = vmatpush1.msra.mxu0 %v657_v28  ;;  %1400 = vmatpush1.msra.mxu1 %v691_v29  ;;  %v684_v28 = vld [vmem:[%s3980_s1 + $0x340] sm:$0xff]  ;;  %v2856_v29 = vsel %vm433_vm1, %v455_v11, %v457_v19 }
  0x56   : > { %799 = vmatmul.mubr.f32.gmra.mxu0 %v221_v12  ;;  %1024 = vmatmul.mubr.f32.gmra.mxu1 %v2695_v30  ;;  %v2815_v12 = vsel %vm320_vm0, %v341_v4, %v342_v5  ;;  %v647_v4 = vld [vmem:[%s3980_s1 + $0x218] sm:$0xff]  ;;  %v681_v5 = vld [vmem:[%s3980_s1 + $0x328] sm:$0xff] }
  0x57   : > { %803 = vmatprep.mubr.f32.mxu0 %v2700_v32  ;;  %1028 = vmatprep.mubr.f32.mxu1 %v2683_v27 }
  0x58   : > { %1180 = vmatprep.subr.mxu0 %v2342_v2  ;;  %1401 = vmatprep.subr.mxu1 %v2342_v2 }
  0x59   : > { %1181 = vmatpush1.msra.mxu0 %v656_v36  ;;  %1402 = vmatpush1.msra.mxu1 %v690_v37  ;;  %v349_v36 = vrot.slane %v235_v23, 1  ;;  %v2869_v37 = vld [vmem:[%s2605_s8 + $0x98] sm:$0xff] }
  0x5a   : > { %804 = vmatmul.mubr.f32.gmra.mxu0 %v2653_v10  ;;  %1029 = vmatmul.mubr.f32.gmra.mxu1 %v2715_v38  ;;  %v454_v10 = vrot.slane %v2771_v59, 2  ;;  %v352_v50 = vrot.slane %v2869_v37, 1  ;;  %v465_v57 = vrot.slane %v2869_v37, 2 }
  0x5b   : > { %808 = vmatprep.mubr.f32.mxu0 %v2721_v41  ;;  %1033 = vmatprep.mubr.f32.mxu1 %v2724_v42 }
  0x5c   : > { %1182 = vmatprep.subr.mxu0 %v2342_v2  ;;  %1403 = vmatprep.subr.mxu1 %v2342_v2  ;;  %v2835_v18 = vsel %vm433_vm1, %v454_v10, %v455_v11  ;;  %v2909_v60 = vsel %vm320_vm0, %v351_v48, %v352_v50  ;;  %v2929_v6 = vsel %vm433_vm1, %v464_v56, %v465_v57  ;;  %v357_v11 = vrot.slane %v2916_v1, 1 }
  0x5d   : > { %1183 = vmatpush1.msra.mxu0 %v655_v45  ;;  %1404 = vmatpush1.msra.mxu1 %v689_v46  ;;  %v462_v45 = vrot.slane %v235_v23, 2  ;;  %v2886_v46 = vsel %vm320_vm0, %v347_v22, %v349_v36  ;;  %v470_v22 = vrot.slane %v2916_v1, 2  ;;  %v679_v36 = vld [vmem:[%s3980_s1 + $0x318] sm:$0xff] }
  0x5e   : > { %809 = vmatmul.mubr.f32.gmra.mxu0 %v2680_v26  ;;  %1034 = vmatmul.mubr.f32.gmra.mxu1 %v2741_v47 }
  0x5f   : > { %813 = vmatprep.mubr.f32.mxu0 %v2745_v49  ;;  %1038 = vmatprep.mubr.f32.mxu1 %v2728_v44 }
  0x60   : > { %1184 = vmatprep.subr.mxu0 %v2342_v2  ;;  %1405 = vmatprep.subr.mxu1 %v2342_v2 }
  0x61   : > { %1185 = vmatpush1.msra.mxu0 %v654_v53  ;;  %1406 = vmatpush1.msra.mxu1 %v688_v54  ;;  %v682_v53 = vld [vmem:[%s3980_s1 + $0x330] sm:$0xff]  ;;  %v2903_v54 = vsel %vm433_vm1, %v460_v33, %v462_v45  ;;  %v645_v33 = vld [vmem:[%s3980_s1 + $0x208] sm:$0xff] }
  0x62   : > { %814 = vmatmul.mubr.f32.gmra.mxu0 %v2683_v27  ;;  %1039 = vmatmul.mubr.f32.gmra.mxu1 %v2762_v55 }
  0x63   : > { %818 = vmatprep.mubr.f32.mxu0 %v2768_v58  ;;  %1043 = vmatprep.mubr.f32.mxu1 %v2771_v59 }
  0x64   : > { %1186 = vmatprep.subr.mxu0 %v2342_v2  ;;  %1407 = vmatprep.subr.mxu1 %v2342_v2 }
  0x65   : > { %1187 = vmatpush1.msra.mxu0 %v653_v62  ;;  %1408 = vmatpush1.msra.mxu1 %v687_v63  ;;  %v2912_v62 = vld [vmem:[%s2605_s8 + $0xa8] sm:$0xff]  ;;  %v354_v63 = vrot.slane %v238_v51, 1 }
  0x66   : > { %819 = vmatmul.mubr.f32.gmra.mxu0 %v2724_v42  ;;  %1044 = vmatmul.mubr.f32.gmra.mxu1 %v2788_v0  ;;  %v356_v10 = vrot.slane %v2912_v62, 1  ;;  %v469_v21 = vrot.slane %v2912_v62, 2 }
  0x67   : > { %823 = vmatprep.mubr.f32.mxu0 %v2792_v3  ;;  %1048 = vmatprep.mubr.f32.mxu1 %v2775_v61 }
  0x68   : > { %1188 = vmatprep.subr.mxu0 %v2342_v2  ;;  %1409 = vmatprep.subr.mxu1 %v2342_v2  ;;  %v2956_v23 = vsel %vm320_vm0, %v356_v10, %v357_v11  ;;  %v3010_v10 = vld [vmem:[%s2605_s8 + $0xe0] sm:$0xff] }
  0x69   : > { %1189 = vmatpush1.msra.mxu0 %v652_v7  ;;  %1410 = vmatpush1.msra.mxu1 %v686_v8  ;;  %v467_v7 = vrot.slane %v238_v51, 2  ;;  %v2933_v8 = vsel %vm320_vm0, %v352_v50, %v354_v63  ;;  %v362_v50 = vrot.slane %v2963_v31, 1  ;;  %v244_v51 = vld [vmem:[%s2605_s8 + $0xd0] sm:$0x3]  ;;  %v475_v63 = vrot.slane %v2963_v31, 2  ;;  %4043 = vst [vmem:[#allocation3_spill] sm:$0xff] %v3010_v10 }
  0x6a   : > { %824 = vmatmul.mubr.f32.gmra.mxu0 %v2728_v44  ;;  %1049 = vmatmul.mubr.f32.gmra.mxu1 %v2809_v9 }
  0x6b   : > { %828 = vmatprep.mubr.f32.mxu0 %v2815_v12  ;;  %1053 = vmatprep.mubr.f32.mxu1 %v2818_v13  ;;  %v2950_v19 = vsel %vm433_vm1, %v465_v57, %v467_v7  ;;  %v364_v7 = vrot.slane %v244_v51, 1 }
  0x6c   : > { %1190 = vmatprep.subr.mxu0 %v2342_v2  ;;  %1411 = vmatprep.subr.mxu1 %v2342_v2 }
  0x6d   : > { %1191 = vmatpush1.msra.mxu0 %v651_v16  ;;  %1412 = vmatpush1.msra.mxu1 %v685_v17  ;;  %v646_v16 = vld [vmem:[%s3980_s1 + $0x210] sm:$0xff]  ;;  %v680_v17 = vld [vmem:[%s3980_s1 + $0x320] sm:$0xff] }
  0x6e   : > { %829 = vmatmul.mubr.f32.gmra.mxu0 %v2771_v59  ;;  %1054 = vmatmul.mubr.f32.gmra.mxu1 %v2835_v18 }
  0x6f   : > { %833 = vmatprep.mubr.f32.mxu0 %v2839_v20  ;;  %1058 = vmatprep.mubr.f32.mxu1 %v2822_v15 }
  0x70   : > { %1192 = vmatprep.subr.mxu0 %v2342_v2  ;;  %1413 = vmatprep.subr.mxu1 %v2342_v2 }
  0x71   : > { %1193 = vmatpush1.msra.mxu0 %v650_v25  ;;  %1414 = vmatpush1.msra.mxu1 %v684_v28  ;;  %v2959_v25 = vld [vmem:[%s2605_s8 + $0xc0] sm:$0xff]  ;;  %v359_v28 = vrot.slane %v241_v14, 1 }
  0x72   : > { %834 = vmatmul.mubr.f32.gmra.mxu0 %v2775_v61  ;;  %1059 = vmatmul.mubr.f32.gmra.mxu1 %v2856_v29  ;;  %v361_v48 = vrot.slane %v2959_v25, 1  ;;  %v474_v57 = vrot.slane %v2959_v25, 2 }
  0x73   : > { %838 = vmatprep.mubr.f32.mxu0 %v2862_v34  ;;  %1063 = vmatprep.mubr.f32.mxu1 %v2865_v35  ;;  %v2980_v45 = vsel %vm320_vm0, %v357_v11, %v359_v28  ;;  %v675_v11 = vld [vmem:[%s3980_s1 + $0x2f8] sm:$0xff]  ;;  %v367_v28 = vrot.slane %v3010_v10, 1 }
  0x74   : > { %1194 = vmatprep.subr.mxu0 %v2342_v2  ;;  %1415 = vmatprep.subr.mxu1 %v2342_v2 }
  0x75   : > { %1195 = vmatpush1.msra.mxu0 %v649_v39  ;;  %1416 = vmatpush1.msra.mxu1 %v683_v40  ;;  %v2976_v39 = vsel %vm433_vm1, %v469_v21, %v470_v22  ;;  %v472_v40 = vrot.slane %v241_v14, 2  ;;  %v677_v14 = vld [vmem:[%s3980_s1 + $0x308] sm:$0xff]  ;;  %v3027_v21 = vsel %vm320_vm0, %v362_v50, %v364_v7  ;;  %v3057_v7 = vld [vmem:[%s2605_s8 + $0xf8] sm:$0xff] }
  0x76   : > { %839 = vmatmul.mubr.f32.gmra.mxu0 %v2818_v13  ;;  %1064 = vmatmul.mubr.f32.gmra.mxu1 %v2882_v43  ;;  %4046 = vst [vmem:[#allocation6_spill] sm:$0xff] %v3057_v7 }
  0x77   : > { %843 = vmatprep.mubr.f32.mxu0 %v2886_v46  ;;  %1068 = vmatprep.mubr.f32.mxu1 %v2869_v37  ;;  %v2997_v56 = vsel %vm433_vm1, %v470_v22, %v472_v40  ;;  %v676_v40 = vld [vmem:[%s3980_s1 + $0x300] sm:$0xff] }
  0x78   : > { %1196 = vmatprep.subr.mxu0 %v2342_v2  ;;  %1417 = vmatprep.subr.mxu1 %v2342_v2 }
  0x79   : > { %1197 = vmatpush1.msra.mxu0 %v648_v52  ;;  %1418 = vmatpush1.msra.mxu1 %v682_v53  ;;  %v644_v52 = vld [vmem:[%s3980_s1 + $0x200] sm:$0xff]  ;;  %v678_v53 = vld [vmem:[%s3980_s1 + $0x310] sm:$0xff] }
  0x7a   : > { %844 = vmatmul.mubr.f32.gmra.mxu0 %v2822_v15  ;;  %1069 = vmatmul.mubr.f32.gmra.mxu1 %v2903_v54 }
  0x7b   : > { %848 = vmatprep.mubr.f32.mxu0 %v2909_v60  ;;  %1073 = vmatprep.mubr.f32.mxu1 %v2912_v62 }
  0x7c   : > { %1198 = vmatprep.subr.mxu0 %v2342_v2  ;;  %1419 = vmatprep.subr.mxu1 %v2342_v2 }
  0x7d   : > { %1199 = vmatpush1.msra.mxu0 %v647_v4  ;;  %1420 = vmatpush1.msra.mxu1 %v681_v5  ;;  %v3003_v4 = vsel %vm320_vm0, %v361_v48, %v362_v50  ;;  %v3006_v5 = vld [vmem:[%s2605_s8 + $0xd8] sm:$0xff] }
  0x7e   : > { %849 = vmatmul.mubr.f32.gmra.mxu0 %v2865_v35  ;;  %1074 = vmatmul.mubr.f32.gmra.mxu1 %v2929_v6  ;;  %4042 = vst [vmem:[#allocation2_spill] sm:$0xff] %v3006_v5  ;;  %v366_v22 = vrot.slane %v3006_v5, 1  ;;  %v479_v50 = vrot.slane %v3006_v5, 2 }
  0x7f   : > { %853 = vmatprep.mubr.f32.mxu0 %v2933_v8  ;;  %1078 = vmatprep.mubr.f32.mxu1 %v2916_v1 }
  0x80   : > { %1200 = vmatprep.subr.mxu0 %v2342_v2  ;;  %1421 = vmatprep.subr.mxu1 %v2342_v2 }
  0x81   : > { %1201 = vmatpush1.msra.mxu0 %v646_v16  ;;  %1422 = vmatpush1.msra.mxu1 %v680_v17  ;;  %v3023_v16 = vsel %vm433_vm1, %v474_v57, %v475_v63  ;;  %v477_v17 = vrot.slane %v244_v51, 2  ;;  %v480_v51 = vrot.slane %v3010_v10, 2 }
  0x82   : > { %854 = vmatmul.mubr.f32.gmra.mxu0 %v2869_v37  ;;  %1079 = vmatmul.mubr.f32.gmra.mxu1 %v2950_v19 }
  0x83   : > { %858 = vmatprep.mubr.f32.mxu0 %v2956_v23  ;;  %1083 = vmatprep.mubr.f32.mxu1 %v2959_v25  ;;  %v3044_v48 = vsel %vm433_vm1, %v475_v63, %v477_v17  ;;  %v673_v63 = vld [vmem:[%s3980_s1 + $0x2e8] sm:$0xff] }
  0x84   : > { %1202 = vmatprep.subr.mxu0 %v2342_v2  ;;  %1423 = vmatprep.subr.mxu1 %v2342_v2  ;;  %4044 = vst [vmem:[#allocation4_spill] sm:$0xff] %v3044_v48 }
  0x85   : > { %1203 = vmatpush1.msra.mxu0 %v645_v33  ;;  %1424 = vmatpush1.msra.mxu1 %v679_v36  ;;  %v247_v33 = vld [vmem:[%s2605_s8 + $0xe8] sm:$0x3]  ;;  %v674_v36 = vld [vmem:[%s3980_s1 + $0x2f0] sm:$0xff] }
  0x86   : > { %859 = vmatmul.mubr.f32.gmra.mxu0 %v2912_v62  ;;  %1084 = vmatmul.mubr.f32.gmra.mxu1 %v2976_v39  ;;  %v369_v57 = vrot.slane %v247_v33, 1  ;;  %v482_v17 = vrot.slane %v247_v33, 2  ;;  %v706_v33 = vld [vmem:[%s3980_s1 + $0x3f0] sm:$0xff] }
  0x87   : > { %863 = vmatprep.mubr.f32.mxu0 %v2980_v45  ;;  %1088 = vmatprep.mubr.f32.mxu1 %v2963_v31 }
  0x88   : > { %1204 = vmatprep.subr.mxu0 %v2342_v2  ;;  %1425 = vmatprep.subr.mxu1 %v2342_v2 }
  0x89   : > { %1205 = vmatpush1.msra.mxu0 %v644_v52  ;;  %1426 = vmatpush1.msra.mxu1 %v678_v53  ;;  %v3050_v52 = vsel %vm320_vm0, %v366_v22, %v367_v28  ;;  %v3053_v53 = vld [vmem:[%s2605_s8 + $0xf0] sm:$0xff]  ;;  %v3074_v22 = vsel %vm320_vm0, %v367_v28, %v369_v57  ;;  %v672_v28 = vld [vmem:[%s3980_s1 + $0x2e0] sm:$0xff] }
  0x8a   : > { %864 = vmatmul.mubr.f32.gmra.mxu0 %v2916_v1  ;;  %1089 = vmatmul.mubr.f32.gmra.mxu1 %v2997_v56  ;;  %4045 = vst [vmem:[#allocation5_spill] sm:$0xff] %v3053_v53  ;;  %4048 = vst [vmem:[#allocation8_spill] sm:$0xff] %v3074_v22  ;;  %v484_v57 = vrot.slane %v3053_v53, 2 }
  0x8b   : > { %868 = vmatprep.mubr.f32.mxu0 %v3003_v4  ;;  %1093 = vmatprep.mubr.f32.mxu1 %v3006_v5 }
  0x8c   : > { %1206 = vmatprep.subr.mxu0 %v2342_v2  ;;  %1427 = vmatprep.subr.mxu1 %v2342_v2 }
  0x8d   : > { %1207 = vmatpush2.msra.mxu0 %v675_v11  ;;  %1428 = vmatpush1.msra.mxu1 %v677_v14  ;;  %v707_v11 = vld [vmem:[%s3980_s1 + $0x3f8] sm:$0xff]  ;;  %v3070_v14 = vsel %vm433_vm1, %v479_v50, %v480_v51  ;;  %v3091_v50 = vsel %vm433_vm1, %v480_v51, %v482_v17  ;;  %v705_v17 = vld [vmem:[%s3980_s1 + $0x3e8] sm:$0xff] }
  0x8e   : > { %869 = vmatmul.mubr.f32.gmra.mxu0 %v2959_v25  ;;  %1094 = vmatmul.mubr.f32.gmra.mxu1 %v3023_v16  ;;  %4047 = vst [vmem:[#allocation7_spill] sm:$0xff] %v3070_v14  ;;  %4049 = vst [vmem:[#allocation9_spill] sm:$0xff] %v3091_v50  ;;  %v671_v51 = vld [vmem:[%s3980_s1 + $0x2d8] sm:$0xff] }
  0x8f   : > { %873 = vmatprep.mubr.f32.mxu0 %v3027_v21  ;;  %1098 = vmatprep.mubr.f32.mxu1 %v3010_v10 }
  0x90   : > { %1208 = vmatprep.subr.mxu0 %v2342_v2  ;;  %1429 = vmatprep.subr.mxu1 %v2342_v2 }
  0x91   : > { %1209 = vmatpush2.msra.mxu0 %v674_v36  ;;  %1430 = vmatpush1.msra.mxu1 %v676_v40  ;;  %v371_v36 = vrot.slane %v3053_v53, 1  ;;  %v372_v40 = vrot.slane %v3057_v7, 1 }
  0x92   : > { %874 = vmatmul.mubr.f32.gmra.mxu0 %v2963_v31  ;;  %1099 = vmatmul.mubr.f32.gmra.mxu1 %v3044_v48  ;;  %v250_v48 = vld [vmem:[%s2605_s8 + $0x100] sm:$0x3] }
  0x93   : > { %878 = vmatprep.mubr.f32.mxu0 %v3050_v52  ;;  %1103 = vmatprep.mubr.f32.mxu1 %v3053_v53 }
  0x94   : > { %1210 = vmatprep.subr.mxu0 %v2342_v2  ;;  %1431 = vmatprep.subr.mxu1 %v2342_v2 }
  0x95   : > { %1211 = vmatpush2.msra.mxu0 %v673_v63  ;;  %1432 = vmatpush2.msra.mxu1 %v707_v11  ;;  %v485_v63 = vrot.slane %v3057_v7, 2  ;;  %v3097_v11 = vsel %vm320_vm0, %v371_v36, %v372_v40 }
  0x96   : > { %879 = vmatmul.mubr.f32.gmra.mxu0 %v3006_v5  ;;  %1104 = vmatmul.mubr.f32.gmra.mxu1 %v3070_v14  ;;  %4050 = vst [vmem:[#allocation10_spill] sm:$0xff] %v3097_v11  ;;  %v3100_v14 = vld [vmem:[%s2605_s8 + $0x108] sm:$0xff]  ;;  %v374_v5 = vrot.slane %v250_v48, 1 }
  0x97   : > { %883 = vmatprep.mubr.f32.mxu0 %v3074_v22  ;;  %1108 = vmatprep.mubr.f32.mxu1 %v3057_v7  ;;  %4051 = vst [vmem:[#allocation11_spill] sm:$0xff] %v3100_v14  ;;  %v3104_v22 = vld [vmem:[%s2605_s8 + $0x110] sm:$0xff]  ;;  %v3117_v36 = vsel %vm433_vm1, %v484_v57, %v485_v63  ;;  %v489_v57 = vrot.slane %v3100_v14, 2 }
  0x98   : > { %1212 = vmatprep.subr.mxu0 %v2342_v2  ;;  %1433 = vmatprep.subr.mxu1 %v2342_v2  ;;  %4052 = vst [vmem:[#allocation12_spill] sm:$0xff] %v3104_v22  ;;  %4053 = vst [vmem:[#allocation13_spill] sm:$0xff] %v3117_v36 }
  0x99   : > { %1213 = vmatpush2.msra.mxu0 %v672_v28  ;;  %1434 = vmatpush2.msra.mxu1 %v706_v33  ;;  %v487_v28 = vrot.slane %v250_v48, 2  ;;  %v3121_v33 = vsel %vm320_vm0, %v372_v40, %v374_v5  ;;  %v670_v5 = vld [vmem:[%s3980_s1 + $0x2d0] sm:$0xff]  ;;  %v704_v48 = vld [vmem:[%s3980_s1 + $0x3e0] sm:$0xff] }
  0x9a   : > { %884 = vmatmul.mubr.f32.gmra.mxu0 %v3010_v10  ;;  %1109 = vmatmul.mubr.f32.gmra.mxu1 %v3091_v50  ;;  %4054 = vst [vmem:[#allocation14_spill] sm:$0xff] %v3121_v33  ;;  %v376_v50 = vrot.slane %v3100_v14, 1  ;;  %v377_v10 = vrot.slane %v3104_v22, 1 }
  0x9b   : > { %888 = vmatprep.mubr.f32.mxu0 %v3097_v11  ;;  %1113 = vmatprep.mubr.f32.mxu1 %v3100_v14  ;;  %v253_v11 = vld [vmem:[%s2605_s8 + $0x118] sm:$0x3]  ;;  %v3138_v40 = vsel %vm433_vm1, %v485_v63, %v487_v28  ;;  %v669_v63 = vld [vmem:[%s3980_s1 + $0x2c8] sm:$0xff] }
  0x9c   : > { %1214 = vmatprep.subr.mxu0 %v2342_v2  ;;  %1435 = vmatprep.subr.mxu1 %v2342_v2  ;;  %4055 = vst [vmem:[#allocation15_spill] sm:$0xff] %v3138_v40 }
  0x9d   : > { %1215 = vmatpush2.msra.mxu0 %v671_v51  ;;  %1436 = vmatpush2.msra.mxu1 %v705_v17  ;;  %v490_v51 = vrot.slane %v3104_v22, 2  ;;  %v3144_v17 = vsel %vm320_vm0, %v376_v50, %v377_v10  ;;  %v703_v50 = vld [vmem:[%s3980_s1 + $0x3d8] sm:$0xff] }
  0x9e   : > { %889 = vmatmul.mubr.f32.gmra.mxu0 %v3053_v53  ;;  %1114 = vmatmul.mubr.f32.gmra.mxu1 %v3117_v36  ;;  %4056 = vst [vmem:[#allocation16_spill] sm:$0xff] %v3144_v17  ;;  %v3147_v36 = vld [vmem:[%s2605_s8 + $0x120] sm:$0xff]  ;;  %v379_v53 = vrot.slane %v253_v11, 1 }
  0x9f   : > { %893 = vmatprep.mubr.f32.mxu0 %v3121_v33  ;;  %1118 = vmatprep.mubr.f32.mxu1 %v3104_v22  ;;  %4057 = vst [vmem:[#allocation17_spill] sm:$0xff] %v3147_v36  ;;  %v3151_v33 = vld [vmem:[%s2605_s8 + $0x128] sm:$0xff]  ;;  %v3164_v28 = vsel %vm433_vm1, %v489_v57, %v490_v51  ;;  %v494_v57 = vrot.slane %v3147_v36, 2 }
  0xa0   : > { %1216 = vmatprep.subr.mxu0 %v2342_v2  ;;  %1437 = vmatprep.subr.mxu1 %v2342_v2  ;;  %4058 = vst [vmem:[#allocation18_spill] sm:$0xff] %v3151_v33  ;;  %4059 = vst [vmem:[#allocation19_spill] sm:$0xff] %v3164_v28 }
  0xa1   : > { %1217 = vmatpush2.msra.mxu0 %v670_v5  ;;  %1438 = vmatpush2.msra.mxu1 %v704_v48  ;;  %v492_v5 = vrot.slane %v253_v11, 2  ;;  %v3168_v48 = vsel %vm320_vm0, %v377_v10, %v379_v53  ;;  %v668_v10 = vld [vmem:[%s3980_s1 + $0x2c0] sm:$0xff]  ;;  %v702_v53 = vld [vmem:[%s3980_s1 + $0x3d0] sm:$0xff] }
  0xa2   : > { %894 = vmatmul.mubr.f32.gmra.mxu0 %v3057_v7  ;;  %1119 = vmatmul.mubr.f32.gmra.mxu1 %v3138_v40  ;;  %4060 = vst [vmem:[#allocation20_spill] sm:$0xff] %v3168_v48  ;;  %v381_v40 = vrot.slane %v3147_v36, 1  ;;  %v382_v7 = vrot.slane %v3151_v33, 1 }
  0xa3   : > { %898 = vmatprep.mubr.f32.mxu0 %v3144_v17  ;;  %1123 = vmatprep.mubr.f32.mxu1 %v3147_v36  ;;  %v256_v17 = vld [vmem:[%s2605_s8 + $0x130] sm:$0x3]  ;;  %v3185_v11 = vsel %vm433_vm1, %v490_v51, %v492_v5  ;;  %v667_v51 = vld [vmem:[%s3980_s1 + $0x2b8] sm:$0xff] }
  0xa4   : > { %1218 = vmatprep.subr.mxu0 %v2342_v2  ;;  %1439 = vmatprep.subr.mxu1 %v2342_v2  ;;  %4061 = vst [vmem:[#allocation21_spill] sm:$0xff] %v3185_v11 }
  0xa5   : > { %1219 = vmatpush2.msra.mxu0 %v669_v63  ;;  %1440 = vmatpush2.msra.mxu1 %v703_v50  ;;  %v495_v63 = vrot.slane %v3151_v33, 2  ;;  %v3191_v50 = vsel %vm320_vm0, %v381_v40, %v382_v7  ;;  %v701_v40 = vld [vmem:[%s3980_s1 + $0x3c8] sm:$0xff] }
  0xa6   : > { %899 = vmatmul.mubr.f32.gmra.mxu0 %v3100_v14  ;;  %1124 = vmatmul.mubr.f32.gmra.mxu1 %v3164_v28  ;;  %4062 = vst [vmem:[#allocation22_spill] sm:$0xff] %v3191_v50  ;;  %v3194_v28 = vld [vmem:[%s2605_s8 + $0x138] sm:$0xff]  ;;  %v384_v14 = vrot.slane %v256_v17, 1 }
  0xa7   : > { %903 = vmatprep.mubr.f32.mxu0 %v3168_v48  ;;  %1128 = vmatprep.mubr.f32.mxu1 %v3151_v33  ;;  %4063 = vst [vmem:[#allocation23_spill] sm:$0xff] %v3194_v28  ;;  %v3198_v48 = vld [vmem:[%s2605_s8 + $0x140] sm:$0xff]  ;;  %v3211_v5 = vsel %vm433_vm1, %v494_v57, %v495_v63  ;;  %v499_v57 = vrot.slane %v3194_v28, 2 }
  0xa8   : > { %1220 = vmatprep.subr.mxu0 %v2342_v2  ;;  %1441 = vmatprep.subr.mxu1 %v2342_v2  ;;  %4064 = vst [vmem:[#allocation24_spill] sm:$0xff] %v3198_v48  ;;  %4065 = vst [vmem:[#allocation25_spill] sm:$0xff] %v3211_v5 }
  0xa9   : > { %1221 = vmatpush2.msra.mxu0 %v668_v10  ;;  %1442 = vmatpush2.msra.mxu1 %v702_v53  ;;  %v497_v10 = vrot.slane %v256_v17, 2  ;;  %v3215_v53 = vsel %vm320_vm0, %v382_v7, %v384_v14  ;;  %v666_v7 = vld [vmem:[%s3980_s1 + $0x2b0] sm:$0xff]  ;;  %v700_v14 = vld [vmem:[%s3980_s1 + $0x3c0] sm:$0xff] }
  0xaa   : > { %904 = vmatmul.mubr.f32.gmra.mxu0 %v3104_v22  ;;  %1129 = vmatmul.mubr.f32.gmra.mxu1 %v3185_v11  ;;  %4066 = vst [vmem:[#allocation26_spill] sm:$0xff] %v3215_v53  ;;  %v386_v11 = vrot.slane %v3194_v28, 1  ;;  %v387_v22 = vrot.slane %v3198_v48, 1 }
  0xab   : > { %908 = vmatprep.mubr.f32.mxu0 %v3191_v50  ;;  %1133 = vmatprep.mubr.f32.mxu1 %v3194_v28  ;;  %v259_v50 = vld [vmem:[%s2605_s8 + $0x148] sm:$0x3]  ;;  %v3232_v17 = vsel %vm433_vm1, %v495_v63, %v497_v10 }
  0xac   : > { %1222 = vmatprep.subr.mxu0 %v2342_v2  ;;  %1443 = vmatprep.subr.mxu1 %v2342_v2  ;;  %4067 = vst [vmem:[#allocation27_spill] sm:$0xff] %v3232_v17  ;;  %v665_v63 = vld [vmem:[%s3980_s1 + $0x2a8] sm:$0xff] }
  0xad   : > { %1223 = vmatpush2.msra.mxu0 %v667_v51  ;;  %1444 = vmatpush2.msra.mxu1 %v701_v40  ;;  %v500_v51 = vrot.slane %v3198_v48, 2  ;;  %v3238_v40 = vsel %vm320_vm0, %v386_v11, %v387_v22  ;;  %v699_v11 = vld [vmem:[%s3980_s1 + $0x3b8] sm:$0xff] }
  0xae   : > { %909 = vmatmul.mubr.f32.gmra.mxu0 %v3147_v36  ;;  %1134 = vmatmul.mubr.f32.gmra.mxu1 %v3211_v5  ;;  %4068 = vst [vmem:[#allocation28_spill] sm:$0xff] %v3238_v40  ;;  %v3241_v5 = vld [vmem:[%s2605_s8 + $0x150] sm:$0xff]  ;;  %v389_v36 = vrot.slane %v259_v50, 1 }
  0xaf   : > { %913 = vmatprep.mubr.f32.mxu0 %v3215_v53  ;;  %1138 = vmatprep.mubr.f32.mxu1 %v3198_v48  ;;  %4069 = vst [vmem:[#allocation29_spill] sm:$0xff] %v3241_v5  ;;  %v3245_v53 = vld [vmem:[%s2605_s8 + $0x158] sm:$0xff]  ;;  %v3258_v10 = vsel %vm433_vm1, %v499_v57, %v500_v51  ;;  %v504_v57 = vrot.slane %v3241_v5, 2 }
  0xb0   : > { %1224 = vmatprep.subr.mxu0 %v2342_v2  ;;  %1445 = vmatprep.subr.mxu1 %v2342_v2  ;;  %4070 = vst [vmem:[#allocation30_spill] sm:$0xff] %v3258_v10 }
  0xb1   : > { %1225 = vmatpush2.msra.mxu0 %v666_v7  ;;  %1446 = vmatpush2.msra.mxu1 %v700_v14  ;;  %v502_v7 = vrot.slane %v259_v50, 2  ;;  %v3262_v14 = vsel %vm320_vm0, %v387_v22, %v389_v36  ;;  %v664_v22 = vld [vmem:[%s3980_s1 + $0x2a0] sm:$0xff]  ;;  %v698_v36 = vld [vmem:[%s3980_s1 + $0x3b0] sm:$0xff] }
  0xb2   : > { %914 = vmatmul.mubr.f32.gmra.mxu0 %v3151_v33  ;;  %1139 = vmatmul.mubr.f32.gmra.mxu1 %v3232_v17  ;;  %4071 = vst [vmem:[#allocation31_spill] sm:$0xff] %v3262_v14  ;;  %v391_v17 = vrot.slane %v3241_v5, 1  ;;  %v392_v33 = vrot.slane %v3245_v53, 1 }
  0xb3   : > { %918 = vmatprep.mubr.f32.mxu0 %v3238_v40  ;;  %1143 = vmatprep.mubr.f32.mxu1 %v3241_v5  ;;  %v262_v40 = vld [vmem:[%s2605_s8 + $0x160] sm:$0x3]  ;;  %v3279_v50 = vsel %vm433_vm1, %v500_v51, %v502_v7  ;;  %v663_v51 = vld [vmem:[%s3980_s1 + $0x298] sm:$0xff] }
  0xb4   : > { %1226 = vmatprep.subr.mxu0 %v2342_v2  ;;  %1447 = vmatprep.subr.mxu1 %v2342_v2  ;;  %4072 = vst [vmem:[#allocation32_spill] sm:$0xff] %v3279_v50 }
  0xb5   : > { %1227 = vmatpush2.msra.mxu0 %v665_v63  ;;  %1448 = vmatpush2.msra.mxu1 %v699_v11  ;;  %v505_v63 = vrot.slane %v3245_v53, 2  ;;  %v3285_v11 = vsel %vm320_vm0, %v391_v17, %v392_v33  ;;  %v697_v17 = vld [vmem:[%s3980_s1 + $0x3a8] sm:$0xff] }
  0xb6   : > { %919 = vmatmul.mubr.f32.gmra.mxu0 %v3194_v28  ;;  %1144 = vmatmul.mubr.f32.gmra.mxu1 %v3258_v10  ;;  %4073 = vst [vmem:[#allocation33_spill] sm:$0xff] %v3285_v11  ;;  %v3288_v10 = vld [vmem:[%s2605_s8 + $0x168] sm:$0xff]  ;;  %v394_v28 = vrot.slane %v262_v40, 1 }
  0xb7   : > { %923 = vmatprep.mubr.f32.mxu0 %v3262_v14  ;;  %1148 = vmatprep.mubr.f32.mxu1 %v3245_v53  ;;  %v3292_v14 = vld [vmem:[%s2605_s8 + $0x170] sm:$0xff]  ;;  %v3305_v7 = vsel %vm433_vm1, %v504_v57, %v505_v63  ;;  %v509_v57 = vrot.slane %v3288_v10, 2 }
  0xb8   : > { %1228 = vmatprep.subr.mxu0 %v2342_v2  ;;  %1449 = vmatprep.subr.mxu1 %v2342_v2  ;;  %4074 = vst [vmem:[#allocation34_spill] sm:$0xff] %v3305_v7 }
  0xb9   : > { %1229 = vmatpush2.msra.mxu0 %v664_v22  ;;  %1450 = vmatpush2.msra.mxu1 %v698_v36  ;;  %v507_v22 = vrot.slane %v262_v40, 2  ;;  %v3309_v36 = vsel %vm320_vm0, %v392_v33, %v394_v28  ;;  %v662_v40 = vld [vmem:[%s3980_s1 + $0x290] sm:$0xff]  ;;  %v696_v33 = vld [vmem:[%s3980_s1 + $0x3a0] sm:$0xff] }
  0xba   : > { %924 = vmatmul.mubr.f32.gmra.mxu0 %v3198_v48  ;;  %1149 = vmatmul.mubr.f32.gmra.mxu1 %v3279_v50  ;;  %v396_v50 = vrot.slane %v3288_v10, 1  ;;  %v397_v48 = vrot.slane %v3292_v14, 1 }
  0xbb   : > { %928 = vmatprep.mubr.f32.mxu0 %v3285_v11  ;;  %1153 = vmatprep.mubr.f32.mxu1 %v3288_v10  ;;  %v265_v11 = vld [vmem:[%s2605_s8 + $0x178] sm:$0x3]  ;;  %v3326_v28 = vsel %vm433_vm1, %v505_v63, %v507_v22  ;;  %v661_v63 = vld [vmem:[%s3980_s1 + $0x288] sm:$0xff] }
  0xbc   : > { %1230 = vmatprep.subr.mxu0 %v2342_v2  ;;  %1451 = vmatprep.subr.mxu1 %v2342_v2  ;;  %4075 = vst [vmem:[#allocation35_spill] sm:$0xff] %v3326_v28  ;;  %v695_v22 = vld [vmem:[%s3980_s1 + $0x398] sm:$0xff] }
  0xbd   : > { %1231 = vmatpush2.msra.mxu0 %v663_v51  ;;  %1452 = vmatpush2.msra.mxu1 %v697_v17  ;;  %v510_v51 = vrot.slane %v3292_v14, 2  ;;  %v3333_v17 = vsel %vm320_vm0, %v396_v50, %v397_v48 }
  0xbe   : > { %929 = vmatmul.mubr.f32.gmra.mxu0 %v3241_v5  ;;  %1154 = vmatmul.mubr.f32.gmra.mxu1 %v3305_v7  ;;  %4076 = vst [vmem:[#allocation36_spill] sm:$0xff] %v3333_v17  ;;  %v3336_v7 = vld [vmem:[%s2605_s8 + $0x180] sm:$0xff]  ;;  %v399_v5 = vrot.slane %v265_v11, 1 }
  0xbf   : > { %933 = vmatprep.mubr.f32.mxu0 %v3309_v36  ;;  %1158 = vmatprep.mubr.f32.mxu1 %v3292_v14  ;;  %v3349_v50 = vsel %vm433_vm1, %v509_v57, %v510_v51  ;;  %v692_v57 = vld [vmem:[%s3980_s1 + $0x380] sm:$0xff] }
  0xc0   : > { %1232 = vmatprep.subr.mxu0 %v2342_v2  ;;  %1453 = vmatprep.subr.mxu1 %v2342_v2 }
  0xc1   : > { %1233 = vmatpush2.msra.mxu0 %v662_v40  ;;  %1454 = vmatpush2.msra.mxu1 %v696_v33  ;;  %v512_v40 = vrot.slane %v265_v11, 2  ;;  %v3354_v33 = vsel %vm320_vm0, %v397_v48, %v399_v5  ;;  %v660_v48 = vld [vmem:[%s3980_s1 + $0x280] sm:$0xff]  ;;  %v693_v5 = vld [vmem:[%s3980_s1 + $0x388] sm:$0xff] }
  0xc2   : > { %934 = vmatmul.mubr.f32.gmra.mxu0 %v3245_v53  ;;  %1159 = vmatmul.mubr.f32.gmra.mxu1 %v3326_v28  ;;  %v3357_v28 = vld [vmem:[%s2605_s8 + $0x188] sm:$0xff] }
  0xc3   : > { %938 = vmatprep.mubr.f32.mxu0 %v3333_v17  ;;  %1163 = vmatprep.mubr.f32.mxu1 %v3336_v7  ;;  %v694_v17 = vld [vmem:[%s3980_s1 + $0x390] sm:$0xff]  ;;  %v3367_v11 = vsel %vm433_vm1, %v510_v51, %v512_v40  ;;  %v723_v51 = vld [vmem:[%s3980_s1 + $0x478] sm:$0xff] }
  0xc4   : > { %1234 = vmatprep.subr.mxu0 %v2342_v2  ;;  %1455 = vmatprep.subr.mxu1 %v2342_v2 }
  0xc5   : > { %1235 = vmatpush2.msra.mxu0 %v661_v63  ;;  %1456 = vmatpush2.msra.mxu1 %v695_v22 }
  0xc6   : > { %939 = vmatmul.mubr.f32.gmra.mxu0 %v3288_v10  ;;  %1164 = vmatmul.mubr.f32.gmra.mxu1 %v3349_v50 }
  0xc7   : > { %1457 = vmatprep.subr.mxu1 %v2342_v2  ;;  %943 = vmatprep.mubr.f32.mxu0 %v3354_v33 }
  0xc8   : > { %1168 = vmatprep.mubr.f32.mxu1 %v3357_v28  ;;  %1458 = vmatpush2.msra.mxu1 %v694_v17  ;;  %v722_v17 = vld [vmem:[%s3980_s1 + $0x470] sm:$0xff] }
  0xc9   : > { %1236 = vmatprep.subr.mxu0 %v2342_v2  ;;  %1459 = vmatprep.subr.mxu1 %v2342_v2 }
  0xca   : > { %944 = vmatmul.mubr.f32.gmra.mxu0 %v3292_v14  ;;  %1169 = vmatmul.mubr.f32.gmra.mxu1 %v3367_v11 }
  0xcb   : > { %1237 = vmatpush2.msra.mxu0 %v660_v48  ;;  %1460 = vmatpush2.msra.mxu1 %v693_v5  ;;  %v4089_v5 = vld [vmem:[#allocation11_spill] sm:$0xff] }
  0xcc   : > { %1461 = vmatprep.subr.mxu1 %v2342_v2  ;;  %1238 = vmatprep.mubr.f32.mxu0 %v2695_v30  ;;  %v721_v2 = vld [vmem:[%s3980_s1 + $0x468] sm:$0xff] }
  0xcd   : > { %1462 = vmatpush2.msra.mxu1 %v692_v57  ;;  %1463 = vmatprep.mubr.f32.mxu1 %v2721_v41  ;;  %v717_v30 = vld [vmem:[%s3980_s1 + $0x448] sm:$0xff] }
  0xce   : > { %1239 = vmatmul.mubr.f32.vlgmr.msra.gmra.mxu0 %v2676_v24  ;;  %1464 = vmatmul.mubr.f32.vlgmr.msra.gmra.mxu1 %v2680_v26  ;;  %v720_v24 = vld [vmem:[%s3980_s1 + $0x460] sm:$0xff]  ;;  %v719_v26 = vld [vmem:[%s3980_s1 + $0x458] sm:$0xff] }
  0xcf   : > { %2180 = vmatprep.subr.mxu0 %v723_v51  ;;  %1243 = vmatprep.mubr.f32.mxu0 %v2715_v38  ;;  %v715_v38 = vld [vmem:[%s3980_s1 + $0x438] sm:$0xff] }
  0xd0   : > { %2181 = vmatpush3.msra.mxu0 %v723_v51  ;;  %1468 = vmatprep.mubr.f32.mxu1 %v2745_v49 }
  0xd1   : > { %2182 = vmatprep.subr.mxu0 %v722_v17  ;;  %2260 = vmatprep.subr.mxu1 %v723_v51 }
  0xd2   : > { %1244 = vmatmul.mubr.f32.gmra.mxu0 %v2700_v32  ;;  %1469 = vmatmul.mubr.f32.gmra.mxu1 %v2683_v27  ;;  %v718_v27 = vld [vmem:[%s3980_s1 + $0x450] sm:$0xff]  ;;  %v716_v32 = vld [vmem:[%s3980_s1 + $0x440] sm:$0xff] }
  0xd3   : > { %1248 = vmatprep.mubr.f32.mxu0 %v2741_v47  ;;  %1473 = vmatprep.mubr.f32.mxu1 %v2768_v58 }
  0xd4   : > { %2183 = vmatpush3.msra.mxu0 %v722_v17  ;;  %2276 = vmatpush3.msra.mxu1 %v723_v51  ;;  %v4090_v51 = vld [vmem:[#allocation15_spill] sm:$0xff] }
  0xd5   : > { %2184 = vmatprep.subr.mxu0 %v721_v2  ;;  %2261 = vmatprep.subr.mxu1 %v722_v17 }
  0xd6   : > { %1249 = vmatmul.mubr.f32.gmra.mxu0 %v2721_v41  ;;  %1474 = vmatmul.mubr.f32.gmra.mxu1 %v2724_v42  ;;  %v714_v41 = vld [vmem:[%s3980_s1 + $0x430] sm:$0xff]  ;;  %v713_v42 = vld [vmem:[%s3980_s1 + $0x428] sm:$0xff] }
  0xd7   : > { %1253 = vmatprep.mubr.f32.mxu0 %v2762_v55  ;;  %1478 = vmatprep.mubr.f32.mxu1 %v2792_v3 }
  0xd8   : > { %2185 = vmatpush3.msra.mxu0 %v721_v2  ;;  %2277 = vmatpush3.msra.mxu1 %v722_v17  ;;  %v4091_v17 = vld [vmem:[#allocation20_spill] sm:$0xff] }
  0xd9   : > { %2186 = vmatprep.subr.mxu0 %v720_v24  ;;  %2262 = vmatprep.subr.mxu1 %v721_v2 }
  0xda   : > { %1254 = vmatmul.mubr.f32.gmra.mxu0 %v2745_v49  ;;  %1479 = vmatmul.mubr.f32.gmra.mxu1 %v2728_v44  ;;  %v712_v44 = vld [vmem:[%s3980_s1 + $0x420] sm:$0xff]  ;;  %v711_v49 = vld [vmem:[%s3980_s1 + $0x418] sm:$0xff] }
  0xdb   : > { %1258 = vmatprep.mubr.f32.mxu0 %v2788_v0  ;;  %1483 = vmatprep.mubr.f32.mxu1 %v2815_v12 }
  0xdc   : > { %2187 = vmatpush3.msra.mxu0 %v720_v24  ;;  %2278 = vmatpush3.msra.mxu1 %v721_v2 }
  0xdd   : > { %2188 = vmatprep.subr.mxu0 %v719_v26  ;;  %2263 = vmatprep.subr.mxu1 %v720_v24 }
  0xde   : > { %1259 = vmatmul.mubr.f32.gmra.mxu0 %v2768_v58  ;;  %1484 = vmatmul.mubr.f32.gmra.mxu1 %v2771_v59  ;;  %v710_v58 = vld [vmem:[%s3980_s1 + $0x410] sm:$0xff]  ;;  %v709_v59 = vld [vmem:[%s3980_s1 + $0x408] sm:$0xff] }
  0xdf   : > { %1263 = vmatprep.mubr.f32.mxu0 %v2809_v9  ;;  %1488 = vmatprep.mubr.f32.mxu1 %v2839_v20 }
  0xe0   : > { %2189 = vmatpush3.msra.mxu0 %v719_v26  ;;  %2279 = vmatpush3.msra.mxu1 %v720_v24 }
  0xe1   : > { %2190 = vmatprep.subr.mxu0 %v718_v27  ;;  %2264 = vmatprep.subr.mxu1 %v719_v26 }
  0xe2   : > { %1264 = vmatmul.mubr.f32.gmra.mxu0 %v2792_v3  ;;  %1489 = vmatmul.mubr.f32.gmra.mxu1 %v2775_v61  ;;  %v4077_v61 = vld [vmem:[#allocation2_spill] sm:$0xff] }
  0xe3   : > { %1268 = vmatprep.mubr.f32.mxu0 %v2835_v18  ;;  %1493 = vmatprep.mubr.f32.mxu1 %v2862_v34  ;;  %v708_v3 = vld [vmem:[%s3980_s1 + $0x400] sm:$0xff] }
  0xe4   : > { %2191 = vmatpush3.msra.mxu0 %v718_v27  ;;  %2280 = vmatpush3.msra.mxu1 %v719_v26 }
  0xe5   : > { %2192 = vmatprep.subr.mxu0 %v717_v30  ;;  %2265 = vmatprep.subr.mxu1 %v718_v27 }
  0xe6   : > { %1269 = vmatmul.mubr.f32.gmra.mxu0 %v2815_v12  ;;  %1494 = vmatmul.mubr.f32.gmra.mxu1 %v2818_v13  ;;  %v4078_v12 = vld [vmem:[#allocation4_spill] sm:$0xff] }
  0xe7   : > { %1273 = vmatprep.mubr.f32.mxu0 %v2856_v29  ;;  %1498 = vmatprep.mubr.f32.mxu1 %v2886_v46  ;;  %v4079_v13 = vld [vmem:[#allocation8_spill] sm:$0xff] }
  0xe8   : > { %2193 = vmatpush3.msra.mxu0 %v717_v30  ;;  %2281 = vmatpush3.msra.mxu1 %v718_v27 }
  0xe9   : > { %2194 = vmatprep.subr.mxu0 %v716_v32  ;;  %2266 = vmatprep.subr.mxu1 %v717_v30 }
  0xea   : > { %1274 = vmatmul.mubr.f32.gmra.mxu0 %v2839_v20  ;;  %1499 = vmatmul.mubr.f32.gmra.mxu1 %v2822_v15  ;;  %v4080_v15 = vld [vmem:[#allocation3_spill] sm:$0xff] }
  0xeb   : > { %1278 = vmatprep.mubr.f32.mxu0 %v2882_v43  ;;  %1503 = vmatprep.mubr.f32.mxu1 %v2909_v60  ;;  %v4081_v20 = vld [vmem:[#allocation7_spill] sm:$0xff] }
  0xec   : > { %2195 = vmatpush3.msra.mxu0 %v716_v32  ;;  %2282 = vmatpush3.msra.mxu1 %v717_v30  ;;  %v4092_v30 = vld [vmem:[#allocation12_spill] sm:$0xff] }
  0xed   : > { %2196 = vmatprep.subr.mxu0 %v715_v38  ;;  %2267 = vmatprep.subr.mxu1 %v716_v32 }
  0xee   : > { %1279 = vmatmul.mubr.f32.gmra.mxu0 %v2862_v34  ;;  %1504 = vmatmul.mubr.f32.gmra.mxu1 %v2865_v35  ;;  %v4082_v34 = vld [vmem:[#allocation10_spill] sm:$0xff] }
  0xef   : > { %1283 = vmatprep.mubr.f32.mxu0 %v2903_v54  ;;  %1508 = vmatprep.mubr.f32.mxu1 %v2933_v8 }
  0xf0   : > { %2197 = vmatpush3.msra.mxu0 %v715_v38  ;;  %2283 = vmatpush3.msra.mxu1 %v716_v32 }
  0xf1   : > { %2198 = vmatprep.subr.mxu0 %v714_v41  ;;  %2268 = vmatprep.subr.mxu1 %v715_v38 }
  0xf2   : > { %1284 = vmatmul.mubr.f32.gmra.mxu0 %v2886_v46  ;;  %1509 = vmatmul.mubr.f32.gmra.mxu1 %v2869_v37  ;;  %v4083_v46 = vld [vmem:[#allocation5_spill] sm:$0xff] }
  0xf3   : > { %1288 = vmatprep.mubr.f32.mxu0 %v2929_v6  ;;  %1513 = vmatprep.mubr.f32.mxu1 %v2956_v23 }
  0xf4   : > { %2199 = vmatpush3.msra.mxu0 %v714_v41  ;;  %2284 = vmatpush3.msra.mxu1 %v715_v38  ;;  %v4093_v38 = vld [vmem:[#allocation19_spill] sm:$0xff] }
  0xf5   : > { %2200 = vmatprep.subr.mxu0 %v713_v42  ;;  %2269 = vmatprep.subr.mxu1 %v714_v41 }
  0xf6   : > { %1289 = vmatmul.mubr.f32.gmra.mxu0 %v2909_v60  ;;  %1514 = vmatmul.mubr.f32.gmra.mxu1 %v2912_v62  ;;  %v4084_v62 = vld [vmem:[#allocation9_spill] sm:$0xff] }
  0xf7   : > { %1293 = vmatprep.mubr.f32.mxu0 %v2950_v19  ;;  %1518 = vmatprep.mubr.f32.mxu1 %v2980_v45 }
  0xf8   : > { %2201 = vmatpush3.msra.mxu0 %v713_v42  ;;  %2285 = vmatpush3.msra.mxu1 %v714_v41  ;;  %v4094_v41 = vld [vmem:[#allocation22_spill] sm:$0xff] }
  0xf9   : > { %2202 = vmatprep.subr.mxu0 %v712_v44  ;;  %2270 = vmatprep.subr.mxu1 %v713_v42 }
  0xfa   : > { %1294 = vmatmul.mubr.f32.gmra.mxu0 %v2933_v8  ;;  %1519 = vmatmul.mubr.f32.gmra.mxu1 %v2916_v1  ;;  %v4085_v1 = vld [vmem:[#allocation14_spill] sm:$0xff] }
  0xfb   : > { %1298 = vmatprep.mubr.f32.mxu0 %v2976_v39  ;;  %1523 = vmatprep.mubr.f32.mxu1 %v3003_v4 }
  0xfc   : > { %2203 = vmatpush3.msra.mxu0 %v712_v44  ;;  %2286 = vmatpush3.msra.mxu1 %v713_v42 }
  0xfd   : > { %2204 = vmatprep.subr.mxu0 %v711_v49  ;;  %2271 = vmatprep.subr.mxu1 %v712_v44 }
  0xfe   : > { %1299 = vmatmul.mubr.f32.gmra.mxu0 %v2956_v23  ;;  %1524 = vmatmul.mubr.f32.gmra.mxu1 %v2959_v25 }
  0xff   : > { %1303 = vmatprep.mubr.f32.mxu0 %v2997_v56  ;;  %1528 = vmatprep.mubr.f32.mxu1 %v3027_v21 }
 0x100   : > { %2205 = vmatpush3.msra.mxu0 %v711_v49  ;;  %2287 = vmatpush3.msra.mxu1 %v712_v44 }
 0x101   : > { %2206 = vmatprep.subr.mxu0 %v710_v58  ;;  %2272 = vmatprep.subr.mxu1 %v711_v49 }
 0x102   : > { %1304 = vmatmul.mubr.f32.gmra.mxu0 %v2980_v45  ;;  %1529 = vmatmul.mubr.f32.gmra.mxu1 %v2963_v31  ;;  %v4086_v45 = vld [vmem:[#allocation6_spill] sm:$0xff] }
 0x103   : > { %1308 = vmatprep.mubr.f32.mxu0 %v3023_v16  ;;  %1533 = vmatprep.mubr.f32.mxu1 %v3050_v52 }
 0x104   : > { %2207 = vmatpush3.msra.mxu0 %v710_v58  ;;  %2288 = vmatpush3.msra.mxu1 %v711_v49 }
 0x105   : > { %2208 = vmatprep.subr.mxu0 %v709_v59  ;;  %2273 = vmatprep.subr.mxu1 %v710_v58 }
 0x106   : > { %1309 = vmatmul.mubr.f32.gmra.mxu0 %v3003_v4  ;;  %1534 = vmatmul.mubr.f32.gmra.mxu1 %v4077_v61 }
 0x107   : > { %1313 = vmatprep.mubr.f32.mxu0 %v4078_v12  ;;  %1538 = vmatprep.mubr.f32.mxu1 %v4079_v13 }
 0x108   : > { %2209 = vmatpush3.msra.mxu0 %v709_v59  ;;  %2289 = vmatpush3.msra.mxu1 %v710_v58 }
 0x109   : > { %2210 = vmatprep.subr.mxu0 %v708_v3  ;;  %2274 = vmatprep.subr.mxu1 %v709_v59 }
 0x10a   : > { %1314 = vmatmul.mubr.f32.gmra.mxu0 %v3027_v21  ;;  %1539 = vmatmul.mubr.f32.gmra.mxu1 %v4080_v15  ;;  %v4087_v21 = vld [vmem:[#allocation13_spill] sm:$0xff] }
 0x10b   : > { %1318 = vmatprep.mubr.f32.mxu0 %v4081_v20  ;;  %1543 = vmatprep.mubr.f32.mxu1 %v4082_v34 }
 0x10c   : > { %2211 = vmatpush3.msra.mxu0 %v708_v3  ;;  %2290 = vmatpush3.msra.mxu1 %v709_v59  ;;  %v4095_v59 = vld [vmem:[#allocation17_spill] sm:$0xff] }
 0x10d   : > { %2275 = vmatprep.subr.mxu1 %v708_v3 }
 0x10e   : > { %v790_v35 = vpop.f32.mrf.mxu0  ;;  %v1015_v37 = vpop.f32.mrf.mxu1  ;;  %1319 = vmatmul.mubr.f32.gmra.mxu0 %v3050_v52  ;;  %1544 = vmatmul.mubr.f32.gmra.mxu1 %v4083_v46  ;;  %v4088_v52 = vld [vmem:[#allocation16_spill] sm:$0xff]  ;;  %v4098_v46 = vld [vmem:[#allocation18_spill] sm:$0xff] }
 0x10f   : > { %v3500_v60 = vadd.f32 %v1015_v37, %v790_v35  ;;  %1323 = vmatprep.mubr.f32.mxu0 %v4084_v62  ;;  %1548 = vmatprep.mubr.f32.mxu1 %v4085_v1 }
 0x110   : > { %v792_v8 = vpop.f32.mrf.mxu0  ;;  %v1017_v23 = vpop.f32.mrf.mxu1  ;;  %2291 = vmatpush3.msra.mxu1 %v708_v3  ;;  %v4096_v3 = vld [vmem:[#allocation21_spill] sm:$0xff] }
 0x111   : > { %v4099_v8 = vld [vmem:[#allocation25_spill] sm:$0xff]  ;;  %v4100_v23 = vld [vmem:[#allocation28_spill] sm:$0xff] }
 0x112   : > { %v795_v25 = vpop.f32.mrf.mxu0  ;;  %v1020_v31 = vpop.f32.mrf.mxu1  ;;  %1324 = vmatmul.mubr.f32.gmra.mxu0 %v4079_v13  ;;  %1549 = vmatmul.mubr.f32.gmra.mxu1 %v4086_v45  ;;  %v4097_v13 = vld [vmem:[#allocation26_spill] sm:$0xff] }
 0x113   : > { %v3506_v4 = vadd.f32 %v1020_v31, %v795_v25  ;;  %1328 = vmatprep.mubr.f32.mxu0 %v4087_v21  ;;  %1553 = vmatprep.mubr.f32.mxu1 %v4088_v52 }
 0x114   : > { %v797_v63 = vpop.f32.mrf.mxu0  ;;  %v1022_v22 = vpop.f32.mrf.mxu1 }
 0x115   : > { %v4101_v63 = vld [vmem:[#allocation23_spill] sm:$0xff] }
 0x116   : > { %v800_v40 = vpop.f32.mrf.mxu0  ;;  %v1025_v48 = vpop.f32.mrf.mxu1  ;;  %1329 = vmatmul.mubr.f32.gmra.mxu0 %v4082_v34  ;;  %1554 = vmatmul.mubr.f32.gmra.mxu1 %v4089_v5 }
 0x117   : > { %v3512_v57 = vadd.f32 %v1025_v48, %v800_v40  ;;  %1333 = vmatprep.mubr.f32.mxu0 %v4090_v51  ;;  %1558 = vmatprep.mubr.f32.mxu1 %v4091_v17  ;;  %v4102_v40 = vld [vmem:[#allocation27_spill] sm:$0xff] }
 0x118   : > { %v802_v2 = vpop.f32.mrf.mxu0  ;;  %v1027_v24 = vpop.f32.mrf.mxu1  ;;  %v4103_v48 = vld [vmem:[#allocation31_spill] sm:$0xff] }
 0x11a   : > { %v805_v26 = vpop.f32.mrf.mxu0  ;;  %v1030_v27 = vpop.f32.mrf.mxu1  ;;  %1334 = vmatmul.mubr.f32.gmra.mxu0 %v4085_v1  ;;  %1559 = vmatmul.mubr.f32.gmra.mxu1 %v4092_v30  ;;  %v4105_v30 = vld [vmem:[#allocation30_spill] sm:$0xff] }
 0x11b   : > { %v3518_v32 = vadd.f32 %v1030_v27, %v805_v26  ;;  %1338 = vmatprep.mubr.f32.mxu0 %v4093_v38  ;;  %1563 = vmatprep.mubr.f32.mxu1 %v4094_v41  ;;  %v4104_v26 = vld [vmem:[#allocation24_spill] sm:$0xff] }
 0x11c   : > { %v807_v42 = vpop.f32.mrf.mxu0  ;;  %v1032_v44 = vpop.f32.mrf.mxu1 }
 0x11e   : > { %v810_v49 = vpop.f32.mrf.mxu0  ;;  %v1035_v58 = vpop.f32.mrf.mxu1  ;;  %1339 = vmatmul.mubr.f32.gmra.mxu0 %v4088_v52  ;;  %1564 = vmatmul.mubr.f32.gmra.mxu1 %v4095_v59  ;;  %v4107_v59 = vld [vmem:[#allocation29_spill] sm:$0xff] }
 0x11f   : > { %v3524_v61 = vadd.f32 %v1035_v58, %v810_v49  ;;  %1343 = vmatprep.mubr.f32.mxu0 %v4096_v3  ;;  %1568 = vmatprep.mubr.f32.mxu1 %v4097_v13 }
 0x120   : > { %v812_v15 = vpop.f32.mrf.mxu0  ;;  %v1037_v34 = vpop.f32.mrf.mxu1 }
 0x121   : > { %v4108_v34 = vld [vmem:[#allocation32_spill] sm:$0xff] }
 0x122   : > { %v815_v35 = vpop.f32.mrf.mxu0  ;;  %v1040_v37 = vpop.f32.mrf.mxu1  ;;  %1344 = vmatmul.mubr.f32.gmra.mxu0 %v4091_v17  ;;  %1569 = vmatmul.mubr.f32.gmra.mxu1 %v4098_v46 }
 0x123   : > { %v3530_v1 = vadd.f32 %v1040_v37, %v815_v35  ;;  %1348 = vmatprep.mubr.f32.mxu0 %v4099_v8  ;;  %1573 = vmatprep.mubr.f32.mxu1 %v4100_v23 }
 0x124   : > { %v817_v25 = vpop.f32.mrf.mxu0  ;;  %v1042_v31 = vpop.f32.mrf.mxu1 }
 0x125   : > { %v4110_v31 = vld [vmem:[#allocation36_spill] sm:$0xff] }
 0x126   : > { %v820_v45 = vpop.f32.mrf.mxu0  ;;  %v1045_v52 = vpop.f32.mrf.mxu1  ;;  %1349 = vmatmul.mubr.f32.gmra.mxu0 %v4094_v41  ;;  %1574 = vmatmul.mubr.f32.gmra.mxu1 %v4101_v63  ;;  %v4106_v41 = vld [vmem:[#allocation33_spill] sm:$0xff]  ;;  %v549_v63 = vrot.slane %v3336_v7, 1 }
 0x127   : > { %v3536_v22 = vadd.f32 %v1045_v52, %v820_v45  ;;  %1353 = vmatprep.mubr.f32.mxu0 %v4102_v40  ;;  %1578 = vmatprep.mubr.f32.mxu1 %v4103_v48 }
 0x128   : > { %v822_v5 = vpop.f32.mrf.mxu0  ;;  %v1047_v17 = vpop.f32.mrf.mxu1 }
 0x129   : > { %v550_v5 = vrot.slane %v3357_v28, 1  ;;  %v268_v17 = vld [vmem:[%s2605_s8 + $0x190] sm:$0x3] }
 0x12a   : > { %v825_v2 = vpop.f32.mrf.mxu0  ;;  %v1050_v24 = vpop.f32.mrf.mxu1  ;;  %1354 = vmatmul.mubr.f32.gmra.mxu0 %v4097_v13  ;;  %1579 = vmatmul.mubr.f32.gmra.mxu1 %v4104_v26  ;;  %v552_v26 = vrot.slane %v268_v17, 1 }
 0x12b   : > { %v3542_v27 = vadd.f32 %v1050_v24, %v825_v2  ;;  %1358 = vmatprep.mubr.f32.mxu0 %v4105_v30  ;;  %1583 = vmatprep.mubr.f32.mxu1 %v4106_v41 }
 0x12c   : > { %v827_v42 = vpop.f32.mrf.mxu0  ;;  %v1052_v44 = vpop.f32.mrf.mxu1 }
 0x12e   : > { %v830_v49 = vpop.f32.mrf.mxu0  ;;  %v1055_v58 = vpop.f32.mrf.mxu1  ;;  %1359 = vmatmul.mubr.f32.gmra.mxu0 %v4100_v23  ;;  %1584 = vmatmul.mubr.f32.gmra.mxu1 %v4107_v59  ;;  %v4109_v23 = vld [vmem:[#allocation34_spill] sm:$0xff] }
 0x12f   : > { %v3548_v15 = vadd.f32 %v1055_v58, %v830_v49  ;;  %1363 = vmatprep.mubr.f32.mxu0 %v4108_v34  ;;  %1588 = vmatprep.mubr.f32.mxu1 %v3309_v36  ;;  %v551_v49 = vsel %vm320_vm0, %v549_v63, %v550_v5  ;;  %v3569_v58 = vld [vmem:[%s2605_s8 + $0x198] sm:$0xff]  ;;  %v3572_v59 = vld [vmem:[%s2605_s8 + $0x1a0] sm:$0xff] }
 0x130   : > { %v832_v13 = vpop.f32.mrf.mxu0  ;;  %v1057_v35 = vpop.f32.mrf.mxu1  ;;  %v566_v63 = vrot.slane %v3569_v58, 1 }
 0x131   : > { %v553_v35 = vsel %vm320_vm0, %v550_v5, %v552_v26 }
 0x132   : > { %v835_v37 = vpop.f32.mrf.mxu0  ;;  %v1060_v46 = vpop.f32.mrf.mxu1  ;;  %1364 = vmatmul.mubr.f32.gmra.mxu0 %v4103_v48  ;;  %1589 = vmatmul.mubr.f32.gmra.mxu1 %v3245_v53  ;;  %v4111_v48 = vld [vmem:[#allocation35_spill] sm:$0xff] }
 0x133   : > { %v3554_v25 = vadd.f32 %v1060_v46, %v835_v37  ;;  %1368 = vmatprep.mubr.f32.mxu0 %v4109_v23  ;;  %1593 = vmatprep.mubr.f32.mxu1 %v4110_v31 }
 0x134   : > { %v837_v45 = vpop.f32.mrf.mxu0  ;;  %v1062_v52 = vpop.f32.mrf.mxu1 }
 0x135   : > { %v556_v45 = vrot.slane %v3336_v7, 2  ;;  %v557_v52 = vrot.slane %v3357_v28, 2 }
 0x136   : > { %v840_v2 = vpop.f32.mrf.mxu0  ;;  %v1065_v24 = vpop.f32.mrf.mxu1  ;;  %1369 = vmatmul.mubr.f32.gmra.mxu0 %v4106_v41  ;;  %1594 = vmatmul.mubr.f32.gmra.mxu1 %v3288_v10 }
 0x137   : > { %v3563_v53 = vadd.f32 %v1065_v24, %v840_v2  ;;  %1373 = vmatprep.mubr.f32.mxu0 %v4111_v48  ;;  %1598 = vmatprep.mubr.f32.mxu1 %v3354_v33  ;;  %v567_v2 = vrot.slane %v3572_v59, 1 }
 0x138   : > { %v842_v42 = vpop.f32.mrf.mxu0  ;;  %v1067_v44 = vpop.f32.mrf.mxu1 }
 0x139   : > { %v3593_v44 = vsel %vm433_vm1, %v556_v45, %v557_v52 }
 0x13a   : > { %v845_v13 = vpop.f32.mrf.mxu0  ;;  %v1070_v41 = vpop.f32.mrf.mxu1  ;;  %1374 = vmatmul.mubr.f32.gmra.mxu0 %v3309_v36  ;;  %1599 = vmatmul.mubr.f32.gmra.mxu1 %v3292_v14  ;;  %v3585_v36 = vld [vmem:[%s2605_s8 + $0x1a8] sm:$0x3]  ;;  %s2131_s8 = sshll.u32 %s4133_s12, 8 }
 0x13b   : > { %v3576_v10 = vadd.f32 %v1070_v41, %v845_v13  ;;  %1378 = vmatprep.mubr.f32.mxu0 %v3349_v50  ;;  %1603 = vmatprep.mubr.f32.mxu1 %v551_v49  ;;  %v568_v13 = vsel %vm320_vm0, %v566_v63, %v567_v2  ;;  %v559_v41 = vrot.slane %v268_v17, 2  ;;  %s3788_s19 = scalar_lea.vmem %s3981_s2, %s2131_s8 }
 0x13c   : > { %v847_v37 = vpop.f32.mrf.mxu0  ;;  %v1072_v46 = vpop.f32.mrf.mxu1 }
 0x13d   : > { %4112 = vst [vmem:[#allocation2_spill] sm:$0xff] %v3576_v10  ;;  %v569_v37 = vrot.slane %v3585_v36, 1  ;;  %v3603_v45 = vsel %vm433_vm1, %v557_v52, %v559_v41 }
 0x13e   : > { %v850_v14 = vpop.f32.mrf.mxu0  ;;  %v1075_v24 = vpop.f32.mrf.mxu1  ;;  %1379 = vmatmul.mubr.f32.gmra.mxu0 %v4110_v31  ;;  %1604 = vmatmul.mubr.f32.gmra.mxu1 %v3336_v7 }
 0x13f   : > { %v3589_v42 = vadd.f32 %v1075_v24, %v850_v14  ;;  %1383 = vmatprep.mubr.f32.mxu0 %v3367_v11  ;;  %1608 = vmatprep.mubr.f32.mxu1 %v553_v35  ;;  %v570_v17 = vsel %vm320_vm0, %v567_v2, %v569_v37 }
 0x140   : > { %v852_v5 = vpop.f32.mrf.mxu0  ;;  %v1077_v26 = vpop.f32.mrf.mxu1 }
 0x142   : > { %v855_v46 = vpop.f32.mrf.mxu0  ;;  %v1080_v10 = vpop.f32.mrf.mxu1  ;;  %1384 = vmatmul.mubr.f32.gmra.mxu0 %v3354_v33  ;;  %1609 = vmatmul.mubr.f32.gmra.mxu1 %v3357_v28 }
 0x143   : > { %v3599_v7 = vadd.f32 %v1080_v10, %v855_v46  ;;  %1388 = vmatprep.mubr.f32.mxu0 %v3593_v44  ;;  %1613 = vmatprep.mubr.f32.mxu1 %v568_v13 }
 0x144   : > { %v857_v31 = vpop.f32.mrf.mxu0  ;;  %v1082_v14 = vpop.f32.mrf.mxu1 }
 0x146   : > { %v860_v63 = vpop.f32.mrf.mxu0  ;;  %v1085_v24 = vpop.f32.mrf.mxu1  ;;  %1389 = vmatmul.mubr.f32.gmra.mxu0 %v551_v49  ;;  %1614 = vmatmul.mubr.f32.gmra.mxu1 %v3569_v58 }
 0x147   : > { %v3607_v33 = vadd.f32 %v1085_v24, %v860_v63  ;;  %1393 = vmatprep.mubr.f32.mxu0 %v3603_v45  ;;  %1618 = vmatprep.mubr.f32.mxu1 %v570_v17 }
 0x148   : > { %v862_v28 = vpop.f32.mrf.mxu0  ;;  %v1087_v10 = vpop.f32.mrf.mxu1 }
 0x14a   : > { %v865_v5 = vpop.f32.mrf.mxu0  ;;  %v1090_v26 = vpop.f32.mrf.mxu1  ;;  %1394 = vmatmul.mubr.f32.gmra.mxu0 %v553_v35  ;;  %1619 = vmatmul.mubr.f32.gmra.mxu1 %v3572_v59 }
 0x14b   : > { %v3611_v52 = vadd.f32 %v1090_v26, %v865_v5  ;;  %2212 = vmatprep.mubr.f32.mxu0 %v2741_v47  ;;  %2236 = vmatprep.mubr.f32.mxu1 %v4087_v21 }
 0x14c   : > { %v867_v49 = vpop.f32.mrf.mxu0  ;;  %v1092_v2 = vpop.f32.mrf.mxu1 }
 0x14e   : > { %v870_v13 = vpop.f32.mrf.mxu0  ;;  %v1095_v41 = vpop.f32.mrf.mxu1  ;;  %2213 = vmatmul.mubr.f32.vlgmr.msra.gmra.mxu0 %v2762_v55  ;;  %2237 = vmatmul.mubr.f32.vlgmr.msra.gmra.mxu1 %v4090_v51 }
 0x14f   : > { %v3617_v37 = vadd.f32 %v1095_v41, %v870_v13  ;;  %2215 = vmatprep.mubr.f32.mxu0 %v2788_v0  ;;  %2239 = vmatprep.mubr.f32.mxu1 %v4093_v38 }
 0x150   : > { %v872_v35 = vpop.f32.mrf.mxu0  ;;  %v1097_v46 = vpop.f32.mrf.mxu1 }
 0x152   : > { %v875_v31 = vpop.f32.mrf.mxu0  ;;  %v1100_v47 = vpop.f32.mrf.mxu1  ;;  %2216 = vmatmul.mubr.f32.gmra.mxu0 %v2809_v9  ;;  %2240 = vmatmul.mubr.f32.gmra.mxu1 %v4096_v3 }
 0x153   : > { %v3623_v21 = vadd.f32 %v1100_v47, %v875_v31  ;;  %2218 = vmatprep.mubr.f32.mxu0 %v2835_v18  ;;  %2242 = vmatprep.mubr.f32.mxu1 %v4099_v8 }
 0x154   : > { %v877_v55 = vpop.f32.mrf.mxu0  ;;  %v1102_v51 = vpop.f32.mrf.mxu1 }
 0x156   : > { %v880_v14 = vpop.f32.mrf.mxu0  ;;  %v1105_v0 = vpop.f32.mrf.mxu1  ;;  %2219 = vmatmul.mubr.f32.gmra.mxu0 %v2856_v29  ;;  %2243 = vmatmul.mubr.f32.gmra.mxu1 %v4102_v40 }
 0x157   : > { %v3629_v38 = vadd.f32 %v1105_v0, %v880_v14  ;;  %2221 = vmatprep.mubr.f32.mxu0 %v2882_v43  ;;  %2245 = vmatprep.mubr.f32.mxu1 %v4105_v30 }
 0x158   : > { %v882_v9 = vpop.f32.mrf.mxu0  ;;  %v1107_v3 = vpop.f32.mrf.mxu1 }
 0x15a   : > { %v885_v17 = vpop.f32.mrf.mxu0  ;;  %v1110_v18 = vpop.f32.mrf.mxu1  ;;  %2222 = vmatmul.mubr.f32.gmra.mxu0 %v2903_v54  ;;  %2246 = vmatmul.mubr.f32.gmra.mxu1 %v4108_v34 }
 0x15b   : > { %v3635_v8 = vadd.f32 %v1110_v18, %v885_v17  ;;  %2224 = vmatprep.mubr.f32.mxu0 %v2929_v6  ;;  %2248 = vmatprep.mubr.f32.mxu1 %v4109_v23  ;;  %v573_v6 = vrot.slane %v3569_v58, 2  ;;  %v574_v23 = vrot.slane %v3572_v59, 2 }
 0x15c   : > { %v887_v29 = vpop.f32.mrf.mxu0  ;;  %v1112_v40 = vpop.f32.mrf.mxu1 }
 0x15d   : > { %v575_v58 = vsel %vm433_vm1, %v573_v6, %v574_v23 }
 0x15e   : > { %v890_v63 = vpop.f32.mrf.mxu0  ;;  %v1115_v43 = vpop.f32.mrf.mxu1  ;;  %2225 = vmatmul.mubr.f32.gmra.mxu0 %v2950_v19  ;;  %2249 = vmatmul.mubr.f32.gmra.mxu1 %v4111_v48 }
 0x15f   : > { %v3641_v30 = vadd.f32 %v1115_v43, %v890_v63  ;;  %2227 = vmatprep.mubr.f32.mxu0 %v2976_v39  ;;  %2251 = vmatprep.mubr.f32.mxu1 %v3349_v50  ;;  %v576_v39 = vrot.slane %v3585_v36, 2 }
 0x160   : > { %v892_v54 = vpop.f32.mrf.mxu0  ;;  %v1117_v34 = vpop.f32.mrf.mxu1 }
 0x162   : > { %v895_v24 = vpop.f32.mrf.mxu0  ;;  %v1120_v28 = vpop.f32.mrf.mxu1  ;;  %2228 = vmatmul.mubr.f32.gmra.mxu0 %v2997_v56  ;;  %2252 = vmatmul.mubr.f32.gmra.mxu1 %v3367_v11 }
 0x163   : > { %v3649_v19 = vadd.f32 %v1120_v28, %v895_v24  ;;  %2230 = vmatprep.mubr.f32.mxu0 %v3023_v16  ;;  %2254 = vmatprep.mubr.f32.mxu1 %v3593_v44  ;;  %v577_v16 = vsel %vm433_vm1, %v574_v23, %v576_v39 }
 0x164   : > { %v897_v50 = vpop.f32.mrf.mxu0  ;;  %v1122_v48 = vpop.f32.mrf.mxu1 }
 0x166   : > { %v900_v10 = vpop.f32.mrf.mxu0  ;;  %v1125_v59 = vpop.f32.mrf.mxu1  ;;  %2231 = vmatmul.mubr.f32.gmra.mxu0 %v4078_v12  ;;  %2255 = vmatmul.mubr.f32.gmra.mxu1 %v3603_v45 }
 0x167   : > { %v3657_v56 = vadd.f32 %v1125_v59, %v900_v10  ;;  %2233 = vmatprep.mubr.f32.mxu0 %v4081_v20  ;;  %2257 = vmatprep.mubr.f32.mxu1 %v575_v58 }
 0x168   : > { %v902_v11 = vpop.f32.mrf.mxu0  ;;  %v1127_v44 = vpop.f32.mrf.mxu1 }
 0x16a   : > { %v905_v36 = vpop.f32.mrf.mxu0  ;;  %v1130_v5 = vpop.f32.mrf.mxu1  ;;  %2234 = vmatmul.mubr.f32.gmra.mxu0 %v4084_v62  ;;  %2258 = vmatmul.mubr.f32.gmra.mxu1 %v577_v16 }
 0x16b   : > { %v3662_v26 = vadd.f32 %v1130_v5, %v905_v36 }
 0x16c   : > { %v907_v49 = vpop.f32.mrf.mxu0  ;;  %v1132_v12 = vpop.f32.mrf.mxu1 }
 0x16e   : > { %v910_v2 = vpop.f32.mrf.mxu0  ;;  %v1135_v45 = vpop.f32.mrf.mxu1 }
 0x16f   : > { %v3664_v13 = vadd.f32 %v1135_v45, %v910_v2 }
 0x170   : > { %v912_v41 = vpop.f32.mrf.mxu0  ;;  %v1137_v20 = vpop.f32.mrf.mxu1 }
 0x172   : > { %v915_v35 = vpop.f32.mrf.mxu0  ;;  %v1140_v46 = vpop.f32.mrf.mxu1 }
 0x173   : > { %v3666_v31 = vadd.f32 %v1140_v46, %v915_v35 }
 0x174   : > { %v917_v47 = vpop.f32.mrf.mxu0  ;;  %v1142_v55 = vpop.f32.mrf.mxu1 }
 0x176   : > { %v920_v51 = vpop.f32.mrf.mxu0  ;;  %v1145_v14 = vpop.f32.mrf.mxu1 }
 0x177   : > { %v3668_v62 = vadd.f32 %v1145_v14, %v920_v51 }
 0x178   : > { %v922_v0 = vpop.f32.mrf.mxu0  ;;  %v1147_v9 = vpop.f32.mrf.mxu1 }
 0x17a   : > { %v925_v3 = vpop.f32.mrf.mxu0  ;;  %v1150_v17 = vpop.f32.mrf.mxu1 }
 0x17b   : > { %v3670_v18 = vadd.f32 %v1150_v17, %v925_v3 }
 0x17c   : > { %v927_v29 = vpop.f32.mrf.mxu0  ;;  %v1152_v40 = vpop.f32.mrf.mxu1 }
 0x17e   : > { %v930_v63 = vpop.f32.mrf.mxu0  ;;  %v1155_v43 = vpop.f32.mrf.mxu1 }
 0x17f   : > { %v3672_v54 = vadd.f32 %v1155_v43, %v930_v63 }
 0x180   : > { %v932_v34 = vpop.f32.mrf.mxu0  ;;  %v1157_v6 = vpop.f32.mrf.mxu1 }
 0x182   : > { %v935_v23 = vpop.f32.mrf.mxu0  ;;  %v1160_v24 = vpop.f32.mrf.mxu1 }
 0x183   : > { %v3674_v28 = vadd.f32 %v1160_v24, %v935_v23 }
 0x184   : > { %v937_v39 = vpop.f32.mrf.mxu0  ;;  %v1162_v50 = vpop.f32.mrf.mxu1 }
 0x186   : > { %v940_v48 = vpop.f32.mrf.mxu0  ;;  %v1165_v58 = vpop.f32.mrf.mxu1 }
 0x187   : > { %v3676_v10 = vadd.f32 %v1165_v58, %v940_v48 }
 0x188   : > { %v942_v59 = vpop.f32.mrf.mxu0  ;;  %v1167_v16 = vpop.f32.mrf.mxu1 }
 0x189   : > { %4113 = vst [vmem:[#allocation4_spill] sm:$0xff] %v3676_v10 }
 0x18a   : > { %v945_v11 = vpop.f32.mrf.mxu0  ;;  %v1170_v44 = vpop.f32.mrf.mxu1 }
 0x18b   : > { %v3678_v36 = vadd.f32 %v1170_v44, %v945_v11 }
 0x18c   : > { %v947_v5 = vpop.f32.mrf.mxu0  ;;  %v1172_v49 = vpop.f32.mrf.mxu1 }
 0x18d   : > { %4114 = vst [vmem:[#allocation8_spill] sm:$0xff] %v3678_v36 }
 0x18e   : > { %v1240_v12 = vpop.f32.mrf.mxu0  ;;  %v1465_v2 = vpop.f32.mrf.mxu1 }
 0x18f   : > { %v1241_v45 = vadd.f32 %v1240_v12, %v3500_v60 }
 0x190   : > { %v1242_v41 = vpop.f32.mrf.mxu0  ;;  %v1467_v20 = vpop.f32.mrf.mxu1 }
 0x191   : > { %v3681_v35 = vadd.f32 %v1465_v2, %v1241_v45 }
 0x192   : > { %v1245_v46 = vpop.f32.mrf.mxu0  ;;  %v1470_v47 = vpop.f32.mrf.mxu1 }
 0x193   : > { %v1246_v55 = vadd.f32 %v1245_v46, %v3506_v4 }
 0x194   : > { %v1247_v51 = vpop.f32.mrf.mxu0  ;;  %v1472_v14 = vpop.f32.mrf.mxu1 }
 0x195   : > { %v3684_v0 = vadd.f32 %v1470_v47, %v1246_v55 }
 0x196   : > { %v1250_v9 = vpop.f32.mrf.mxu0  ;;  %v1475_v3 = vpop.f32.mrf.mxu1 }
 0x197   : > { %v1251_v17 = vadd.f32 %v1250_v9, %v3512_v57 }
 0x198   : > { %v1252_v29 = vpop.f32.mrf.mxu0  ;;  %v1477_v40 = vpop.f32.mrf.mxu1 }
 0x199   : > { %v3687_v63 = vadd.f32 %v1475_v3, %v1251_v17 }
 0x19a   : > { %v1255_v60 = vpop.f32.mrf.mxu0  ;;  %v1480_v43 = vpop.f32.mrf.mxu1 }
 0x19b   : > { %v1256_v34 = vadd.f32 %v1255_v60, %v3518_v32 }
 0x19c   : > { %v1257_v6 = vpop.f32.mrf.mxu0  ;;  %v1482_v23 = vpop.f32.mrf.mxu1 }
 0x19d   : > { %v3690_v24 = vadd.f32 %v1480_v43, %v1256_v34 }
 0x19e   : > { %v1260_v4 = vpop.f32.mrf.mxu0  ;;  %v1485_v39 = vpop.f32.mrf.mxu1 }
 0x19f   : > { %v1261_v50 = vadd.f32 %v1260_v4, %v3524_v61 }
 0x1a0   : > { %v1262_v48 = vpop.f32.mrf.mxu0  ;;  %v1487_v58 = vpop.f32.mrf.mxu1 }
 0x1a1   : > { %v3693_v59 = vadd.f32 %v1485_v39, %v1261_v50 }
 0x1a2   : > { %v1265_v57 = vpop.f32.mrf.mxu0  ;;  %v1490_v16 = vpop.f32.mrf.mxu1 }
 0x1a3   : > { %v1266_v11 = vadd.f32 %v1265_v57, %v3530_v1 }
 0x1a4   : > { %v1267_v44 = vpop.f32.mrf.mxu0  ;;  %v1492_v5 = vpop.f32.mrf.mxu1 }
 0x1a5   : > { %v3696_v49 = vadd.f32 %v1490_v16, %v1266_v11  ;;  %v4115_v16 = vld [vmem:[#allocation2_spill] sm:$0xff] }
 0x1a6   : > { %v1270_v32 = vpop.f32.mrf.mxu0  ;;  %v1495_v12 = vpop.f32.mrf.mxu1 }
 0x1a7   : > { %v1271_v2 = vadd.f32 %v1270_v32, %v3536_v22 }
 0x1a8   : > { %v1272_v45 = vpop.f32.mrf.mxu0  ;;  %v1497_v41 = vpop.f32.mrf.mxu1 }
 0x1a9   : > { %v3699_v20 = vadd.f32 %v1495_v12, %v1271_v2 }
 0x1aa   : > { %v1275_v61 = vpop.f32.mrf.mxu0  ;;  %v1500_v46 = vpop.f32.mrf.mxu1 }
 0x1ab   : > { %v1276_v47 = vadd.f32 %v1275_v61, %v3542_v27 }
 0x1ac   : > { %v1277_v55 = vpop.f32.mrf.mxu0  ;;  %v1502_v51 = vpop.f32.mrf.mxu1 }
 0x1ad   : > { %v3702_v14 = vadd.f32 %v1500_v46, %v1276_v47 }
 0x1ae   : > { %v1280_v1 = vpop.f32.mrf.mxu0  ;;  %v1505_v9 = vpop.f32.mrf.mxu1 }
 0x1af   : > { %v1281_v3 = vadd.f32 %v1280_v1, %v3548_v15 }
 0x1b0   : > { %v1282_v17 = vpop.f32.mrf.mxu0  ;;  %v1507_v29 = vpop.f32.mrf.mxu1 }
 0x1b1   : > { %v3705_v40 = vadd.f32 %v1505_v9, %v1281_v3 }
 0x1b2   : > { %v1285_v22 = vpop.f32.mrf.mxu0  ;;  %v1510_v60 = vpop.f32.mrf.mxu1 }
 0x1b3   : > { %v1286_v43 = vadd.f32 %v1285_v22, %v3554_v25 }
 0x1b4   : > { %v1287_v34 = vpop.f32.mrf.mxu0  ;;  %v1512_v6 = vpop.f32.mrf.mxu1 }
 0x1b5   : > { %v3708_v23 = vadd.f32 %v1510_v60, %v1286_v43 }
 0x1b6   : > { %v1290_v27 = vpop.f32.mrf.mxu0  ;;  %v1515_v4 = vpop.f32.mrf.mxu1 }
 0x1b7   : > { %v1291_v39 = vadd.f32 %v1290_v27, %v3563_v53 }
 0x1b8   : > { %v1292_v50 = vpop.f32.mrf.mxu0  ;;  %v1517_v48 = vpop.f32.mrf.mxu1 }
 0x1b9   : > { %v3711_v58 = vadd.f32 %v1515_v4, %v1291_v39 }
 0x1ba   : > { %v1295_v15 = vpop.f32.mrf.mxu0  ;;  %v1520_v57 = vpop.f32.mrf.mxu1 }
 0x1bb   : > { %v1296_v11 = vadd.f32 %v1295_v15, %v4115_v16 }
 0x1bc   : > { %v1297_v44 = vpop.f32.mrf.mxu0  ;;  %v1522_v5 = vpop.f32.mrf.mxu1 }
 0x1bd   : > { %v3714_v32 = vadd.f32 %v1520_v57, %v1296_v11 }
 0x1be   : > { %v1300_v25 = vpop.f32.mrf.mxu0  ;;  %v1525_v12 = vpop.f32.mrf.mxu1 }
 0x1bf   : > { %v1301_v2 = vadd.f32 %v1300_v25, %v3589_v42 }
 0x1c0   : > { %v1302_v45 = vpop.f32.mrf.mxu0  ;;  %v1527_v41 = vpop.f32.mrf.mxu1 }
 0x1c1   : > { %v3717_v61 = vadd.f32 %v1525_v12, %v1301_v2 }
 0x1c2   : > { %v1305_v53 = vpop.f32.mrf.mxu0  ;;  %v1530_v46 = vpop.f32.mrf.mxu1 }
 0x1c3   : > { %4116 = vst [vmem:[#allocation3_spill] sm:$0xff] %v3717_v61  ;;  %v1306_v47 = vadd.f32 %v1305_v53, %v3599_v7 }
 0x1c4   : > { %v1307_v55 = vpop.f32.mrf.mxu0  ;;  %v1532_v51 = vpop.f32.mrf.mxu1 }
 0x1c5   : > { %v3720_v1 = vadd.f32 %v1530_v46, %v1306_v47 }
 0x1c6   : > { %v1310_v9 = vpop.f32.mrf.mxu0  ;;  %v1535_v3 = vpop.f32.mrf.mxu1 }
 0x1c7   : > { %4117 = vst [vmem:[#allocation7_spill] sm:$0xff] %v3720_v1  ;;  %v1311_v17 = vadd.f32 %v1310_v9, %v3607_v33 }
 0x1c8   : > { %v1312_v29 = vpop.f32.mrf.mxu0  ;;  %v1537_v22 = vpop.f32.mrf.mxu1 }
 0x1c9   : > { %v3723_v60 = vadd.f32 %v1535_v3, %v1311_v17 }
 0x1ca   : > { %v1315_v42 = vpop.f32.mrf.mxu0  ;;  %v1540_v43 = vpop.f32.mrf.mxu1 }
 0x1cb   : > { %4118 = vst [vmem:[#allocation10_spill] sm:$0xff] %v3723_v60  ;;  %v1316_v34 = vadd.f32 %v1315_v42, %v3611_v52 }
 0x1cc   : > { %v1317_v6 = vpop.f32.mrf.mxu0  ;;  %v1542_v27 = vpop.f32.mrf.mxu1 }
 0x1cd   : > { %v3726_v4 = vadd.f32 %v1540_v43, %v1316_v34 }
 0x1ce   : > { %v1320_v7 = vpop.f32.mrf.mxu0  ;;  %v1545_v39 = vpop.f32.mrf.mxu1 }
 0x1cf   : > { %4119 = vst [vmem:[#allocation5_spill] sm:$0xff] %v3726_v4  ;;  %v1321_v50 = vadd.f32 %v1320_v7, %v3617_v37 }
 0x1d0   : > { %v1322_v48 = vpop.f32.mrf.mxu0  ;;  %v1547_v15 = vpop.f32.mrf.mxu1 }
 0x1d1   : > { %v3729_v57 = vadd.f32 %v1545_v39, %v1321_v50 }
 0x1d2   : > { %v1325_v33 = vpop.f32.mrf.mxu0  ;;  %v1550_v16 = vpop.f32.mrf.mxu1 }
 0x1d4   : > { %v1327_v11 = vpop.f32.mrf.mxu0  ;;  %v1552_v44 = vpop.f32.mrf.mxu1 }
 0x1d6   : > { %v1330_v5 = vpop.f32.mrf.mxu0  ;;  %v3731_v25 = vpop.f32.mrf.mxu1 }
 0x1d7   : > { %v1331_v36 = vadd.f32 %v1330_v5, %v3629_v38 }
 0x1d8   : > { %v1332_v52 = vpop.f32.mrf.mxu0  ;;  %v1557_v12 = vpop.f32.mrf.mxu1 }
 0x1d9   : > { %v1556_v5 = vadd.f32 %v3731_v25, %v1331_v36 }
 0x1da   : > { %v1335_v2 = vpop.f32.mrf.mxu0  ;;  %v3733_v45 = vpop.f32.mrf.mxu1 }
 0x1dc   : > { %v1337_v41 = vpop.f32.mrf.mxu0  ;;  %v1562_v53 = vpop.f32.mrf.mxu1 }
 0x1de   : > { %v3735_v46 = vpop.f32.mrf.mxu0  ;;  %v3737_v37 = vpop.f32.mrf.mxu1 }
 0x1df   : > { %v1341_v36 = vadd.f32 %v3735_v46, %v3641_v30 }
 0x1e0   : > { %v1342_v47 = vpop.f32.mrf.mxu0  ;;  %v1567_v55 = vpop.f32.mrf.mxu1 }
 0x1e2   : > { %v1345_v51 = vpop.f32.mrf.mxu0  ;;  %v3739_v9 = vpop.f32.mrf.mxu1 }
 0x1e4   : > { %v1347_v3 = vpop.f32.mrf.mxu0  ;;  %v1572_v17 = vpop.f32.mrf.mxu1 }
 0x1e6   : > { %v3741_v29 = vpop.f32.mrf.mxu0  ;;  %v3743_v22 = vpop.f32.mrf.mxu1 }
 0x1e8   : > { %v1352_v42 = vpop.f32.mrf.mxu0  ;;  %v1577_v43 = vpop.f32.mrf.mxu1 }
 0x1ea   : > { %v3745_v34 = vpop.f32.mrf.mxu0  ;;  %v3747_v6 = vpop.f32.mrf.mxu1 }
 0x1ec   : > { %v1357_v27 = vpop.f32.mrf.mxu0  ;;  %v1582_v7 = vpop.f32.mrf.mxu1 }
 0x1ee   : > { %v3749_v39 = vpop.f32.mrf.mxu0  ;;  %v3751_v50 = vpop.f32.mrf.mxu1 }
 0x1f0   : > { %v1362_v48 = vpop.f32.mrf.mxu0  ;;  %v1587_v15 = vpop.f32.mrf.mxu1 }
 0x1f2   : > { %v3753_v11 = vpop.f32.mrf.mxu0  ;;  %v3755_v44 = vpop.f32.mrf.mxu1 }
 0x1f4   : > { %v1367_v52 = vpop.f32.mrf.mxu0  ;;  %v1592_v12 = vpop.f32.mrf.mxu1 }
 0x1f6   : > { %v3757_v41 = vpop.f32.mrf.mxu0  ;;  %v3759_v53 = vpop.f32.mrf.mxu1 }
 0x1f8   : > { %v1372_v47 = vpop.f32.mrf.mxu0  ;;  %v1597_v55 = vpop.f32.mrf.mxu1 }
 0x1fa   : > { %v3761_v3 = vpop.f32.mrf.mxu0  ;;  %v3763_v17 = vpop.f32.mrf.mxu1 }
 0x1fc   : > { %v1377_v42 = vpop.f32.mrf.mxu0  ;;  %v1602_v43 = vpop.f32.mrf.mxu1 }
 0x1fd   : > { %v1326_v43 = vadd.f32 %v1325_v33, %v3623_v21 }
 0x1fe   : > { %v3765_v27 = vpop.f32.mrf.mxu0  ;;  %v3767_v7 = vpop.f32.mrf.mxu1 }
 0x1ff   : > { %4120 = vst [vmem:[#allocation9_spill] sm:$0xff] %v3767_v7  ;;  %v1551_v7 = vadd.f32 %v1550_v16, %v1326_v43 }
 0x200   : > { %v1382_v48 = vpop.f32.mrf.mxu0  ;;  %v1607_v15 = vpop.f32.mrf.mxu1 }
 0x202   : > { %v3769_v52 = vpop.f32.mrf.mxu0  ;;  %v3771_v12 = vpop.f32.mrf.mxu1 }
 0x204   : > { %v1387_v60 = vpop.f32.mrf.mxu0  ;;  %v1612_v47 = vpop.f32.mrf.mxu1 }
 0x205   : > { %v1336_v60 = vadd.f32 %v1335_v2, %v3635_v8 }
 0x206   : > { %v3773_v55 = vpop.f32.mrf.mxu0  ;;  %v3775_v4 = vpop.f32.mrf.mxu1 }
 0x207   : > { %v1561_v2 = vadd.f32 %v3733_v45, %v1336_v60 }
 0x208   : > { %v1392_v61 = vpop.f32.mrf.mxu0  ;;  %v1617_v42 = vpop.f32.mrf.mxu1 }
 0x20a   : > { %v3778_v10 = vpop.f32.mrf.mxu0  ;;  %v3780_v1 = vpop.f32.mrf.mxu1 }
 0x20c   : > { %v1397_v48 = vpop.f32.mrf.mxu0  ;;  %v1622_v15 = vpop.f32.mrf.mxu1 }
 0x20e   : > { %v2214_v21 = vpop.f32.mrf.mxu0  ;;  %v2238_v61 = vpop.f32.mrf.mxu1 }
 0x20f   : > { %v1696_v33 = vadd.f32 %v2214_v21, %v3684_v0  ;;  %v3791_v47 = vadd.f32 %v2238_v61, %v1551_v7  ;;  %v1346_v0 = vadd.f32 %v1345_v51, %v3649_v19 }
 0x210   : > { %v1690_v16 = vpop.f32.mrf.mxu0  ;;  %v1770_v42 = vpop.f32.mrf.mxu1 }
 0x211   : > { %1850 = vst [vmem:[%s3788_s19 + $0x8] sm:$0xff] %v1696_v33  ;;  %1866 = vst [vmem:[%s3788_s19 + $0x88] sm:$0xff] %v3791_v47  ;;  %v1691_v38 = vadd.f32 %v1690_v16, %v3681_v35  ;;  %v3798_v8 = vadd.f32 %v1770_v42, %v3729_v57  ;;  %v1919_v48 = vmul.f32 %v1696_v33, %v1696_v33 }
 0x212   : > { %v2217_v7 = vpop.f32.mrf.mxu0  ;;  %v2241_v43 = vpop.f32.mrf.mxu1  ;;  %v1571_v61 = vadd.f32 %v3739_v9, %v1346_v0  ;;  %v1566_v42 = vadd.f32 %v3737_v37, %v1341_v36  ;;  %v1351_v9 = vadd.f32 %v3741_v29, %v3657_v56 }
 0x213   : > { %1849 = vst [vmem:[%s3788_s19] sm:$0xff] %v1691_v38  ;;  %v1881_v15 = vadd.f32 %v1696_v33, %v1691_v38  ;;  %v1918_v21 = vmul.f32 %v1691_v38, %v1691_v38  ;;  %1865 = vst [vmem:[%s3788_s19 + $0x80] sm:$0xff] %v3798_v8  ;;  %v1706_v35 = vadd.f32 %v2217_v7, %v3690_v24 }
 0x214   : > { %v3809_v57 = vadd.f32 %v2241_v43, %v1561_v2  ;;  %v1700_v25 = vpop.f32.mrf.mxu0  ;;  %v1780_v19 = vpop.f32.mrf.mxu1  ;;  %v1356_v33 = vadd.f32 %v3745_v34, %v3662_v26 }
 0x215   : > { %v1950_v45 = vadd.f32 %v1919_v48, %v1918_v21  ;;  %1852 = vst [vmem:[%s3788_s19 + $0x18] sm:$0xff] %v1706_v35  ;;  %v1701_v51 = vadd.f32 %v1700_v25, %v3687_v63  ;;  %v3813_v60 = vadd.f32 %v1780_v19, %v1556_v5  ;;  %v1921_v5 = vmul.f32 %v1706_v35, %v1706_v35 }
 0x216   : > { %1868 = vst [vmem:[%s3788_s19 + $0x98] sm:$0xff] %v3809_v57  ;;  %v2220_v30 = vpop.f32.mrf.mxu0  ;;  %v2244_v24 = vpop.f32.mrf.mxu1  ;;  %v1581_v43 = vadd.f32 %v3747_v6, %v1356_v33  ;;  %v1361_v6 = vadd.f32 %v3749_v39, %v3664_v13 }
 0x217   : > { %1851 = vst [vmem:[%s3788_s19 + $0x10] sm:$0xff] %v1701_v51  ;;  %v1882_v46 = vadd.f32 %v1881_v15, %v1701_v51  ;;  %v1920_v16 = vmul.f32 %v1701_v51, %v1701_v51  ;;  %1867 = vst [vmem:[%s3788_s19 + $0x90] sm:$0xff] %v3813_v60  ;;  %v1716_v63 = vadd.f32 %v2220_v30, %v3696_v49 }
 0x218   : > { %v3827_v26 = vadd.f32 %v2244_v24, %v1571_v61  ;;  %v1710_v34 = vpop.f32.mrf.mxu0  ;;  %v1790_v38 = vpop.f32.mrf.mxu1  ;;  %v1366_v49 = vadd.f32 %v3753_v11, %v3666_v31 }
 0x219   : > { %v1951_v2 = vadd.f32 %v1950_v45, %v1920_v16  ;;  %1854 = vst [vmem:[%s3788_s19 + $0x28] sm:$0xff] %v1716_v63  ;;  %v1711_v0 = vadd.f32 %v1710_v34, %v3693_v59  ;;  %v1883_v7 = vadd.f32 %v1882_v46, %v1706_v35  ;;  %v3836_v37 = vadd.f32 %v1790_v38, %v1566_v42 }
 0x21a   : > { %1870 = vst [vmem:[%s3788_s19 + $0xa8] sm:$0xff] %v3827_v26  ;;  %v2223_v56 = vpop.f32.mrf.mxu0  ;;  %v2247_v29 = vpop.f32.mrf.mxu1  ;;  %v1576_v35 = vadd.f32 %v3743_v22, %v1351_v9  ;;  %v1923_v25 = vmul.f32 %v1716_v63, %v1716_v63  ;;  %v1376_v22 = vadd.f32 %v3761_v3, %v3670_v18  ;;  %v1586_v46 = vadd.f32 %v3751_v50, %v1361_v6 }
 0x21b   : > { %1853 = vst [vmem:[%s3788_s19 + $0x20] sm:$0xff] %v1711_v0  ;;  %v1884_v48 = vadd.f32 %v1883_v7, %v1711_v0  ;;  %v1922_v15 = vmul.f32 %v1711_v0, %v1711_v0  ;;  %v1952_v21 = vadd.f32 %v1951_v2, %v1921_v5  ;;  %v1726_v59 = vadd.f32 %v2223_v56, %v3702_v14 }
 0x21c   : > { %1869 = vst [vmem:[%s3788_s19 + $0xa0] sm:$0xff] %v3836_v37  ;;  %v3845_v31 = vadd.f32 %v2247_v29, %v1581_v43  ;;  %v1720_v11 = vpop.f32.mrf.mxu0  ;;  %v1800_v36 = vpop.f32.mrf.mxu1  ;;  %v1591_v14 = vadd.f32 %v3755_v44, %v1366_v49  ;;  %v1371_v44 = vadd.f32 %v3757_v41, %v3668_v62  ;;  %v1386_v50 = vadd.f32 %v3769_v52, %v3674_v28 }
 0x21d   : > { %v1953_v19 = vadd.f32 %v1952_v21, %v1922_v15  ;;  %1856 = vst [vmem:[%s3788_s19 + $0x38] sm:$0xff] %v1726_v59  ;;  %v1721_v45 = vadd.f32 %v1720_v11, %v3699_v20  ;;  %v1885_v51 = vadd.f32 %v1884_v48, %v1716_v63  ;;  %v3854_v13 = vadd.f32 %v1800_v36, %v1576_v35  ;;  %v4122_v11 = vld [vmem:[#allocation7_spill] sm:$0xff]  ;;  %v4123_v36 = vld [vmem:[#allocation9_spill] sm:$0xff] }
 0x21e   : > { %1872 = vst [vmem:[%s3788_s19 + $0xb8] sm:$0xff] %v3845_v31  ;;  %v2226_v39 = vpop.f32.mrf.mxu0  ;;  %v2250_v61 = vpop.f32.mrf.mxu1  ;;  %v1925_v63 = vmul.f32 %v1726_v59, %v1726_v59  ;;  %v1596_v7 = vadd.f32 %v3759_v53, %v1371_v44  ;;  %v4121_v53 = vld [vmem:[#allocation8_spill] sm:$0xff] }
 0x21f   : > { %1855 = vst [vmem:[%s3788_s19 + $0x30] sm:$0xff] %v1721_v45  ;;  %v1886_v33 = vadd.f32 %v1885_v51, %v1721_v45  ;;  %v1924_v30 = vmul.f32 %v1721_v45, %v1721_v45  ;;  %v1954_v24 = vadd.f32 %v1953_v19, %v1923_v25  ;;  %v1736_v20 = vadd.f32 %v2226_v39, %v3708_v23  ;;  %v4125_v39 = vld [vmem:[#allocation3_spill] sm:$0xff] }
 0x220   : > { %1871 = vst [vmem:[%s3788_s19 + $0xb0] sm:$0xff] %v3854_v13  ;;  %v3863_v18 = vadd.f32 %v2250_v61, %v1591_v14  ;;  %v1730_v3 = vpop.f32.mrf.mxu0  ;;  %v1810_v16 = vpop.f32.mrf.mxu1  ;;  %v1601_v23 = vadd.f32 %v3763_v17, %v1376_v22  ;;  %v1381_v17 = vadd.f32 %v3765_v27, %v3672_v54  ;;  %v1396_v15 = vadd.f32 %v3778_v10, %v4121_v53 }
 0x221   : > { %v1955_v42 = vadd.f32 %v1954_v24, %v1924_v30  ;;  %1858 = vst [vmem:[%s3788_s19 + $0x48] sm:$0xff] %v1736_v20  ;;  %v1731_v9 = vadd.f32 %v1730_v3, %v3705_v40  ;;  %v1887_v34 = vadd.f32 %v1886_v33, %v1726_v59  ;;  %v3872_v62 = vadd.f32 %v1810_v16, %v1586_v46  ;;  %v4126_v16 = vld [vmem:[#allocation5_spill] sm:$0xff] }
 0x222   : > { %1874 = vst [vmem:[%s3788_s19 + $0xc8] sm:$0xff] %v3863_v18  ;;  %v2229_v41 = vpop.f32.mrf.mxu0  ;;  %v2253_v38 = vpop.f32.mrf.mxu1  ;;  %v1927_v49 = vmul.f32 %v1736_v20, %v1736_v20  ;;  %v1606_v25 = vadd.f32 %v4123_v36, %v1381_v17  ;;  %v1621_v30 = vadd.f32 %v3780_v1, %v1396_v15  ;;  %v1936_v53 = vmul.f32 %v3813_v60, %v3813_v60 }
 0x223   : > { %1857 = vst [vmem:[%s3788_s19 + $0x40] sm:$0xff] %v1731_v9  ;;  %v1888_v5 = vadd.f32 %v1887_v34, %v1731_v9  ;;  %v1926_v2 = vmul.f32 %v1731_v9, %v1731_v9  ;;  %v1956_v0 = vadd.f32 %v1955_v42, %v1925_v63  ;;  %v1746_v40 = vadd.f32 %v2229_v41, %v3714_v32  ;;  %v4127_v41 = vld [vmem:[#allocation10_spill] sm:$0xff] }
 0x224   : > { %1873 = vst [vmem:[%s3788_s19 + $0xc0] sm:$0xff] %v3872_v62  ;;  %v3881_v28 = vadd.f32 %v2253_v38, %v1601_v23  ;;  %v1740_v52 = vpop.f32.mrf.mxu0  ;;  %v1820_v43 = vpop.f32.mrf.mxu1  ;;  %v1611_v32 = vadd.f32 %v3771_v12, %v1386_v50  ;;  %v4124_v12 = vld [vmem:[#allocation4_spill] sm:$0xff] }
 0x225   : > { %v1957_v56 = vadd.f32 %v1956_v0, %v1926_v2  ;;  %1860 = vst [vmem:[%s3788_s19 + $0x58] sm:$0xff] %v1746_v40  ;;  %v1741_v29 = vadd.f32 %v1740_v52, %v3711_v58  ;;  %v1889_v48 = vadd.f32 %v1888_v5, %v1736_v20  ;;  %v3890_v54 = vadd.f32 %v1820_v43, %v1596_v7 }
 0x226   : > { %1876 = vst [vmem:[%s3788_s19 + $0xd8] sm:$0xff] %v3881_v28  ;;  %v2232_v27 = vpop.f32.mrf.mxu0  ;;  %v2256_v21 = vpop.f32.mrf.mxu1  ;;  %v1391_v10 = vadd.f32 %v3773_v55, %v4124_v12  ;;  %v1929_v14 = vmul.f32 %v1746_v40, %v1746_v40  ;;  %v1934_v43 = vmul.f32 %v3798_v8, %v3798_v8 }
 0x227   : > { %1859 = vst [vmem:[%s3788_s19 + $0x50] sm:$0xff] %v1741_v29  ;;  %v1890_v59 = vadd.f32 %v1889_v48, %v1741_v29  ;;  %v1928_v35 = vmul.f32 %v1741_v29, %v1741_v29  ;;  %v1958_v6 = vadd.f32 %v1957_v56, %v1927_v49  ;;  %v1756_v58 = vadd.f32 %v2232_v27, %v4122_v11 }
 0x228   : > { %1875 = vst [vmem:[%s3788_s19 + $0xd0] sm:$0xff] %v3890_v54  ;;  %v3899_v19 = vadd.f32 %v2256_v21, %v1611_v32  ;;  %v1750_v45 = vpop.f32.mrf.mxu0  ;;  %v1830_v51 = vpop.f32.mrf.mxu1  ;;  %v1616_v42 = vadd.f32 %v3775_v4, %v1391_v10  ;;  %v1935_v29 = vmul.f32 %v3791_v47, %v3791_v47  ;;  %v1937_v21 = vmul.f32 %v3809_v57, %v3809_v57 }
 0x229   : > { %v1959_v22 = vadd.f32 %v1958_v6, %v1928_v35  ;;  %1862 = vst [vmem:[%s3788_s19 + $0x68] sm:$0xff] %v1756_v58  ;;  %v1751_v61 = vadd.f32 %v1750_v45, %v4125_v39  ;;  %v1891_v33 = vadd.f32 %v1890_v59, %v1746_v40  ;;  %v3906_v24 = vadd.f32 %v1830_v51, %v1606_v25 }
 0x22a   : > { %1878 = vst [vmem:[%s3788_s19 + $0xe8] sm:$0xff] %v3899_v19  ;;  %v2235_v55 = vpop.f32.mrf.mxu0  ;;  %v2259_v20 = vpop.f32.mrf.mxu1  ;;  %v1931_v23 = vmul.f32 %v1756_v58, %v1756_v58 }
 0x22b   : > { %1861 = vst [vmem:[%s3788_s19 + $0x60] sm:$0xff] %v1751_v61  ;;  %v1892_v46 = vadd.f32 %v1891_v33, %v1751_v61  ;;  %v1930_v44 = vmul.f32 %v1751_v61, %v1751_v61  ;;  %v1960_v3 = vadd.f32 %v1959_v22, %v1929_v14  ;;  %v1766_v63 = vadd.f32 %v2235_v55, %v4126_v16 }
 0x22c   : > { %1877 = vst [vmem:[%s3788_s19 + $0xe0] sm:$0xff] %v3906_v24  ;;  %v3913_v1 = vadd.f32 %v2259_v20, %v1621_v30  ;;  %v1760_v9 = vpop.f32.mrf.mxu0  ;;  %v1840_v34 = vpop.f32.mrf.mxu1 }
 0x22d   : > { %v1961_v50 = vadd.f32 %v1960_v3, %v1930_v44  ;;  %1864 = vst [vmem:[%s3788_s19 + $0x78] sm:$0xff] %v1766_v63  ;;  %v1761_v38 = vadd.f32 %v1760_v9, %v4127_v41  ;;  %v1893_v5 = vadd.f32 %v1892_v46, %v1756_v58  ;;  %v1841_v2 = vadd.f32 %v1840_v34, %v1616_v42 }
 0x22e   : > { %1880 = vst [vmem:[%s3788_s19 + $0xf8] sm:$0xff] %v3913_v1  ;;  %v1933_v7 = vmul.f32 %v1766_v63, %v1766_v63 }
 0x22f   : > { %1863 = vst [vmem:[%s3788_s19 + $0x70] sm:$0xff] %v1761_v38  ;;  %v1894_v0 = vadd.f32 %v1893_v5, %v1761_v38  ;;  %v1932_v40 = vmul.f32 %v1761_v38, %v1761_v38  ;;  %v1962_v4 = vadd.f32 %v1961_v50, %v1931_v23  ;;  %1879 = vst [vmem:[%s3788_s19 + $0xf0] sm:$0xff] %v1841_v2 }
 0x230   : > { %v1948_v16 = vmul.f32 %v1841_v2, %v1841_v2 }
 0x231   : > { %v1895_v17 = vadd.f32 %v1894_v0, %v1766_v63  ;;  %v1963_v52 = vadd.f32 %v1962_v4, %v1932_v40 }
 0x233   : > { %v1896_v49 = vadd.f32 %v1895_v17, %v3798_v8  ;;  %v1964_v56 = vadd.f32 %v1963_v52, %v1933_v7  ;;  %v1938_v8 = vmul.f32 %v3836_v37, %v3836_v37 }
 0x235   : > { %v1897_v48 = vadd.f32 %v1896_v49, %v3791_v47  ;;  %v1965_v32 = vadd.f32 %v1964_v56, %v1934_v43  ;;  %v1939_v47 = vmul.f32 %v3827_v26, %v3827_v26 }
 0x237   : > { %v1898_v15 = vadd.f32 %v1897_v48, %v3813_v60  ;;  %v1966_v27 = vadd.f32 %v1965_v32, %v1935_v29  ;;  %v1940_v60 = vmul.f32 %v3854_v13, %v3854_v13 }
 0x239   : > { %v1899_v59 = vadd.f32 %v1898_v15, %v3809_v57  ;;  %v1967_v35 = vadd.f32 %v1966_v27, %v1936_v53  ;;  %v1941_v57 = vmul.f32 %v3845_v31, %v3845_v31 }
 0x23b   : > { %v1900_v6 = vadd.f32 %v1899_v59, %v3836_v37  ;;  %v1968_v11 = vadd.f32 %v1967_v35, %v1937_v21  ;;  %v1942_v37 = vmul.f32 %v3872_v62, %v3872_v62 }
 0x23d   : > { %v1901_v58 = vadd.f32 %v1900_v6, %v3827_v26  ;;  %v1969_v36 = vadd.f32 %v1968_v11, %v1938_v8  ;;  %v1943_v26 = vmul.f32 %v3863_v18, %v3863_v18 }
 0x23f   : > { %v1970_v25 = vadd.f32 %v1969_v36, %v1939_v47  ;;  %v1902_v12 = vadd.f32 %v1901_v58, %v3854_v13  ;;  %v1944_v13 = vmul.f32 %v3890_v54, %v3890_v54 }
 0x241   : > { %v1903_v10 = vadd.f32 %v1902_v12, %v3845_v31  ;;  %v1971_v45 = vadd.f32 %v1970_v25, %v1940_v60  ;;  %v1945_v31 = vmul.f32 %v3881_v28, %v3881_v28 }
 0x243   : > { %v1904_v51 = vadd.f32 %v1903_v10, %v3872_v62  ;;  %v1972_v14 = vadd.f32 %v1971_v45, %v1941_v57  ;;  %v1946_v62 = vmul.f32 %v3906_v24, %v3906_v24 }
 0x245   : > { %v1905_v22 = vadd.f32 %v1904_v51, %v3863_v18  ;;  %v1973_v39 = vadd.f32 %v1972_v14, %v1942_v37  ;;  %v1947_v18 = vmul.f32 %v3899_v19, %v3899_v19 }
 0x247   : > { %v1906_v61 = vadd.f32 %v1905_v22, %v3890_v54  ;;  %v1974_v33 = vadd.f32 %v1973_v39, %v1943_v26 }
 0x249   : > { %v1907_v30 = vadd.f32 %v1906_v61, %v3881_v28  ;;  %v1975_v55 = vadd.f32 %v1974_v33, %v1944_v13  ;;  %v1949_v28 = vmul.f32 %v3913_v1, %v3913_v1 }
 0x24b   : > { %v1908_v20 = vadd.f32 %v1907_v30, %v3906_v24  ;;  %v1976_v46 = vadd.f32 %v1975_v55, %v1945_v31 }
 0x24d   : > { %v1909_v44 = vadd.f32 %v1908_v20, %v3899_v19  ;;  %v1977_v3 = vadd.f32 %v1976_v46, %v1946_v62 }
 0x24f   : > { %v1910_v54 = vadd.f32 %v1909_v44, %v1841_v2  ;;  %v1978_v63 = vadd.f32 %v1977_v3, %v1947_v18 }
 0x251   : > { %v1911_v42 = vadd.f32 %v1910_v54, %v3913_v1  ;;  %v1979_v9 = vadd.f32 %v1978_v63, %v1948_v16 }
 0x253   : > { %v1912_v34 = vrot.slane %v1911_v42, 4  ;;  %v1980_v23 = vadd.f32 %v1979_v9, %v1949_v28 }
 0x255   : > { %v1913_v24 = vadd.f32 %v1912_v34, %v1911_v42  ;;  %v1981_v50 = vrot.slane %v1980_v23, 4 }
 0x257   : > { %v1914_v41 = vrot.slane %v1913_v24, 2  ;;  %v1982_v38 = vadd.f32 %v1981_v50, %v1980_v23 }
 0x259   : > { %v1915_v5 = vadd.f32 %v1914_v41, %v1913_v24  ;;  %v1983_v0 = vrot.slane %v1982_v38, 2 }
 0x25b   : > { %v1916_v19 = vrot.slane %v1915_v5, 1  ;;  %v1984_v40 = vadd.f32 %v1983_v0, %v1982_v38 }
 0x25d   : > { %v1985_v4 = vrot.slane %v1984_v40, 1  ;;  %v1917_v2 = vadd.f32 %v1916_v19, %v1915_v5 }
 0x25f   : > { %v1986_v1 = vadd.f32 %v1985_v4, %v1984_v40 }
 0x261   : > { %v1988_v7 = vsel %vm1987_vm2, %v1917_v2, %v1986_v1 }
 0x262   : > { %1989 = vst [vmem:[%s214_s23] sm:$0x3] %v1988_v7 }
 0x263 PF: > { %s14_s14 = sadd.s32 1, %s2340_s14   ;;  %s4128_s12 = smov %s2336_s13 }
 0x264   : > { %p11_p5 = scmp.ge.s32.totalorder %s14_s14, 4   ;;  %s4129_s13 = smov %s4131_s15 }
 0x266   :  { %13 = sbr.rel (!%p11_p5) target bundleno = 2 (0x2), region = 71 }

// kernel: decoder_block_forward.3
= control target key start
LH: loop header
LB: loop body
LE: loop exit
PB: predicated region body
PF: predicated region fallthrough
CT: control target
= control target key end

     0   :  { %s3357_s12 = smov 0   ;;  %s3359_s13 = smov 0   ;;  %s5354_s0 = inlined_call_operand.vmem [shape: f32[2,17,17,128], index: 0, kind: input, shape index: {}]   ;;  %s5355_s1 = inlined_call_operand.vmem [shape: f32[1152,128], index: 1, kind: input, shape index: {}]   ;;  %s5356_s2 = inlined_call_operand.vmem [shape: f32[4,2,16,16,128], index: 2, kind: output, shape index: {0}]   ;;  %s5357_s3 = inlined_call_operand.vmem [shape: f32[2,1,2,128], index: 3, kind: output, shape index: {1}]  }
   0x1   :  { %s3361_s14 = smov 0   ;;  %s3363_s15 = smov 0  }
   0x2   :  { %s3365_s16 = smov 0  }
   0x3 LB: > { %s2918_s17 = sadd.s32 4294967295, %s3334_s16   ;;  %s26_s18 = sadd.s32 1, %s3330_s15  ;;  %s3334_s16 = sphi %s3365_s16, %s14_s16   ;;  %s3330_s15 = sphi %s3363_s15, %s5415_s15   ;;  %s3326_s14 = sphi %s3361_s14, %s5414_s14   ;;  %s3322_s13 = sphi %s3359_s13, %s5413_s13   ;;  %s3318_s12 = sphi %s3357_s12, %s5412_s12  }
   0x4   : > { %p28_p0 = scmp.ge.s32.totalorder %s26_s18, 2  ;;  %s82_s19 = sadd.s32 1, %s3322_s13 }
   0x5   : > { %p92_p1 = scmp.ne.s32.totalorder %s3322_s13, %s3318_s12  ;;  %p93_p2 = scmp.eq.s32.totalorder %s2918_s17, 1 }
   0x6   : > { %s5417_s18 = smov (%p28_p0, %s26_s18), 0  ;;  %p2922_p4 = scmp.ge.s32.totalorder %s3334_s16, 1 }
   0x7   : > { %p3389_p3 = por %p93_p2, %p92_p1  ;;  %s77_s21 = ssub.s32 %s3330_s15, %s5417_s18 }
   0x8   : > { %p156_p5 = scmp.lt.s32.totalorder %s3334_s16, 3  ;;  %p80_p6 = scmp.eq.s32.totalorder %s77_s21, 0 }
   0xa   : > { %p157_p7 = pnand %p2922_p4, %p156_p5 }
   0xb   : > { %s3398_s22 = scalar_select %p80_p6, %s3322_s13, %s82_s19  }
   0xc   : > { %160 = sbr.rel (%p157_p7) target bundleno = 619 (0x26b), region = 28 }
  0x11   : > { %v439_v0 = vld [vmem:[%s5355_s1 + $0x78] sm:$0xff]  ;;  %v438_v2 = vld [vmem:[%s5355_s1 + $0x70] sm:$0xff]  ;;  %v5358_v3 = vmov 0.0   ;;  %v437_v5 = vld [vmem:[%s5355_s1 + $0x68] sm:$0xff]  ;;  %p186_p8 = scmp.lt.s32.totalorder %s3326_s14, 1  ;;  %vm301_vm0 = vcmask 1046528  }
  0x12   : > { %v820_v1 = vld [vmem:[%s5355_s1 + $0xf8] sm:$0xff]  ;;  %3076 = vmatprep.subr.mxu0 %v439_v0  ;;  %837 = vmatprep.subr.mxu1 %v5358_v3  ;;  %v819_v4 = vld [vmem:[%s5355_s1 + $0xf0] sm:$0xff]  ;;  %v818_v6 = vld [vmem:[%s5355_s1 + $0xe8] sm:$0xff]  ;;  %s174_s28 = sand.u32 1, %s3318_s12   ;;  %vm2256_vm1 = vcmask 1040384  }
  0x13   : > { %3077 = vmatpush3.msra.mxu0 %v439_v0  ;;  %838 = vmatpush1.msra.mxu1 %v820_v1  ;;  %v436_v7 = vld [vmem:[%s5355_s1 + $0x60] sm:$0xff]  ;;  %v435_v9 = vld [vmem:[%s5355_s1 + $0x58] sm:$0xff]  ;;  %v434_v11 = vld [vmem:[%s5355_s1 + $0x50] sm:$0xff]  ;;  %s3474_s27 = scalar_select %p186_p8, %s3326_s14, 1 }
  0x14   : > { %3078 = vmatprep.subr.mxu0 %v438_v2  ;;  %839 = vmatprep.subr.mxu1 %v5358_v3  ;;  %v817_v8 = vld [vmem:[%s5355_s1 + $0xe0] sm:$0xff]  ;;  %v816_v10 = vld [vmem:[%s5355_s1 + $0xd8] sm:$0xff]  ;;  %v815_v12 = vld [vmem:[%s5355_s1 + $0xd0] sm:$0xff]  ;;  %s2923_s12 = sshll.u32 %s174_s28, 10 }
  0x15   : > { %3079 = vmatpush3.msra.mxu0 %v438_v2  ;;  %840 = vmatpush1.msra.mxu1 %v819_v4  ;;  %v433_v13 = vld [vmem:[%s5355_s1 + $0x48] sm:$0xff]  ;;  %v432_v15 = vld [vmem:[%s5355_s1 + $0x40] sm:$0xff]  ;;  %v431_v17 = vld [vmem:[%s5355_s1 + $0x38] sm:$0xff]  ;;  %s3220_s9 = smul.u32 408, %s3474_s27 }
  0x16   : > { %3080 = vmatprep.subr.mxu0 %v437_v5  ;;  %841 = vmatprep.subr.mxu1 %v5358_v3  ;;  %v814_v14 = vld [vmem:[%s5355_s1 + $0xc8] sm:$0xff]  ;;  %v813_v16 = vld [vmem:[%s5355_s1 + $0xc0] sm:$0xff]  ;;  %v812_v18 = vld [vmem:[%s5355_s1 + $0xb8] sm:$0xff] }
  0x17   : > { %3081 = vmatpush3.msra.mxu0 %v437_v5  ;;  %842 = vmatpush1.msra.mxu1 %v818_v6  ;;  %v430_v19 = vld [vmem:[%s5355_s1 + $0x30] sm:$0xff]  ;;  %v429_v21 = vld [vmem:[%s5355_s1 + $0x28] sm:$0xff]  ;;  %v428_v23 = vld [vmem:[%s5355_s1 + $0x20] sm:$0xff]  ;;  %s3508_s29 = scalar_lea.vmem %s5354_s0, %s3220_s9  ;;  %s4470_s9 = scalar_lea.vmem [#allocation2], %s2923_s12 }
  0x18   : > { %3082 = vmatprep.subr.mxu0 %v436_v7  ;;  %843 = vmatprep.subr.mxu1 %v5358_v3  ;;  %v811_v20 = vld [vmem:[%s5355_s1 + $0xb0] sm:$0xff]  ;;  %v810_v22 = vld [vmem:[%s5355_s1 + $0xa8] sm:$0xff]  ;;  %v809_v24 = vld [vmem:[%s5355_s1 + $0xa0] sm:$0xff] }
  0x19   : > { %3083 = vmatpush3.msra.mxu0 %v436_v7  ;;  %844 = vmatpush1.msra.mxu1 %v817_v8  ;;  %v427_v25 = vld [vmem:[%s5355_s1 + $0x18] sm:$0xff]  ;;  %v426_v27 = vld [vmem:[%s5355_s1 + $0x10] sm:$0xff]  ;;  %v425_v29 = vld [vmem:[%s5355_s1 + $0x8] sm:$0xff] }
  0x1a   : > { %3084 = vmatprep.subr.mxu0 %v435_v9  ;;  %845 = vmatprep.subr.mxu1 %v5358_v3  ;;  %v808_v26 = vld [vmem:[%s5355_s1 + $0x98] sm:$0xff]  ;;  %v807_v28 = vld [vmem:[%s5355_s1 + $0x90] sm:$0xff]  ;;  %v806_v30 = vld [vmem:[%s5355_s1 + $0x88] sm:$0xff] }
  0x1b   : > { %3085 = vmatpush3.msra.mxu0 %v435_v9  ;;  %846 = vmatpush1.msra.mxu1 %v816_v10  ;;  %v424_v31 = vld [vmem:[%s5355_s1] sm:$0xff]  ;;  %v3525_v34 = vld [vmem:[%s3508_s29 + $0x8] sm:$0xff]  ;;  %v836_v35 = vld [vmem:[%s5355_s1 + $0x178] sm:$0xff] }
  0x1c   : > { %3086 = vmatprep.subr.mxu0 %v434_v11  ;;  %847 = vmatprep.subr.mxu1 %v5358_v3  ;;  %v3519_v32 = vld [vmem:[%s3508_s29] sm:$0xff]  ;;  %v1218_v36 = vld [vmem:[%s5355_s1 + $0x1f8] sm:$0xff]  ;;  %v835_v38 = vld [vmem:[%s5355_s1 + $0x170] sm:$0xff] }
  0x1d   : > { %3087 = vmatpush3.msra.mxu0 %v434_v11  ;;  %848 = vmatpush1.msra.mxu1 %v815_v12  ;;  %v805_v33 = vld [vmem:[%s5355_s1 + $0x80] sm:$0xff]  ;;  %v3539_v37 = vld [vmem:[%s3508_s29 + $0x18] sm:$0xff]  ;;  %v1217_v39 = vld [vmem:[%s5355_s1 + $0x1f0] sm:$0xff] }
  0x1e   : > { %3088 = vmatprep.subr.mxu0 %v433_v13  ;;  %849 = vmatprep.subr.mxu1 %v5358_v3  ;;  %v3550_v40 = vld [vmem:[%s3508_s29 + $0x20] sm:$0xff]  ;;  %v834_v41 = vld [vmem:[%s5355_s1 + $0x168] sm:$0xff]  ;;  %v3563_v43 = vld [vmem:[%s3508_s29 + $0x30] sm:$0xff] }
  0x1f   : > { %3089 = vmatpush3.msra.mxu0 %v433_v13  ;;  %850 = vmatpush1.msra.mxu1 %v814_v14  ;;  %v1216_v42 = vld [vmem:[%s5355_s1 + $0x1e8] sm:$0xff]  ;;  %v833_v44 = vld [vmem:[%s5355_s1 + $0x160] sm:$0xff]  ;;  %v3574_v46 = vld [vmem:[%s3508_s29 + $0x38] sm:$0xff]  ;;  %v302_v14 = vrot.slane %v3519_v32, 1 }
  0x20   : > { %3090 = vmatprep.subr.mxu0 %v432_v15  ;;  %851 = vmatprep.subr.mxu1 %v5358_v3  ;;  %v1215_v45 = vld [vmem:[%s5355_s1 + $0x1e0] sm:$0xff]  ;;  %v832_v47 = vld [vmem:[%s5355_s1 + $0x158] sm:$0xff]  ;;  %v3587_v49 = vld [vmem:[%s3508_s29 + $0x48] sm:$0xff] }
  0x21   : > { %3091 = vmatpush3.msra.mxu0 %v432_v15  ;;  %852 = vmatpush1.msra.mxu1 %v813_v16  ;;  %v1214_v48 = vld [vmem:[%s5355_s1 + $0x1d8] sm:$0xff]  ;;  %v831_v50 = vld [vmem:[%s5355_s1 + $0x150] sm:$0xff]  ;;  %v830_v53 = vld [vmem:[%s5355_s1 + $0x148] sm:$0xff]  ;;  %v303_v15 = vrot.slane %v3525_v34, 1 }
  0x22   : > { %3092 = vmatprep.subr.mxu0 %v431_v17  ;;  %853 = vmatprep.subr.mxu1 %v5358_v3  ;;  %v1213_v51 = vld [vmem:[%s5355_s1 + $0x1d0] sm:$0xff]  ;;  %v1212_v54 = vld [vmem:[%s5355_s1 + $0x1c8] sm:$0xff]  ;;  %v3611_v55 = vld [vmem:[%s3508_s29 + $0x60] sm:$0xff] }
  0x23   : > { %3093 = vmatpush3.msra.mxu0 %v431_v17  ;;  %854 = vmatpush1.msra.mxu1 %v812_v18  ;;  %v3598_v52 = vld [vmem:[%s3508_s29 + $0x50] sm:$0xff]  ;;  %v829_v56 = vld [vmem:[%s5355_s1 + $0x140] sm:$0xff]  ;;  %v3622_v58 = vld [vmem:[%s3508_s29 + $0x68] sm:$0xff] }
  0x24   : > { %3094 = vmatprep.subr.mxu0 %v430_v19  ;;  %855 = vmatprep.subr.mxu1 %v5358_v3  ;;  %v1211_v57 = vld [vmem:[%s5355_s1 + $0x1c0] sm:$0xff]  ;;  %v828_v59 = vld [vmem:[%s5355_s1 + $0x138] sm:$0xff]  ;;  %v827_v62 = vld [vmem:[%s5355_s1 + $0x130] sm:$0xff] }
  0x25   : > { %3095 = vmatpush3.msra.mxu0 %v430_v19  ;;  %856 = vmatpush1.msra.mxu1 %v811_v20  ;;  %v1210_v60 = vld [vmem:[%s5355_s1 + $0x1b8] sm:$0xff]  ;;  %v1209_v63 = vld [vmem:[%s5355_s1 + $0x1b0] sm:$0xff]  ;;  %v3646_v0 = vld [vmem:[%s3508_s29 + $0x80] sm:$0xff] }
  0x26   : > { %3096 = vmatprep.subr.mxu0 %v429_v21  ;;  %857 = vmatprep.subr.mxu1 %v5358_v3  ;;  %v3635_v61 = vld [vmem:[%s3508_s29 + $0x78] sm:$0xff]  ;;  %v826_v1 = vld [vmem:[%s5355_s1 + $0x128] sm:$0xff]  ;;  %v3659_v4 = vld [vmem:[%s3508_s29 + $0x90] sm:$0xff] }
  0x27   : > { %3097 = vmatpush3.msra.mxu0 %v429_v21  ;;  %858 = vmatpush1.msra.mxu1 %v810_v22  ;;  %v1208_v2 = vld [vmem:[%s5355_s1 + $0x1a8] sm:$0xff]  ;;  %v825_v5 = vld [vmem:[%s5355_s1 + $0x120] sm:$0xff]  ;;  %v3670_v7 = vld [vmem:[%s3508_s29 + $0x98] sm:$0xff]  ;;  %v3716_v22 = vsel %vm301_vm0, %v302_v14, %v303_v15  ;;  %v317_v14 = vrot.slane %v3587_v49, 1 }
  0x28   : > { %3098 = vmatprep.subr.mxu0 %v428_v23  ;;  %859 = vmatprep.subr.mxu1 %v5358_v3  ;;  %v1207_v6 = vld [vmem:[%s5355_s1 + $0x1a0] sm:$0xff]  ;;  %v824_v8 = vld [vmem:[%s5355_s1 + $0x118] sm:$0xff]  ;;  %v3683_v10 = vld [vmem:[%s3508_s29 + $0xa8] sm:$0xff] }
  0x29   : > { %3099 = vmatpush3.msra.mxu0 %v428_v23  ;;  %860 = vmatpush1.msra.mxu1 %v809_v24  ;;  %v1206_v9 = vld [vmem:[%s5355_s1 + $0x198] sm:$0xff]  ;;  %v823_v11 = vld [vmem:[%s5355_s1 + $0x110] sm:$0xff]  ;;  %v822_v17 = vld [vmem:[%s5355_s1 + $0x108] sm:$0xff] }
  0x2a   : > { %3100 = vmatprep.subr.mxu0 %v427_v25  ;;  %861 = vmatprep.subr.mxu1 %v5358_v3  ;;  %v1205_v12 = vld [vmem:[%s5355_s1 + $0x190] sm:$0xff]  ;;  %v1204_v18 = vld [vmem:[%s5355_s1 + $0x188] sm:$0xff]  ;;  %v3710_v19 = vld [vmem:[%s3508_s29 + $0xc0] sm:$0xff] }
  0x2b   : > { %3101 = vmatpush3.msra.mxu0 %v427_v25  ;;  %862 = vmatpush1.msra.mxu1 %v808_v26  ;;  %v3694_v13 = vld [vmem:[%s3508_s29 + $0xb0] sm:$0xff]  ;;  %v821_v20 = vld [vmem:[%s5355_s1 + $0x100] sm:$0xff]  ;;  %v3724_v24 = vld [vmem:[%s3508_s29 + $0xc8] sm:$0xff] }
  0x2c   : > { %3102 = vmatprep.subr.mxu0 %v426_v27  ;;  %863 = vmatprep.subr.mxu1 %v5358_v3  ;;  %v204_v16 = vld [vmem:[%s3508_s29 + $0x10] sm:$0x1]  ;;  %v1203_v23 = vld [vmem:[%s5355_s1 + $0x180] sm:$0xff]  ;;  %v3728_v25 = vld [vmem:[%s3508_s29 + $0xd8] sm:$0xff] }
  0x2d   : > { %3103 = vmatpush3.msra.mxu0 %v426_v27  ;;  %864 = vmatpush1.msra.mxu1 %v807_v28  ;;  %v305_v21 = vrot.slane %v204_v16, 1  ;;  %v1234_v26 = vld [vmem:[%s5355_s1 + $0x278] sm:$0xff]  ;;  %v307_v28 = vrot.slane %v3539_v37, 1  ;;  %v1224_v16 = vld [vmem:[%s5355_s1 + $0x228] sm:$0xff] }
  0x2e   : > { %3104 = vmatprep.subr.mxu0 %v425_v29  ;;  %865 = vmatprep.subr.mxu1 %v5358_v3 }
  0x2f   : > { %3105 = vmatpush3.msra.mxu0 %v425_v29  ;;  %866 = vmatpush1.msra.mxu1 %v806_v30  ;;  %v3735_v27 = vsel %vm301_vm0, %v303_v15, %v305_v21  ;;  %v308_v29 = vrot.slane %v3550_v40, 1  ;;  %v1233_v30 = vld [vmem:[%s5355_s1 + $0x270] sm:$0xff]  ;;  %v318_v15 = vrot.slane %v3598_v52, 1 }
  0x30   : > { %3106 = vmatprep.subr.mxu0 %v424_v31  ;;  %867 = vmatprep.subr.mxu1 %v5358_v3 }
  0x31   : > { %3107 = vmatpush3.msra.mxu0 %v424_v31  ;;  %3108 = vmatprep.mubr.f32.mxu0 %v3519_v32  ;;  %v3748_v31 = vld [vmem:[%s3508_s29 + $0xe0] sm:$0xff]  ;;  %v3868_v21 = vsel %vm301_vm0, %v317_v14, %v318_v15  ;;  %v219_v14 = vld [vmem:[%s3508_s29 + $0x88] sm:$0x1] }
  0x32   : > { %868 = vmatpush1.msra.mxu1 %v805_v33  ;;  %3109 = vmatmul.mubr.f32.vlgmr.msra.gmra.mxu0 %v3525_v34  ;;  %v207_v33 = vld [vmem:[%s3508_s29 + $0x28] sm:$0x1] }
  0x33   : > { %869 = vmatprep.subr.mxu1 %v5358_v3  ;;  %1235 = vmatprep.subr.mxu0 %v5358_v3 }
  0x34   : > { %870 = vmatpush2.msra.mxu1 %v836_v35  ;;  %1236 = vmatpush1.msra.mxu0 %v1218_v36  ;;  %v1232_v35 = vld [vmem:[%s5355_s1 + $0x268] sm:$0xff]  ;;  %v3756_v36 = vld [vmem:[%s3508_s29 + $0xf0] sm:$0xff] }
  0x35   : > { %871 = vmatprep.subr.mxu1 %v5358_v3  ;;  %1237 = vmatprep.subr.mxu0 %v5358_v3 }
  0x36   : > { %3111 = vmatprep.mubr.f32.mxu0 %v3539_v37  ;;  %872 = vmatpush2.msra.mxu1 %v835_v38  ;;  %v3761_v38 = vsel %vm301_vm0, %v307_v28, %v308_v29 }
  0x37   : > { %1238 = vmatpush1.msra.mxu0 %v1217_v39  ;;  %873 = vmatprep.subr.mxu1 %v5358_v3  ;;  %v1231_v39 = vld [vmem:[%s5355_s1 + $0x260] sm:$0xff] }
  0x38   : > { %3112 = vmatmul.mubr.f32.gmra.mxu0 %v3550_v40  ;;  %1239 = vmatprep.subr.mxu0 %v5358_v3 }
  0x39   : > { %874 = vmatpush2.msra.mxu1 %v834_v41  ;;  %1240 = vmatpush1.msra.mxu0 %v1216_v42  ;;  %v310_v41 = vrot.slane %v207_v33, 1  ;;  %v3770_v42 = vld [vmem:[%s3508_s29 + $0xf8] sm:$0xff]  ;;  %v3888_v33 = vld [vmem:[%s3508_s29 + $0x168] sm:$0xff] }
  0x3a   : > { %875 = vmatprep.subr.mxu1 %v5358_v3  ;;  %1241 = vmatprep.subr.mxu0 %v5358_v3 }
  0x3b   : > { %3114 = vmatprep.mubr.f32.mxu0 %v3563_v43  ;;  %876 = vmatpush2.msra.mxu1 %v833_v44  ;;  %v1230_v44 = vld [vmem:[%s5355_s1 + $0x258] sm:$0xff] }
  0x3c   : > { %1242 = vmatpush1.msra.mxu0 %v1215_v45  ;;  %877 = vmatprep.subr.mxu1 %v5358_v3  ;;  %v1616_v45 = vld [vmem:[%s5355_s1 + $0x2f8] sm:$0xff] }
  0x3d   : > { %3115 = vmatmul.mubr.f32.gmra.mxu0 %v3574_v46  ;;  %1243 = vmatprep.subr.mxu0 %v5358_v3 }
  0x3e   : > { %878 = vmatpush2.msra.mxu1 %v832_v47  ;;  %1244 = vmatpush1.msra.mxu0 %v1214_v48  ;;  %v3782_v47 = vld [vmem:[%s3508_s29 + $0x108] sm:$0xff]  ;;  %v3787_v48 = vsel %vm301_vm0, %v308_v29, %v310_v41  ;;  %v1222_v29 = vld [vmem:[%s5355_s1 + $0x218] sm:$0xff]  ;;  %v322_v41 = vrot.slane %v3611_v55, 1 }
  0x3f   : > { %879 = vmatprep.subr.mxu1 %v5358_v3  ;;  %1245 = vmatprep.subr.mxu0 %v5358_v3 }
  0x40   : > { %3117 = vmatprep.mubr.f32.mxu0 %v3587_v49  ;;  %880 = vmatpush2.msra.mxu1 %v831_v50  ;;  %v1229_v50 = vld [vmem:[%s5355_s1 + $0x250] sm:$0xff] }
  0x41   : > { %1246 = vmatpush1.msra.mxu0 %v1213_v51  ;;  %881 = vmatprep.subr.mxu1 %v5358_v3  ;;  %v3793_v51 = vld [vmem:[%s3508_s29 + $0x110] sm:$0xff] }
  0x42   : > { %3118 = vmatmul.mubr.f32.gmra.mxu0 %v3598_v52  ;;  %1247 = vmatprep.subr.mxu0 %v5358_v3 }
  0x43   : > { %882 = vmatpush2.msra.mxu1 %v830_v53  ;;  %1248 = vmatpush1.msra.mxu0 %v1212_v54  ;;  %v312_v53 = vrot.slane %v3563_v43, 1  ;;  %v313_v54 = vrot.slane %v3574_v46, 1 }
  0x44   : > { %883 = vmatprep.subr.mxu1 %v5358_v3  ;;  %1249 = vmatprep.subr.mxu0 %v5358_v3 }
  0x45   : > { %3120 = vmatprep.mubr.f32.mxu0 %v3611_v55  ;;  %884 = vmatpush2.msra.mxu1 %v829_v56  ;;  %v1228_v56 = vld [vmem:[%s5355_s1 + $0x248] sm:$0xff] }
  0x46   : > { %1250 = vmatpush1.msra.mxu0 %v1211_v57  ;;  %885 = vmatprep.subr.mxu1 %v5358_v3  ;;  %v1615_v57 = vld [vmem:[%s5355_s1 + $0x2f0] sm:$0xff] }
  0x47   : > { %3121 = vmatmul.mubr.f32.gmra.mxu0 %v3622_v58  ;;  %1251 = vmatprep.subr.mxu0 %v5358_v3 }
  0x48   : > { %886 = vmatpush2.msra.mxu1 %v828_v59  ;;  %1252 = vmatpush1.msra.mxu0 %v1210_v60  ;;  %v210_v59 = vld [vmem:[%s3508_s29 + $0x40] sm:$0x1] }
  0x49   : > { %887 = vmatprep.subr.mxu1 %v5358_v3  ;;  %1253 = vmatprep.subr.mxu0 %v5358_v3  ;;  %v3810_v60 = vld [vmem:[%s3508_s29 + $0x120] sm:$0xff] }
  0x4a   : > { %3123 = vmatprep.mubr.f32.mxu0 %v3635_v61  ;;  %888 = vmatpush2.msra.mxu1 %v827_v62  ;;  %v3815_v62 = vsel %vm301_vm0, %v312_v53, %v313_v54  ;;  %v1220_v53 = vld [vmem:[%s5355_s1 + $0x208] sm:$0xff] }
  0x4b   : > { %1254 = vmatpush1.msra.mxu0 %v1209_v63  ;;  %889 = vmatprep.subr.mxu1 %v5358_v3  ;;  %v1227_v63 = vld [vmem:[%s5355_s1 + $0x240] sm:$0xff] }
  0x4c   : > { %3124 = vmatmul.mubr.f32.gmra.mxu0 %v3646_v0  ;;  %1255 = vmatprep.subr.mxu0 %v5358_v3 }
  0x4d   : > { %890 = vmatpush2.msra.mxu1 %v826_v1  ;;  %1256 = vmatpush1.msra.mxu0 %v1208_v2  ;;  %v3821_v1 = vld [vmem:[%s3508_s29 + $0x128] sm:$0xff]  ;;  %v315_v2 = vrot.slane %v210_v59, 1 }
  0x4e   : > { %891 = vmatprep.subr.mxu1 %v5358_v3  ;;  %1257 = vmatprep.subr.mxu0 %v5358_v3 }
  0x4f   : > { %3126 = vmatprep.mubr.f32.mxu0 %v3659_v4  ;;  %892 = vmatpush2.msra.mxu1 %v825_v5  ;;  %v1226_v5 = vld [vmem:[%s5355_s1 + $0x238] sm:$0xff] }
  0x50   : > { %1258 = vmatpush1.msra.mxu0 %v1207_v6  ;;  %893 = vmatprep.subr.mxu1 %v5358_v3  ;;  %v1614_v6 = vld [vmem:[%s5355_s1 + $0x2e8] sm:$0xff] }
  0x51   : > { %3127 = vmatmul.mubr.f32.gmra.mxu0 %v3670_v7  ;;  %1259 = vmatprep.subr.mxu0 %v5358_v3 }
  0x52   : > { %894 = vmatpush2.msra.mxu1 %v824_v8  ;;  %1260 = vmatpush1.msra.mxu0 %v1206_v9  ;;  %v3835_v8 = vld [vmem:[%s3508_s29 + $0x138] sm:$0xff]  ;;  %v3840_v9 = vsel %vm301_vm0, %v313_v54, %v315_v2  ;;  %v1611_v54 = vld [vmem:[%s5355_s1 + $0x2d0] sm:$0xff] }
  0x53   : > { %895 = vmatprep.subr.mxu1 %v5358_v3  ;;  %1261 = vmatprep.subr.mxu0 %v5358_v3  ;;  %v3932_v2 = vld [vmem:[%s5355_s1 + $0x3f8] sm:$0xff] }
  0x54   : > { %3129 = vmatprep.mubr.f32.mxu0 %v3683_v10  ;;  %896 = vmatpush2.msra.mxu1 %v823_v11  ;;  %v1225_v11 = vld [vmem:[%s5355_s1 + $0x230] sm:$0xff] }
  0x55   : > { %1262 = vmatpush1.msra.mxu0 %v1205_v12  ;;  %897 = vmatprep.subr.mxu1 %v5358_v3  ;;  %v3846_v12 = vld [vmem:[%s3508_s29 + $0x140] sm:$0xff] }
  0x56   : > { %3130 = vmatmul.mubr.f32.gmra.mxu0 %v3694_v13  ;;  %1263 = vmatprep.subr.mxu0 %v5358_v3 }
  0x57   : > { %898 = vmatpush2.msra.mxu1 %v822_v17  ;;  %1264 = vmatpush1.msra.mxu0 %v1204_v18  ;;  %v1613_v17 = vld [vmem:[%s5355_s1 + $0x2e0] sm:$0xff]  ;;  %v213_v18 = vld [vmem:[%s3508_s29 + $0x58] sm:$0x1] }
  0x58   : > { %899 = vmatprep.subr.mxu1 %v5358_v3  ;;  %1265 = vmatprep.subr.mxu0 %v5358_v3  ;;  %v320_v28 = vrot.slane %v213_v18, 1  ;;  %v3971_v18 = vld [vmem:[%s5355_s1 + $0x3e8] sm:$0xff] }
  0x59   : > { %3132 = vmatprep.mubr.f32.mxu0 %v3710_v19  ;;  %900 = vmatpush2.msra.mxu1 %v821_v20  ;;  %v3863_v20 = vld [vmem:[%s3508_s29 + $0x150] sm:$0xff] }
  0x5a   : > { %901 = vmatprep.mubr.f32.mxu1 %v3716_v22  ;;  %1266 = vmatpush1.msra.mxu0 %v1203_v23  ;;  %v1223_v23 = vld [vmem:[%s5355_s1 + $0x220] sm:$0xff] }
  0x5b   : > { %3133 = vmatmul.mubr.f32.gmra.mxu0 %v3724_v24  ;;  %902 = vmatmul.mubr.f32.vlgmr.msra.gmra.mxu1 %v3519_v32 }
  0x5c   : > { %1267 = vmatprep.subr.mxu0 %v5358_v3  ;;  %3135 = vmatprep.mubr.f32.mxu0 %v3728_v25 }
  0x5d   : > { %1268 = vmatpush2.msra.mxu0 %v1234_v26  ;;  %906 = vmatprep.mubr.f32.mxu1 %v3735_v27  ;;  %v3874_v26 = vld [vmem:[%s3508_s29 + $0x158] sm:$0xff] }
  0x5e   : > { %1269 = vmatprep.subr.mxu0 %v5358_v3  ;;  %1665 = vmatprep.subr.mxu1 %v5358_v3 }
  0x5f   : > { %1270 = vmatpush2.msra.mxu0 %v1233_v30  ;;  %907 = vmatmul.mubr.f32.gmra.mxu1 %v3525_v34  ;;  %v1612_v30 = vld [vmem:[%s5355_s1 + $0x2d8] sm:$0xff] }
  0x60   : > { %3136 = vmatmul.mubr.f32.gmra.mxu0 %v3748_v31  ;;  %1271 = vmatprep.subr.mxu0 %v5358_v3 }
  0x61   : > { %1272 = vmatpush2.msra.mxu0 %v1232_v35  ;;  %3138 = vmatprep.mubr.f32.mxu0 %v3756_v36  ;;  %v3893_v35 = vsel %vm301_vm0, %v318_v15, %v320_v28  ;;  %v3953_v15 = vld [vmem:[%s5355_s1 + $0x3f0] sm:$0xff]  ;;  %v332_v28 = vrot.slane %v3659_v4, 1 }
  0x62   : > { %1273 = vmatprep.subr.mxu0 %v5358_v3  ;;  %911 = vmatprep.mubr.f32.mxu1 %v3761_v38 }
  0x63   : > { %1274 = vmatpush2.msra.mxu0 %v1231_v39  ;;  %912 = vmatmul.mubr.f32.gmra.mxu1 %v3539_v37  ;;  %v1221_v39 = vld [vmem:[%s5355_s1 + $0x210] sm:$0xff] }
  0x64   : > { %3139 = vmatmul.mubr.f32.gmra.mxu0 %v3770_v42  ;;  %1275 = vmatprep.subr.mxu0 %v5358_v3 }
  0x65   : > { %1276 = vmatpush2.msra.mxu0 %v1230_v44  ;;  %1666 = vmatpush1.msra.mxu1 %v1616_v45  ;;  %v323_v44 = vrot.slane %v3622_v58, 1  ;;  %v3901_v45 = vld [vmem:[%s3508_s29 + $0x170] sm:$0xff] }
  0x66   : > { %1277 = vmatprep.subr.mxu0 %v5358_v3  ;;  %3141 = vmatprep.mubr.f32.mxu0 %v3782_v47 }
  0x67   : > { %916 = vmatprep.mubr.f32.mxu1 %v3787_v48  ;;  %1278 = vmatpush2.msra.mxu0 %v1229_v50  ;;  %v216_v50 = vld [vmem:[%s3508_s29 + $0x70] sm:$0x1] }
  0x68   : > { %3142 = vmatmul.mubr.f32.gmra.mxu0 %v3793_v51  ;;  %917 = vmatmul.mubr.f32.gmra.mxu1 %v3550_v40  ;;  %v325_v59 = vrot.slane %v216_v50, 1  ;;  %v4010_v50 = vld [vmem:[%s5355_s1 + $0x3d8] sm:$0xff] }
  0x69   : > { %1279 = vmatprep.subr.mxu0 %v5358_v3  ;;  %1667 = vmatprep.subr.mxu1 %v5358_v3 }
  0x6a   : > { %1280 = vmatpush2.msra.mxu0 %v1228_v56  ;;  %1668 = vmatpush1.msra.mxu1 %v1615_v57  ;;  %v3916_v56 = vsel %vm301_vm0, %v322_v41, %v323_v44  ;;  %v1219_v57 = vld [vmem:[%s5355_s1 + $0x200] sm:$0xff] }
  0x6b   : > { %1281 = vmatprep.subr.mxu0 %v5358_v3  ;;  %3144 = vmatprep.mubr.f32.mxu0 %v3810_v60 }
  0x6c   : > { %921 = vmatprep.mubr.f32.mxu1 %v3815_v62  ;;  %1282 = vmatpush2.msra.mxu0 %v1227_v63  ;;  %v1610_v63 = vld [vmem:[%s5355_s1 + $0x2c8] sm:$0xff] }
  0x6d   : > { %3145 = vmatmul.mubr.f32.gmra.mxu0 %v3821_v1  ;;  %922 = vmatmul.mubr.f32.gmra.mxu1 %v3563_v43 }
  0x6e   : > { %1283 = vmatprep.subr.mxu0 %v5358_v3  ;;  %1669 = vmatprep.subr.mxu1 %v5358_v3 }
  0x6f   : > { %1284 = vmatpush2.msra.mxu0 %v1226_v5  ;;  %1670 = vmatpush1.msra.mxu1 %v1614_v6  ;;  %v3937_v5 = vsel %vm301_vm0, %v323_v44, %v325_v59  ;;  %v327_v6 = vrot.slane %v3635_v61, 1  ;;  %v225_v59 = vld [vmem:[%s3508_s29 + $0xb8] sm:$0x1] }
  0x70   : > { %1285 = vmatprep.subr.mxu0 %v5358_v3  ;;  %3147 = vmatprep.mubr.f32.mxu0 %v3835_v8 }
  0x71   : > { %926 = vmatprep.mubr.f32.mxu1 %v3840_v9  ;;  %1286 = vmatpush2.msra.mxu0 %v1225_v11  ;;  %v328_v11 = vrot.slane %v3646_v0, 1 }
  0x72   : > { %3148 = vmatmul.mubr.f32.gmra.mxu0 %v3846_v12  ;;  %927 = vmatmul.mubr.f32.gmra.mxu1 %v3574_v46 }
  0x73   : > { %1287 = vmatprep.subr.mxu0 %v5358_v3  ;;  %1671 = vmatprep.subr.mxu1 %v5358_v3 }
  0x74   : > { %1288 = vmatpush2.msra.mxu0 %v1224_v16  ;;  %1672 = vmatpush1.msra.mxu1 %v1613_v17  ;;  %v3958_v16 = vsel %vm301_vm0, %v327_v6, %v328_v11  ;;  %v330_v17 = vrot.slane %v219_v14, 1  ;;  %v4049_v14 = vld [vmem:[%s5355_s1 + $0x3c8] sm:$0xff] }
  0x75   : > { %1289 = vmatprep.subr.mxu0 %v5358_v3  ;;  %3150 = vmatprep.mubr.f32.mxu0 %v3863_v20 }
  0x76   : > { %931 = vmatprep.mubr.f32.mxu1 %v3868_v21  ;;  %1290 = vmatpush2.msra.mxu0 %v1223_v23  ;;  %v3976_v23 = vsel %vm301_vm0, %v328_v11, %v330_v17  ;;  %v340_v11 = vrot.slane %v225_v59, 1  ;;  %v342_v17 = vrot.slane %v3710_v19, 1  ;;  %v231_v59 = vld [vmem:[%s3508_s29 + $0xe8] sm:$0x1] }
  0x77   : > { %3151 = vmatmul.mubr.f32.gmra.mxu0 %v3874_v26  ;;  %932 = vmatmul.mubr.f32.gmra.mxu1 %v3587_v49 }
  0x78   : > { %1291 = vmatprep.subr.mxu0 %v5358_v3  ;;  %1673 = vmatprep.subr.mxu1 %v5358_v3 }
  0x79   : > { %1292 = vmatpush2.msra.mxu0 %v1222_v29  ;;  %1674 = vmatpush1.msra.mxu1 %v1612_v30  ;;  %v333_v29 = vrot.slane %v3670_v7, 1  ;;  %v222_v30 = vld [vmem:[%s3508_s29 + $0xa0] sm:$0x1] }
  0x7a   : > { %1293 = vmatprep.subr.mxu0 %v5358_v3  ;;  %3153 = vmatprep.mubr.f32.mxu0 %v3888_v33  ;;  %v335_v44 = vrot.slane %v222_v30, 1 }
  0x7b   : > { %936 = vmatprep.mubr.f32.mxu1 %v3893_v35  ;;  %1294 = vmatpush2.msra.mxu0 %v1221_v39  ;;  %v3992_v39 = vld [vmem:[%s5355_s1 + $0x3e0] sm:$0xff]  ;;  %v3997_v41 = vsel %vm301_vm0, %v332_v28, %v333_v29  ;;  %v228_v28 = vld [vmem:[%s3508_s29 + $0xd0] sm:$0x1] }
  0x7c   : > { %3154 = vmatmul.mubr.f32.gmra.mxu0 %v3901_v45  ;;  %937 = vmatmul.mubr.f32.gmra.mxu1 %v3598_v52 }
  0x7d   : > { %1295 = vmatprep.subr.mxu0 %v5358_v3  ;;  %1675 = vmatprep.subr.mxu1 %v5358_v3 }
  0x7e   : > { %1296 = vmatpush2.msra.mxu0 %v1220_v53  ;;  %1676 = vmatpush1.msra.mxu1 %v1611_v54  ;;  %v4015_v53 = vsel %vm301_vm0, %v333_v29, %v335_v44  ;;  %v337_v54 = vrot.slane %v3683_v10, 1  ;;  %v4070_v29 = vld [vmem:[%s5355_s1 + $0x3c0] sm:$0xff]  ;;  %v4088_v44 = vld [vmem:[%s5355_s1 + $0x3b8] sm:$0xff] }
  0x7f   : > { %1297 = vmatprep.subr.mxu0 %v5358_v3  ;;  %941 = vmatprep.mubr.f32.mxu1 %v3916_v56 }
  0x80   : > { %1298 = vmatpush2.msra.mxu0 %v1219_v57  ;;  %1299 = vmatprep.mubr.f32.mxu0 %v3539_v37  ;;  %v338_v57 = vrot.slane %v3694_v13, 1 }
  0x81   : > { %942 = vmatmul.mubr.f32.gmra.mxu1 %v3611_v55  ;;  %1300 = vmatmul.mubr.f32.vlgmr.msra.gmra.mxu0 %v3519_v32  ;;  %v1609_v32 = vld [vmem:[%s5355_s1 + $0x2c0] sm:$0xff] }
  0x82   : > { %1677 = vmatprep.subr.mxu1 %v5358_v3  ;;  %1890 = vmatprep.subr.mxu0 %v5358_v3  ;;  %v4036_v6 = vsel %vm301_vm0, %v337_v54, %v338_v57  ;;  %v347_v54 = vrot.slane %v3728_v25, 1 }
  0x83   : > { %1678 = vmatpush1.msra.mxu1 %v1610_v63  ;;  %1891 = vmatpush1.msra.mxu0 %v3932_v2  ;;  %v4031_v63 = vld [vmem:[%s5355_s1 + $0x3d0] sm:$0xff] }
  0x84   : > { %946 = vmatprep.mubr.f32.mxu1 %v3937_v5  ;;  %1304 = vmatprep.mubr.f32.mxu0 %v3550_v40 }
  0x85   : > { %947 = vmatmul.mubr.f32.gmra.mxu1 %v3622_v58  ;;  %1305 = vmatmul.mubr.f32.gmra.mxu0 %v3525_v34  ;;  %v1608_v34 = vld [vmem:[%s5355_s1 + $0x2b8] sm:$0xff] }
  0x86   : > { %1679 = vmatprep.subr.mxu1 %v5358_v3  ;;  %1892 = vmatprep.subr.mxu0 %v5358_v3 }
  0x87   : > { %1680 = vmatpush1.msra.mxu1 %v1609_v32  ;;  %1893 = vmatpush1.msra.mxu0 %v3953_v15  ;;  %v4054_v32 = vsel %vm301_vm0, %v338_v57, %v340_v11  ;;  %v348_v57 = vrot.slane %v3748_v31, 1 }
  0x88   : > { %951 = vmatprep.mubr.f32.mxu1 %v3958_v16  ;;  %1309 = vmatprep.mubr.f32.mxu0 %v3563_v43 }
  0x89   : > { %952 = vmatmul.mubr.f32.gmra.mxu1 %v3635_v61  ;;  %1310 = vmatmul.mubr.f32.gmra.mxu0 %v3539_v37  ;;  %v1607_v37 = vld [vmem:[%s5355_s1 + $0x2b0] sm:$0xff]  ;;  %v4114_v11 = vsel %vm301_vm0, %v347_v54, %v348_v57 }
  0x8a   : > { %1681 = vmatprep.subr.mxu1 %v5358_v3  ;;  %1894 = vmatprep.subr.mxu0 %v5358_v3 }
  0x8b   : > { %1682 = vmatpush1.msra.mxu1 %v1608_v34  ;;  %1895 = vmatpush1.msra.mxu0 %v3971_v18  ;;  %v343_v34 = vrot.slane %v3724_v24, 1 }
  0x8c   : > { %956 = vmatprep.mubr.f32.mxu1 %v3976_v23  ;;  %1314 = vmatprep.mubr.f32.mxu0 %v3574_v46 }
  0x8d   : > { %957 = vmatmul.mubr.f32.gmra.mxu1 %v3646_v0  ;;  %1315 = vmatmul.mubr.f32.gmra.mxu0 %v3550_v40  ;;  %v1606_v40 = vld [vmem:[%s5355_s1 + $0x2a8] sm:$0xff]  ;;  %v4075_v30 = vsel %vm301_vm0, %v342_v17, %v343_v34 }
  0x8e   : > { %1683 = vmatprep.subr.mxu1 %v5358_v3  ;;  %1896 = vmatprep.subr.mxu0 %v5358_v3  ;;  %v4127_v17 = vld [vmem:[%s5355_s1 + $0x3a8] sm:$0xff] }
  0x8f   : > { %1684 = vmatpush1.msra.mxu1 %v1607_v37  ;;  %1897 = vmatpush1.msra.mxu0 %v3992_v39  ;;  %v345_v37 = vrot.slane %v228_v28, 1  ;;  %v352_v28 = vrot.slane %v3756_v36, 1 }
  0x90   : > { %961 = vmatprep.mubr.f32.mxu1 %v3997_v41  ;;  %1319 = vmatprep.mubr.f32.mxu0 %v3587_v49 }
  0x91   : > { %962 = vmatmul.mubr.f32.gmra.mxu1 %v3659_v4  ;;  %1320 = vmatmul.mubr.f32.gmra.mxu0 %v3563_v43  ;;  %v1605_v43 = vld [vmem:[%s5355_s1 + $0x2a0] sm:$0xff] }
  0x92   : > { %1685 = vmatprep.subr.mxu1 %v5358_v3  ;;  %1898 = vmatprep.subr.mxu0 %v5358_v3 }
  0x93   : > { %1686 = vmatpush1.msra.mxu1 %v1606_v40  ;;  %1899 = vmatpush1.msra.mxu0 %v4010_v50  ;;  %v4093_v40 = vsel %vm301_vm0, %v343_v34, %v345_v37  ;;  %v234_v37 = vld [vmem:[%s3508_s29 + $0x100] sm:$0x1] }
  0x94   : > { %966 = vmatprep.mubr.f32.mxu1 %v4015_v53  ;;  %1324 = vmatprep.mubr.f32.mxu0 %v3598_v52 }
  0x95   : > { %967 = vmatmul.mubr.f32.gmra.mxu1 %v3670_v7  ;;  %1325 = vmatmul.mubr.f32.gmra.mxu0 %v3574_v46  ;;  %v1604_v46 = vld [vmem:[%s5355_s1 + $0x298] sm:$0xff] }
  0x96   : > { %1687 = vmatprep.subr.mxu1 %v5358_v3  ;;  %1900 = vmatprep.subr.mxu0 %v5358_v3 }
  0x97   : > { %1688 = vmatpush1.msra.mxu1 %v1605_v43  ;;  %1901 = vmatpush1.msra.mxu0 %v4031_v63  ;;  %v4109_v43 = vld [vmem:[%s5355_s1 + $0x3b0] sm:$0xff] }
  0x98   : > { %971 = vmatprep.mubr.f32.mxu1 %v4036_v6  ;;  %1329 = vmatprep.mubr.f32.mxu0 %v3611_v55 }
  0x99   : > { %972 = vmatmul.mubr.f32.gmra.mxu1 %v3683_v10  ;;  %1330 = vmatmul.mubr.f32.gmra.mxu0 %v3587_v49  ;;  %v1603_v49 = vld [vmem:[%s5355_s1 + $0x290] sm:$0xff] }
  0x9a   : > { %1689 = vmatprep.subr.mxu1 %v5358_v3  ;;  %1902 = vmatprep.subr.mxu0 %v5358_v3 }
  0x9b   : > { %1690 = vmatpush1.msra.mxu1 %v1604_v46  ;;  %1903 = vmatpush1.msra.mxu0 %v4049_v14  ;;  %v350_v46 = vrot.slane %v231_v59, 1  ;;  %v4166_v59 = vld [vmem:[%s5355_s1 + $0x398] sm:$0xff] }
  0x9c   : > { %976 = vmatprep.mubr.f32.mxu1 %v4054_v32  ;;  %1334 = vmatprep.mubr.f32.mxu0 %v3622_v58 }
  0x9d   : > { %977 = vmatmul.mubr.f32.gmra.mxu1 %v3694_v13  ;;  %1335 = vmatmul.mubr.f32.gmra.mxu0 %v3598_v52  ;;  %v1602_v52 = vld [vmem:[%s5355_s1 + $0x288] sm:$0xff]  ;;  %v4132_v34 = vsel %vm301_vm0, %v348_v57, %v350_v46  ;;  %v355_v57 = vrot.slane %v234_v37, 1  ;;  %v357_v46 = vrot.slane %v3782_v47, 1 }
  0x9e   : > { %1691 = vmatprep.subr.mxu1 %v5358_v3  ;;  %1904 = vmatprep.subr.mxu0 %v5358_v3 }
  0x9f   : > { %1692 = vmatpush1.msra.mxu1 %v1603_v49  ;;  %1905 = vmatpush1.msra.mxu0 %v4070_v29  ;;  %v353_v49 = vrot.slane %v3770_v42, 1 }
  0xa0   : > { %981 = vmatprep.mubr.f32.mxu1 %v4075_v30  ;;  %1339 = vmatprep.mubr.f32.mxu0 %v3635_v61 }
  0xa1   : > { %982 = vmatmul.mubr.f32.gmra.mxu1 %v3710_v19  ;;  %1340 = vmatmul.mubr.f32.gmra.mxu0 %v3611_v55  ;;  %v1601_v55 = vld [vmem:[%s5355_s1 + $0x280] sm:$0xff]  ;;  %v4153_v54 = vsel %vm301_vm0, %v352_v28, %v353_v49  ;;  %v237_v28 = vld [vmem:[%s3508_s29 + $0x118] sm:$0x1] }
  0xa2   : > { %1693 = vmatprep.subr.mxu1 %v5358_v3  ;;  %1906 = vmatprep.subr.mxu0 %v5358_v3 }
  0xa3   : > { %1694 = vmatpush1.msra.mxu1 %v1602_v52  ;;  %1907 = vmatpush1.msra.mxu0 %v4088_v44  ;;  %v4148_v52 = vld [vmem:[%s5355_s1 + $0x3a0] sm:$0xff] }
  0xa4   : > { %986 = vmatprep.mubr.f32.mxu1 %v4093_v40  ;;  %1344 = vmatprep.mubr.f32.mxu0 %v3646_v0 }
  0xa5   : > { %987 = vmatmul.mubr.f32.gmra.mxu1 %v3724_v24  ;;  %1345 = vmatmul.mubr.f32.gmra.mxu0 %v3622_v58  ;;  %v1632_v58 = vld [vmem:[%s5355_s1 + $0x378] sm:$0xff] }
  0xa6   : > { %1695 = vmatprep.subr.mxu1 %v5358_v3  ;;  %1908 = vmatprep.subr.mxu0 %v5358_v3 }
  0xa7   : > { %1696 = vmatpush1.msra.mxu1 %v1601_v55  ;;  %1909 = vmatpush1.msra.mxu0 %v4109_v43  ;;  %v4171_v55 = vsel %vm301_vm0, %v353_v49, %v355_v57  ;;  %v4187_v49 = vld [vmem:[%s5355_s1 + $0x390] sm:$0xff]  ;;  %v4205_v57 = vld [vmem:[%s5355_s1 + $0x388] sm:$0xff] }
  0xa8   : > { %991 = vmatprep.mubr.f32.mxu1 %v4114_v11  ;;  %1349 = vmatprep.mubr.f32.mxu0 %v3659_v4 }
  0xa9   : > { %992 = vmatmul.mubr.f32.gmra.mxu1 %v3728_v25  ;;  %1350 = vmatmul.mubr.f32.gmra.mxu0 %v3635_v61  ;;  %v1631_v61 = vld [vmem:[%s5355_s1 + $0x370] sm:$0xff] }
  0xaa   : > { %1697 = vmatprep.subr.mxu1 %v5358_v3  ;;  %1910 = vmatprep.subr.mxu0 %v5358_v3 }
  0xab   : > { %1698 = vmatpush2.msra.mxu1 %v1632_v58  ;;  %1911 = vmatpush1.msra.mxu0 %v4127_v17  ;;  %v358_v58 = vrot.slane %v3793_v51, 1 }
  0xac   : > { %996 = vmatprep.mubr.f32.mxu1 %v4132_v34  ;;  %1354 = vmatprep.mubr.f32.mxu0 %v3670_v7 }
  0xad   : > { %997 = vmatmul.mubr.f32.gmra.mxu1 %v3748_v31  ;;  %1355 = vmatmul.mubr.f32.gmra.mxu0 %v3646_v0  ;;  %v1630_v0 = vld [vmem:[%s5355_s1 + $0x368] sm:$0xff]  ;;  %v4192_v37 = vsel %vm301_vm0, %v357_v46, %v358_v58  ;;  %v362_v46 = vrot.slane %v3810_v60, 1 }
  0xae   : > { %1699 = vmatprep.subr.mxu1 %v5358_v3  ;;  %1912 = vmatprep.subr.mxu0 %v5358_v3 }
  0xaf   : > { %1700 = vmatpush2.msra.mxu1 %v1631_v61  ;;  %1913 = vmatpush1.msra.mxu0 %v4148_v52  ;;  %v360_v61 = vrot.slane %v237_v28, 1  ;;  %v363_v28 = vrot.slane %v3821_v1, 1 }
  0xb0   : > { %1001 = vmatprep.mubr.f32.mxu1 %v4153_v54  ;;  %1359 = vmatprep.mubr.f32.mxu0 %v3683_v10 }
  0xb1   : > { %1002 = vmatmul.mubr.f32.gmra.mxu1 %v3756_v36  ;;  %1360 = vmatmul.mubr.f32.gmra.mxu0 %v3659_v4  ;;  %v1629_v4 = vld [vmem:[%s5355_s1 + $0x360] sm:$0xff] }
  0xb2   : > { %1701 = vmatprep.subr.mxu1 %v5358_v3  ;;  %1914 = vmatprep.subr.mxu0 %v5358_v3 }
  0xb3   : > { %1702 = vmatpush2.msra.mxu1 %v1630_v0  ;;  %1915 = vmatpush1.msra.mxu0 %v4166_v59  ;;  %v4210_v0 = vsel %vm301_vm0, %v358_v58, %v360_v61  ;;  %v4226_v58 = vld [vmem:[%s5355_s1 + $0x380] sm:$0xff]  ;;  %v4231_v61 = vsel %vm301_vm0, %v362_v46, %v363_v28  ;;  %v4244_v46 = vld [vmem:[%s5355_s1 + $0x478] sm:$0xff] }
  0xb4   : > { %1006 = vmatprep.mubr.f32.mxu1 %v4171_v55  ;;  %1364 = vmatprep.mubr.f32.mxu0 %v3694_v13  ;;  %5383 = vst [vmem:[#allocation3_spill] sm:$0xff] %v4210_v0  ;;  %5384 = vst [vmem:[#allocation4_spill] sm:$0xff] %v4231_v61 }
  0xb5   : > { %1007 = vmatmul.mubr.f32.gmra.mxu1 %v3770_v42  ;;  %1365 = vmatmul.mubr.f32.gmra.mxu0 %v3670_v7  ;;  %v1628_v7 = vld [vmem:[%s5355_s1 + $0x358] sm:$0xff] }
  0xb6   : > { %1703 = vmatprep.subr.mxu1 %v5358_v3  ;;  %1916 = vmatprep.subr.mxu0 %v5358_v3 }
  0xb7   : > { %1704 = vmatpush2.msra.mxu1 %v1629_v4  ;;  %1917 = vmatpush1.msra.mxu0 %v4187_v49  ;;  %v240_v4 = vld [vmem:[%s3508_s29 + $0x130] sm:$0x1] }
  0xb8   : > { %1011 = vmatprep.mubr.f32.mxu1 %v4192_v37  ;;  %1369 = vmatprep.mubr.f32.mxu0 %v3710_v19 }
  0xb9   : > { %1012 = vmatmul.mubr.f32.gmra.mxu1 %v3782_v47  ;;  %1370 = vmatmul.mubr.f32.gmra.mxu0 %v3683_v10  ;;  %v1627_v10 = vld [vmem:[%s5355_s1 + $0x350] sm:$0xff] }
  0xba   : > { %1705 = vmatprep.subr.mxu1 %v5358_v3  ;;  %1918 = vmatprep.subr.mxu0 %v5358_v3 }
  0xbb   : > { %1706 = vmatpush2.msra.mxu1 %v1628_v7  ;;  %1919 = vmatpush1.msra.mxu0 %v4205_v57  ;;  %v365_v7 = vrot.slane %v240_v4, 1 }
  0xbc   : > { %1016 = vmatprep.mubr.f32.mxu1 %v4210_v0  ;;  %1374 = vmatprep.mubr.f32.mxu0 %v3724_v24  ;;  %v243_v0 = vld [vmem:[%s3508_s29 + $0x148] sm:$0x1] }
  0xbd   : > { %1017 = vmatmul.mubr.f32.gmra.mxu1 %v3793_v51  ;;  %1375 = vmatmul.mubr.f32.gmra.mxu0 %v3694_v13  ;;  %v1626_v13 = vld [vmem:[%s5355_s1 + $0x348] sm:$0xff]  ;;  %v4249_v4 = vsel %vm301_vm0, %v363_v28, %v365_v7  ;;  %v4265_v28 = vld [vmem:[%s5355_s1 + $0x470] sm:$0xff] }
  0xbe   : > { %1707 = vmatprep.subr.mxu1 %v5358_v3  ;;  %1920 = vmatprep.subr.mxu0 %v5358_v3  ;;  %5385 = vst [vmem:[#allocation5_spill] sm:$0xff] %v4249_v4  ;;  %v368_v3 = vrot.slane %v3846_v12, 1 }
  0xbf   : > { %1708 = vmatpush2.msra.mxu1 %v1627_v10  ;;  %1921 = vmatpush1.msra.mxu0 %v4226_v58  ;;  %v367_v10 = vrot.slane %v3835_v8, 1 }
  0xc0   : > { %1021 = vmatprep.mubr.f32.mxu1 %v4231_v61  ;;  %1379 = vmatprep.mubr.f32.mxu0 %v3728_v25  ;;  %v5386_v61 = vmov 0.0  }
  0xc1   : > { %1022 = vmatmul.mubr.f32.gmra.mxu1 %v3810_v60  ;;  %1380 = vmatmul.mubr.f32.gmra.mxu0 %v3710_v19  ;;  %v1625_v19 = vld [vmem:[%s5355_s1 + $0x340] sm:$0xff]  ;;  %v4270_v7 = vsel %vm301_vm0, %v367_v10, %v368_v3 }
  0xc2   : > { %1709 = vmatprep.subr.mxu1 %v5386_v61  ;;  %1922 = vmatprep.subr.mxu0 %v5386_v61  ;;  %5387 = vst [vmem:[#allocation6_spill] sm:$0xff] %v4270_v7 }
  0xc3   : > { %1710 = vmatpush2.msra.mxu1 %v1626_v13  ;;  %1923 = vmatpush2.msra.mxu0 %v4244_v46  ;;  %v370_v13 = vrot.slane %v243_v0, 1  ;;  %v4283_v0 = vld [vmem:[%s5355_s1 + $0x468] sm:$0xff] }
  0xc4   : > { %1026 = vmatprep.mubr.f32.mxu1 %v4249_v4  ;;  %1384 = vmatprep.mubr.f32.mxu0 %v3748_v31  ;;  %v246_v4 = vld [vmem:[%s3508_s29 + $0x160] sm:$0x1] }
  0xc5   : > { %1027 = vmatmul.mubr.f32.gmra.mxu1 %v3821_v1  ;;  %1385 = vmatmul.mubr.f32.gmra.mxu0 %v3724_v24  ;;  %v1624_v24 = vld [vmem:[%s5355_s1 + $0x338] sm:$0xff]  ;;  %v4288_v10 = vsel %vm301_vm0, %v368_v3, %v370_v13  ;;  %v1623_v3 = vld [vmem:[%s5355_s1 + $0x330] sm:$0xff] }
  0xc6   : > { %1711 = vmatprep.subr.mxu1 %v5386_v61  ;;  %1924 = vmatprep.subr.mxu0 %v5386_v61  ;;  %5388 = vst [vmem:[#allocation7_spill] sm:$0xff] %v4288_v10 }
  0xc7   : > { %1712 = vmatpush2.msra.mxu1 %v1625_v19  ;;  %1925 = vmatpush2.msra.mxu0 %v4265_v28  ;;  %v372_v19 = vrot.slane %v3863_v20, 1 }
  0xc8   : > { %1031 = vmatprep.mubr.f32.mxu1 %v4270_v7  ;;  %1389 = vmatprep.mubr.f32.mxu0 %v3756_v36  ;;  %v373_v7 = vrot.slane %v3874_v26, 1 }
  0xc9   : > { %1032 = vmatmul.mubr.f32.gmra.mxu1 %v3835_v8  ;;  %1390 = vmatmul.mubr.f32.gmra.mxu0 %v3728_v25  ;;  %v4304_v25 = vld [vmem:[%s5355_s1 + $0x460] sm:$0xff] }
  0xca   : > { %1713 = vmatprep.subr.mxu1 %v5386_v61  ;;  %1926 = vmatprep.subr.mxu0 %v5386_v61  ;;  %v4309_v13 = vsel %vm301_vm0, %v372_v19, %v373_v7 }
  0xcb   : > { %1714 = vmatpush2.msra.mxu1 %v1624_v24  ;;  %1927 = vmatpush2.msra.mxu0 %v4283_v0  ;;  %5389 = vst [vmem:[#allocation8_spill] sm:$0xff] %v4309_v13  ;;  %v375_v24 = vrot.slane %v246_v4, 1  ;;  %v4322_v4 = vld [vmem:[%s5355_s1 + $0x458] sm:$0xff] }
  0xcc   : > { %1036 = vmatprep.mubr.f32.mxu1 %v4288_v10  ;;  %1394 = vmatprep.mubr.f32.mxu0 %v3770_v42  ;;  %v249_v10 = vld [vmem:[%s3508_s29 + $0x178] sm:$0x1] }
  0xcd   : > { %1037 = vmatmul.mubr.f32.gmra.mxu1 %v3846_v12  ;;  %1395 = vmatmul.mubr.f32.gmra.mxu0 %v3748_v31  ;;  %v1622_v31 = vld [vmem:[%s5355_s1 + $0x328] sm:$0xff]  ;;  %v4327_v19 = vsel %vm301_vm0, %v373_v7, %v375_v24  ;;  %v4343_v7 = vld [vmem:[%s5355_s1 + $0x450] sm:$0xff] }
  0xce   : > { %1715 = vmatprep.subr.mxu1 %v5386_v61  ;;  %1928 = vmatprep.subr.mxu0 %v5386_v61  ;;  %5390 = vst [vmem:[#allocation9_spill] sm:$0xff] %v4327_v19 }
  0xcf   : > { %1716 = vmatpush2.msra.mxu1 %v1623_v3  ;;  %1929 = vmatpush2.msra.mxu0 %v4304_v25  ;;  %v377_v3 = vrot.slane %v3888_v33, 1 }
  0xd0   : > { %1041 = vmatprep.mubr.f32.mxu1 %v4309_v13  ;;  %1399 = vmatprep.mubr.f32.mxu0 %v3782_v47  ;;  %v378_v13 = vrot.slane %v3901_v45, 1 }
  0xd1   : > { %1042 = vmatmul.mubr.f32.gmra.mxu1 %v3863_v20  ;;  %1400 = vmatmul.mubr.f32.gmra.mxu0 %v3756_v36  ;;  %v1621_v36 = vld [vmem:[%s5355_s1 + $0x320] sm:$0xff] }
  0xd2   : > { %1717 = vmatprep.subr.mxu1 %v5386_v61  ;;  %1930 = vmatprep.subr.mxu0 %v5386_v61  ;;  %v4348_v24 = vsel %vm301_vm0, %v377_v3, %v378_v13  ;;  %v1619_v3 = vld [vmem:[%s5355_s1 + $0x310] sm:$0xff] }
  0xd3   : > { %1718 = vmatpush2.msra.mxu1 %v1622_v31  ;;  %1931 = vmatpush2.msra.mxu0 %v4322_v4  ;;  %v380_v31 = vrot.slane %v249_v10, 1 }
  0xd4   : > { %1046 = vmatprep.mubr.f32.mxu1 %v4327_v19  ;;  %1404 = vmatprep.mubr.f32.mxu0 %v3793_v51  ;;  %v1620_v19 = vld [vmem:[%s5355_s1 + $0x318] sm:$0xff] }
  0xd5   : > { %1047 = vmatmul.mubr.f32.gmra.mxu1 %v3874_v26  ;;  %1405 = vmatmul.mubr.f32.gmra.mxu0 %v3770_v42  ;;  %v4361_v42 = vld [vmem:[%s5355_s1 + $0x448] sm:$0xff]  ;;  %v4366_v10 = vsel %vm301_vm0, %v378_v13, %v380_v31  ;;  %v4383_v13 = vld [vmem:[%s5355_s1 + $0x440] sm:$0xff] }
  0xd6   : > { %1719 = vmatprep.subr.mxu1 %v5386_v61  ;;  %1932 = vmatprep.subr.mxu0 %v5386_v61  ;;  %5391 = vst [vmem:[#allocation10_spill] sm:$0xff] %v4366_v10  ;;  %v4419_v31 = vld [vmem:[%s5355_s1 + $0x428] sm:$0xff] }
  0xd7   : > { %1720 = vmatpush2.msra.mxu1 %v1621_v36  ;;  %1933 = vmatpush2.msra.mxu0 %v4343_v7  ;;  %v3262_v36 = vld [vmem:[%s3508_s29] sm:$0xff] }
  0xd8   : > { %1051 = vmatprep.mubr.f32.mxu1 %v4348_v24  ;;  %1409 = vmatprep.mubr.f32.mxu0 %v3810_v60 }
  0xd9   : > { %1052 = vmatmul.mubr.f32.gmra.mxu1 %v3888_v33  ;;  %1410 = vmatmul.mubr.f32.gmra.mxu0 %v3782_v47  ;;  %v1618_v47 = vld [vmem:[%s5355_s1 + $0x308] sm:$0xff] }
  0xda   : > { %1721 = vmatprep.subr.mxu1 %v5386_v61  ;;  %1934 = vmatprep.subr.mxu0 %v5386_v61 }
  0xdb   : > { %1722 = vmatpush2.msra.mxu1 %v1620_v19  ;;  %1935 = vmatpush2.msra.mxu0 %v4361_v42  ;;  %v1617_v19 = vld [vmem:[%s5355_s1 + $0x300] sm:$0xff] }
  0xdc   : > { %1723 = vmatprep.subr.mxu1 %v5386_v61  ;;  %1056 = vmatprep.mubr.f32.mxu1 %v4366_v10  ;;  %v4491_v10 = vld [vmem:[%s5355_s1 + $0x408] sm:$0xff] }
  0xdd   : > { %1414 = vmatprep.mubr.f32.mxu0 %v3821_v1  ;;  %1724 = vmatpush2.msra.mxu1 %v1619_v3  ;;  %v4468_v3 = vld [vmem:[%s5355_s1 + $0x410] sm:$0xff]  ;;  %5395 = vst [vmem:[#allocation14_spill] sm:$0xff] %v4491_v10 }
  0xde   : > { %1057 = vmatmul.mubr.f32.gmra.mxu1 %v3901_v45  ;;  %1415 = vmatmul.mubr.f32.gmra.mxu0 %v3793_v51  ;;  %v4399_v51 = vld [vmem:[%s5355_s1 + $0x438] sm:$0xff]  ;;  %5393 = vst [vmem:[#allocation12_spill] sm:$0xff] %v4468_v3 }
  0xdf   : > { %1725 = vmatprep.subr.mxu1 %v5386_v61  ;;  %1936 = vmatprep.subr.mxu0 %v5386_v61 }
  0xe0   : > { %1726 = vmatpush2.msra.mxu1 %v1618_v47  ;;  %1937 = vmatpush2.msra.mxu0 %v4383_v13 }
  0xe1   : > { %1727 = vmatprep.subr.mxu1 %v5386_v61  ;;  %1419 = vmatprep.mubr.f32.mxu0 %v3835_v8 }
  0xe2   : > { %1728 = vmatpush2.msra.mxu1 %v1617_v19  ;;  %1729 = vmatprep.mubr.f32.mxu1 %v3716_v22  ;;  %v4410_v22 = vld [vmem:[%s5355_s1 + $0x430] sm:$0xff] }
  0xe3   : > { %1420 = vmatmul.mubr.f32.gmra.mxu0 %v3810_v60  ;;  %1730 = vmatmul.mubr.f32.vlgmr.msra.gmra.mxu1 %v3262_v36  ;;  %v3263_v60 = vld [vmem:[%s3508_s29 + $0x8] sm:$0xff] }
  0xe4   : > { %1938 = vmatprep.subr.mxu0 %v5386_v61  ;;  %1424 = vmatprep.mubr.f32.mxu0 %v3846_v12 }
  0xe5   : > { %1939 = vmatpush2.msra.mxu0 %v4399_v51  ;;  %1734 = vmatprep.mubr.f32.mxu1 %v3735_v27  ;;  %v4430_v27 = vld [vmem:[%s3508_s29 + $0x18] sm:$0xff] }
  0xe6   : > { %1940 = vmatprep.subr.mxu0 %v5386_v61  ;;  %3156 = vmatprep.subr.mxu1 %v5386_v61 }
  0xe7   : > { %1425 = vmatmul.mubr.f32.gmra.mxu0 %v3821_v1  ;;  %1735 = vmatmul.mubr.f32.gmra.mxu1 %v3263_v60  ;;  %v4436_v1 = vld [vmem:[%s5355_s1 + $0x420] sm:$0xff]  ;;  %v4485_v60 = vld [vmem:[%s3508_s29 + $0x38] sm:$0xff] }
  0xe8   : > { %1941 = vmatpush2.msra.mxu0 %v4410_v22  ;;  %1429 = vmatprep.mubr.f32.mxu0 %v3863_v20 }
  0xe9   : > { %1739 = vmatprep.mubr.f32.mxu1 %v3761_v38  ;;  %1942 = vmatprep.subr.mxu0 %v5386_v61 }
  0xea   : > { %3188 = vmatpush1.msra.mxu1 %v3932_v2  ;;  %1943 = vmatpush2.msra.mxu0 %v4419_v31  ;;  %v4452_v2 = vld [vmem:[%s5355_s1 + $0x418] sm:$0xff] }
  0xeb   : > { %1430 = vmatmul.mubr.f32.gmra.mxu0 %v3835_v8  ;;  %1740 = vmatmul.mubr.f32.gmra.mxu1 %v4430_v27  ;;  %v4446_v8 = vld [vmem:[%s3508_s29 + $0x20] sm:$0xff]  ;;  %5392 = vst [vmem:[#allocation11_spill] sm:$0xff] %v4452_v2 }
  0xec   : > { %1434 = vmatprep.mubr.f32.mxu0 %v3874_v26  ;;  %1744 = vmatprep.mubr.f32.mxu1 %v3787_v48 }
  0xed   : > { %3157 = vmatprep.subr.mxu1 %v5386_v61  ;;  %1944 = vmatprep.subr.mxu0 %v5386_v61 }
  0xee   : > { %3189 = vmatpush1.msra.mxu1 %v3953_v15  ;;  %1945 = vmatpush2.msra.mxu0 %v4436_v1  ;;  %v4462_v15 = vld [vmem:[%s3508_s29 + $0x30] sm:$0xff] }
  0xef   : > { %1435 = vmatmul.mubr.f32.gmra.mxu0 %v3846_v12  ;;  %1745 = vmatmul.mubr.f32.gmra.mxu1 %v4446_v8 }
  0xf0   : > { %1439 = vmatprep.mubr.f32.mxu0 %v3888_v33  ;;  %1749 = vmatprep.mubr.f32.mxu1 %v3815_v62 }
  0xf1   : > { %3158 = vmatprep.subr.mxu1 %v5386_v61  ;;  %1946 = vmatprep.subr.mxu0 %v5386_v61 }
  0xf2   : > { %3190 = vmatpush1.msra.mxu1 %v3971_v18  ;;  %1947 = vmatpush2.msra.mxu0 %v4452_v2  ;;  %v3110_v12 = vpop.f32.mrf.mxu0  ;;  %v4478_v18 = vld [vmem:[%s3508_s29 + $0x180] sm:$0xff] }
  0xf3   : > { %1440 = vmatmul.mubr.f32.gmra.mxu0 %v3863_v20  ;;  %1750 = vmatmul.mubr.f32.gmra.mxu1 %v4462_v15  ;;  %666 = vst [vmem:[%s4470_s9 + $0x8] sm:$0xff] %v3110_v12  ;;  %5394 = vst [vmem:[#allocation13_spill] sm:$0xff] %v4478_v18  ;;  %v736_v47 = vmul.f32 %v3110_v12, %v3110_v12 }
  0xf4   : > { %1444 = vmatprep.mubr.f32.mxu0 %v3901_v45  ;;  %1754 = vmatprep.mubr.f32.mxu1 %v3840_v9  ;;  %v506_v20 = vpop.f32.mrf.mxu0 }
  0xf5   : > { %3159 = vmatprep.subr.mxu1 %v5386_v61  ;;  %1948 = vmatprep.subr.mxu0 %v5386_v61  ;;  %665 = vst [vmem:[%s4470_s9] sm:$0xff] %v506_v20  ;;  %v697_v19 = vadd.f32 %v3110_v12, %v506_v20  ;;  %v735_v36 = vmul.f32 %v506_v20, %v506_v20  ;;  %v4505_v20 = vld [vmem:[%s3508_s29 + $0x48] sm:$0xff] }
  0xf6   : > { %3191 = vmatpush1.msra.mxu1 %v3992_v39  ;;  %1949 = vmatpush2.msra.mxu0 %v4468_v3 }
  0xf7   : > { %1445 = vmatmul.mubr.f32.gmra.mxu0 %v3874_v26  ;;  %1755 = vmatmul.mubr.f32.gmra.mxu1 %v4485_v60  ;;  %v767_v2 = vadd.f32 %v736_v47, %v735_v36  ;;  %v4498_v26 = vld [vmem:[%s3508_s29 + $0x188] sm:$0xff]  ;;  %v4511_v47 = vld [vmem:[%s5355_s1 + $0x400] sm:$0xff] }
  0xf8   : > { %1449 = vmatprep.mubr.f32.mxu0 %v4478_v18  ;;  %1759 = vmatprep.mubr.f32.mxu1 %v3868_v21  ;;  %v3113_v39 = vpop.f32.mrf.mxu0  ;;  %5396 = vst [vmem:[#allocation15_spill] sm:$0xff] %v4498_v26  ;;  %5397 = vst [vmem:[#allocation16_spill] sm:$0xff] %v4511_v47 }
  0xf9   : > { %3160 = vmatprep.subr.mxu1 %v5386_v61  ;;  %1950 = vmatprep.subr.mxu0 %v5386_v61  ;;  %668 = vst [vmem:[%s4470_s9 + $0x18] sm:$0xff] %v3113_v39 }
  0xfa   : > { %3192 = vmatpush1.msra.mxu1 %v4010_v50  ;;  %1951 = vmatpush2.msra.mxu0 %v4491_v10  ;;  %v516_v12 = vpop.f32.mrf.mxu0 }
  0xfb   : > { %1450 = vmatmul.mubr.f32.gmra.mxu0 %v3888_v33  ;;  %1760 = vmatmul.mubr.f32.gmra.mxu1 %v4505_v20  ;;  %667 = vst [vmem:[%s4470_s9 + $0x10] sm:$0xff] %v516_v12  ;;  %v698_v36 = vadd.f32 %v697_v19, %v516_v12  ;;  %v737_v18 = vmul.f32 %v516_v12, %v516_v12  ;;  %v4523_v19 = vld [vmem:[%s3508_s29 + $0x50] sm:$0xff] }
  0xfc   : > { %1454 = vmatprep.mubr.f32.mxu0 %v4498_v26  ;;  %1764 = vmatprep.mubr.f32.mxu1 %v3893_v35  ;;  %v738_v33 = vmul.f32 %v3113_v39, %v3113_v39 }
  0xfd   : > { %3161 = vmatprep.subr.mxu1 %v5386_v61  ;;  %1952 = vmatprep.subr.mxu0 %v5386_v61  ;;  %v768_v50 = vadd.f32 %v767_v2, %v737_v18  ;;  %v3116_v10 = vpop.f32.mrf.mxu0  ;;  %v699_v3 = vadd.f32 %v3113_v39, %v698_v36 }
  0xfe   : > { %3193 = vmatpush1.msra.mxu1 %v4031_v63  ;;  %1953 = vmatpush2.msra.mxu0 %v4511_v47  ;;  %670 = vst [vmem:[%s4470_s9 + $0x28] sm:$0xff] %v3116_v10  ;;  %v4532_v47 = vld [vmem:[%s3508_s29 + $0x60] sm:$0xff] }
  0xff   : > { %1455 = vmatmul.mubr.f32.gmra.mxu0 %v3901_v45  ;;  %1765 = vmatmul.mubr.f32.gmra.mxu1 %v4523_v19  ;;  %v526_v12 = vpop.f32.mrf.mxu0  ;;  %v769_v26 = vadd.f32 %v768_v50, %v738_v33  ;;  %v740_v45 = vmul.f32 %v3116_v10, %v3116_v10 }
 0x100   : > { %1769 = vmatprep.mubr.f32.mxu1 %v3916_v56  ;;  %1954 = vmatprep.mubr.f32.mxu0 %v3761_v38  ;;  %669 = vst [vmem:[%s4470_s9 + $0x20] sm:$0xff] %v526_v12  ;;  %v700_v2 = vadd.f32 %v699_v3, %v526_v12  ;;  %v739_v63 = vmul.f32 %v526_v12, %v526_v12 }
 0x101   : > { %3162 = vmatprep.subr.mxu1 %v5386_v61 }
 0x102   : > { %3194 = vmatpush1.msra.mxu1 %v4049_v14  ;;  %v770_v18 = vadd.f32 %v769_v26, %v739_v63  ;;  %v3119_v39 = vpop.f32.mrf.mxu0  ;;  %v701_v36 = vadd.f32 %v3116_v10, %v700_v2  ;;  %v4543_v10 = vld [vmem:[%s3508_s29 + $0x68] sm:$0xff]  ;;  %v4554_v63 = vld [vmem:[%s3508_s29 + $0x78] sm:$0xff] }
 0x103   : > { %1770 = vmatmul.mubr.f32.gmra.mxu1 %v4532_v47  ;;  %1955 = vmatmul.mubr.f32.vlgmr.msra.gmra.mxu0 %v4430_v27  ;;  %672 = vst [vmem:[%s4470_s9 + $0x38] sm:$0xff] %v3119_v39  ;;  %v742_v27 = vmul.f32 %v3119_v39, %v3119_v39 }
 0x104   : > { %1774 = vmatprep.mubr.f32.mxu1 %v3937_v5  ;;  %1959 = vmatprep.mubr.f32.mxu0 %v3787_v48  ;;  %v536_v38 = vpop.f32.mrf.mxu0  ;;  %v771_v3 = vadd.f32 %v770_v18, %v740_v45 }
 0x105   : > { %3163 = vmatprep.subr.mxu1 %v5386_v61  ;;  %671 = vst [vmem:[%s4470_s9 + $0x30] sm:$0xff] %v536_v38  ;;  %v702_v14 = vadd.f32 %v701_v36, %v536_v38  ;;  %v741_v26 = vmul.f32 %v536_v38, %v536_v38  ;;  %v4564_v38 = vld [vmem:[%s3508_s29 + $0x80] sm:$0xff] }
 0x106   : > { %3195 = vmatpush1.msra.mxu1 %v4070_v29 }
 0x107   : > { %1775 = vmatmul.mubr.f32.gmra.mxu1 %v4543_v10  ;;  %1960 = vmatmul.mubr.f32.gmra.mxu0 %v4446_v8  ;;  %v772_v48 = vadd.f32 %v771_v3, %v741_v26  ;;  %v3122_v33 = vpop.f32.mrf.mxu0  ;;  %v703_v50 = vadd.f32 %v3119_v39, %v702_v14 }
 0x108   : > { %1779 = vmatprep.mubr.f32.mxu1 %v3958_v16  ;;  %1964 = vmatprep.mubr.f32.mxu0 %v3815_v62  ;;  %674 = vst [vmem:[%s4470_s9 + $0x48] sm:$0xff] %v3122_v33  ;;  %v744_v62 = vmul.f32 %v3122_v33, %v3122_v33 }
 0x109   : > { %3164 = vmatprep.subr.mxu1 %v5386_v61  ;;  %v546_v12 = vpop.f32.mrf.mxu0  ;;  %v773_v29 = vadd.f32 %v772_v48, %v742_v27  ;;  %v4575_v27 = vld [vmem:[%s3508_s29 + $0x90] sm:$0xff] }
 0x10a   : > { %3196 = vmatpush1.msra.mxu1 %v4088_v44  ;;  %673 = vst [vmem:[%s4470_s9 + $0x40] sm:$0xff] %v546_v12  ;;  %v704_v2 = vadd.f32 %v703_v50, %v546_v12  ;;  %v743_v8 = vmul.f32 %v546_v12, %v546_v12 }
 0x10b   : > { %1780 = vmatmul.mubr.f32.gmra.mxu1 %v4554_v63  ;;  %1965 = vmatmul.mubr.f32.gmra.mxu0 %v4462_v15 }
 0x10c   : > { %1784 = vmatprep.mubr.f32.mxu1 %v3976_v23  ;;  %1969 = vmatprep.mubr.f32.mxu0 %v3840_v9  ;;  %v774_v45 = vadd.f32 %v773_v29, %v743_v8  ;;  %v3125_v18 = vpop.f32.mrf.mxu0  ;;  %v705_v39 = vadd.f32 %v3122_v33, %v704_v2  ;;  %v4585_v29 = vld [vmem:[%s3508_s29 + $0x98] sm:$0xff] }
 0x10d   : > { %3165 = vmatprep.subr.mxu1 %v5386_v61  ;;  %676 = vst [vmem:[%s4470_s9 + $0x58] sm:$0xff] %v3125_v18 }
 0x10e   : > { %3197 = vmatpush1.msra.mxu1 %v4109_v43  ;;  %v556_v44 = vpop.f32.mrf.mxu0  ;;  %v775_v36 = vadd.f32 %v774_v45, %v744_v62  ;;  %v746_v43 = vmul.f32 %v3125_v18, %v3125_v18  ;;  %v4596_v62 = vld [vmem:[%s3508_s29 + $0xa8] sm:$0xff] }
 0x10f   : > { %1785 = vmatmul.mubr.f32.gmra.mxu1 %v4564_v38  ;;  %1970 = vmatmul.mubr.f32.gmra.mxu0 %v4485_v60  ;;  %675 = vst [vmem:[%s4470_s9 + $0x50] sm:$0xff] %v556_v44  ;;  %v706_v9 = vadd.f32 %v705_v39, %v556_v44  ;;  %v745_v15 = vmul.f32 %v556_v44, %v556_v44 }
 0x110   : > { %1789 = vmatprep.mubr.f32.mxu1 %v3997_v41  ;;  %1974 = vmatprep.mubr.f32.mxu0 %v3868_v21 }
 0x111   : > { %3166 = vmatprep.subr.mxu1 %v5386_v61  ;;  %v776_v3 = vadd.f32 %v775_v36, %v745_v15  ;;  %v3128_v14 = vpop.f32.mrf.mxu0  ;;  %v707_v26 = vadd.f32 %v3125_v18, %v706_v9 }
 0x112   : > { %3198 = vmatpush1.msra.mxu1 %v4127_v17  ;;  %678 = vst [vmem:[%s4470_s9 + $0x68] sm:$0xff] %v3128_v14  ;;  %v748_v17 = vmul.f32 %v3128_v14, %v3128_v14 }
 0x113   : > { %1790 = vmatmul.mubr.f32.gmra.mxu1 %v4575_v27  ;;  %1975 = vmatmul.mubr.f32.gmra.mxu0 %v4505_v20  ;;  %v566_v60 = vpop.f32.mrf.mxu0  ;;  %v777_v48 = vadd.f32 %v776_v3, %v746_v43  ;;  %v4608_v43 = vld [vmem:[%s3508_s29 + $0xb0] sm:$0xff] }
 0x114   : > { %1794 = vmatprep.mubr.f32.mxu1 %v4015_v53  ;;  %1979 = vmatprep.mubr.f32.mxu0 %v3893_v35  ;;  %677 = vst [vmem:[%s4470_s9 + $0x60] sm:$0xff] %v566_v60  ;;  %v708_v21 = vadd.f32 %v707_v26, %v566_v60  ;;  %v747_v33 = vmul.f32 %v566_v60, %v566_v60 }
 0x115   : > { %3167 = vmatprep.subr.mxu1 %v5386_v61 }
 0x116   : > { %3199 = vmatpush1.msra.mxu1 %v4148_v52  ;;  %v778_v50 = vadd.f32 %v777_v48, %v747_v33  ;;  %v3131_v12 = vpop.f32.mrf.mxu0  ;;  %v709_v20 = vadd.f32 %v3128_v14, %v708_v21 }
 0x117   : > { %1795 = vmatmul.mubr.f32.gmra.mxu1 %v4585_v29  ;;  %1980 = vmatmul.mubr.f32.gmra.mxu0 %v4523_v19  ;;  %680 = vst [vmem:[%s4470_s9 + $0x78] sm:$0xff] %v3131_v12  ;;  %v750_v19 = vmul.f32 %v3131_v12, %v3131_v12 }
 0x118   : > { %1799 = vmatprep.mubr.f32.mxu1 %v4036_v6  ;;  %1984 = vmatprep.mubr.f32.mxu0 %v3916_v56  ;;  %v576_v35 = vpop.f32.mrf.mxu0  ;;  %v779_v2 = vadd.f32 %v778_v50, %v748_v17  ;;  %v4619_v50 = vld [vmem:[%s3508_s29 + $0xc0] sm:$0xff] }
 0x119   : > { %3168 = vmatprep.subr.mxu1 %v5386_v61  ;;  %679 = vst [vmem:[%s4470_s9 + $0x70] sm:$0xff] %v576_v35  ;;  %v710_v52 = vadd.f32 %v709_v20, %v576_v35  ;;  %v749_v8 = vmul.f32 %v576_v35, %v576_v35 }
 0x11a   : > { %3200 = vmatpush1.msra.mxu1 %v4166_v59 }
 0x11b   : > { %1800 = vmatmul.mubr.f32.gmra.mxu1 %v4596_v62  ;;  %1985 = vmatmul.mubr.f32.gmra.mxu0 %v4532_v47  ;;  %v780_v56 = vadd.f32 %v779_v2, %v749_v8  ;;  %v3134_v45 = vpop.f32.mrf.mxu0  ;;  %v903_v18 = vpop.f32.mrf.mxu1  ;;  %v711_v39 = vadd.f32 %v3131_v12, %v710_v52 }
 0x11c   : > { %1804 = vmatprep.mubr.f32.mxu1 %v4054_v32  ;;  %1989 = vmatprep.mubr.f32.mxu0 %v3937_v5  ;;  %682 = vst [vmem:[%s4470_s9 + $0x88] sm:$0xff] %v3134_v45  ;;  %2926 = vst [vmem:[%s4470_s9 + $0x100] sm:$0xff] %v903_v18  ;;  %v1133_v47 = vmul.f32 %v903_v18, %v903_v18  ;;  %v752_v5 = vmul.f32 %v3134_v45, %v3134_v45 }
 0x11d   : > { %3169 = vmatprep.subr.mxu1 %v5386_v61  ;;  %v586_v59 = vpop.f32.mrf.mxu0  ;;  %v781_v44 = vadd.f32 %v780_v56, %v750_v19  ;;  %v905_v36 = vpop.f32.mrf.mxu1 }
 0x11e   : > { %3201 = vmatpush1.msra.mxu1 %v4187_v49  ;;  %681 = vst [vmem:[%s4470_s9 + $0x80] sm:$0xff] %v586_v59  ;;  %v712_v9 = vadd.f32 %v711_v39, %v586_v59  ;;  %v751_v15 = vmul.f32 %v586_v59, %v586_v59 }
 0x11f   : > { %1805 = vmatmul.mubr.f32.gmra.mxu1 %v4608_v43  ;;  %1990 = vmatmul.mubr.f32.gmra.mxu0 %v4543_v10  ;;  %v908_v3 = vpop.f32.mrf.mxu1 }
 0x120   : > { %1809 = vmatprep.mubr.f32.mxu1 %v4075_v30  ;;  %1994 = vmatprep.mubr.f32.mxu0 %v3958_v16  ;;  %v782_v14 = vadd.f32 %v781_v44, %v751_v15  ;;  %v3137_v49 = vpop.f32.mrf.mxu0  ;;  %2927 = vst [vmem:[%s4470_s9 + $0x108] sm:$0xff] %v908_v3  ;;  %v1095_v26 = vadd.f32 %v908_v3, %v903_v18  ;;  %v4631_v18 = vld [vmem:[%s3508_s29 + $0xc8] sm:$0xff] }
 0x121   : > { %v1134_v60 = vmul.f32 %v908_v3, %v908_v3  ;;  %3170 = vmatprep.subr.mxu1 %v5386_v61  ;;  %684 = vst [vmem:[%s4470_s9 + $0x98] sm:$0xff] %v3137_v49  ;;  %v713_v48 = vadd.f32 %v3134_v45, %v712_v9  ;;  %v910_v21 = vpop.f32.mrf.mxu1  ;;  %v754_v52 = vmul.f32 %v3137_v49, %v3137_v49 }
 0x122   : > { %3202 = vmatpush1.msra.mxu1 %v4205_v57  ;;  %v596_v33 = vpop.f32.mrf.mxu0  ;;  %v783_v17 = vadd.f32 %v782_v14, %v752_v5  ;;  %v4643_v14 = vld [vmem:[%s3508_s29 + $0xd8] sm:$0xff] }
 0x123   : > { %v1165_v10 = vadd.f32 %v1134_v60, %v1133_v47  ;;  %1810 = vmatmul.mubr.f32.gmra.mxu1 %v4619_v50  ;;  %1995 = vmatmul.mubr.f32.gmra.mxu0 %v4554_v63  ;;  %683 = vst [vmem:[%s4470_s9 + $0x90] sm:$0xff] %v596_v33  ;;  %v714_v16 = vadd.f32 %v713_v48, %v596_v33  ;;  %v913_v20 = vpop.f32.mrf.mxu1 }
 0x124   : > { %v753_v12 = vmul.f32 %v596_v33, %v596_v33  ;;  %1814 = vmatprep.mubr.f32.mxu1 %v4093_v40  ;;  %1999 = vmatprep.mubr.f32.mxu0 %v3976_v23  ;;  %v3140_v57 = vpop.f32.mrf.mxu0  ;;  %2928 = vst [vmem:[%s4470_s9 + $0x110] sm:$0xff] %v913_v20  ;;  %v1096_v35 = vadd.f32 %v1095_v26, %v913_v20 }
 0x125   : > { %v1135_v2 = vmul.f32 %v913_v20, %v913_v20  ;;  %3171 = vmatprep.subr.mxu1 %v5386_v61  ;;  %686 = vst [vmem:[%s4470_s9 + $0xa8] sm:$0xff] %v3140_v57  ;;  %v715_v63 = vadd.f32 %v3137_v49, %v714_v16  ;;  %v915_v19 = vpop.f32.mrf.mxu1  ;;  %v756_v36 = vmul.f32 %v3140_v57, %v3140_v57  ;;  %v4655_v16 = vld [vmem:[%s3508_s29 + $0xe0] sm:$0xff] }
 0x126   : > { %v784_v8 = vadd.f32 %v783_v17, %v753_v12  ;;  %3203 = vmatpush1.msra.mxu1 %v4226_v58  ;;  %v606_v45 = vpop.f32.mrf.mxu0  ;;  %v4665_v19 = vld [vmem:[%s3508_s29 + $0xf0] sm:$0xff] }
 0x127   : > { %v1166_v56 = vadd.f32 %v1165_v10, %v1135_v2  ;;  %1815 = vmatmul.mubr.f32.gmra.mxu1 %v4631_v18  ;;  %2000 = vmatmul.mubr.f32.gmra.mxu0 %v4564_v38  ;;  %685 = vst [vmem:[%s4470_s9 + $0xa0] sm:$0xff] %v606_v45  ;;  %v716_v23 = vadd.f32 %v715_v63, %v606_v45 }
 0x128   : > { %v755_v39 = vmul.f32 %v606_v45, %v606_v45  ;;  %v785_v59 = vadd.f32 %v784_v8, %v754_v52  ;;  %1819 = vmatprep.mubr.f32.mxu1 %v4114_v11  ;;  %2004 = vmatprep.mubr.f32.mxu0 %v3997_v41  ;;  %v3143_v58 = vpop.f32.mrf.mxu0  ;;  %v918_v44 = vpop.f32.mrf.mxu1 }
 0x129   : > { %3172 = vmatprep.subr.mxu1 %v5386_v61  ;;  %688 = vst [vmem:[%s4470_s9 + $0xb8] sm:$0xff] %v3143_v58  ;;  %2929 = vst [vmem:[%s4470_s9 + $0x118] sm:$0xff] %v918_v44  ;;  %v1097_v9 = vadd.f32 %v1096_v35, %v918_v44  ;;  %v1136_v38 = vmul.f32 %v918_v44, %v918_v44  ;;  %v717_v5 = vadd.f32 %v3140_v57, %v716_v23  ;;  %v4677_v44 = vld [vmem:[%s3508_s29 + $0xf8] sm:$0xff] }
 0x12a   : > { %v786_v47 = vadd.f32 %v785_v59, %v755_v39  ;;  %3204 = vmatpush2.msra.mxu1 %v4244_v46  ;;  %v616_v15 = vpop.f32.mrf.mxu0  ;;  %v920_v3 = vpop.f32.mrf.mxu1  ;;  %v758_v60 = vmul.f32 %v3143_v58, %v3143_v58 }
 0x12b   : > { %1820 = vmatmul.mubr.f32.gmra.mxu1 %v4643_v14  ;;  %2005 = vmatmul.mubr.f32.gmra.mxu0 %v4575_v27  ;;  %v1167_v41 = vadd.f32 %v1166_v56, %v1136_v38  ;;  %687 = vst [vmem:[%s4470_s9 + $0xb0] sm:$0xff] %v616_v15  ;;  %v757_v49 = vmul.f32 %v616_v15, %v616_v15 }
 0x12c   : > { %v787_v26 = vadd.f32 %v786_v47, %v756_v36  ;;  %1824 = vmatprep.mubr.f32.mxu1 %v4132_v34  ;;  %2009 = vmatprep.mubr.f32.mxu0 %v4015_v53  ;;  %v718_v46 = vadd.f32 %v717_v5, %v616_v15 }
 0x12d   : > { %3173 = vmatprep.subr.mxu1 %v5386_v61  ;;  %v3146_v21 = vpop.f32.mrf.mxu0  ;;  %v923_v10 = vpop.f32.mrf.mxu1 }
 0x12e   : > { %v788_v48 = vadd.f32 %v787_v26, %v757_v49  ;;  %3205 = vmatpush2.msra.mxu1 %v4265_v28  ;;  %690 = vst [vmem:[%s4470_s9 + $0xc8] sm:$0xff] %v3146_v21  ;;  %2930 = vst [vmem:[%s4470_s9 + $0x120] sm:$0xff] %v923_v10  ;;  %v1098_v27 = vadd.f32 %v1097_v9, %v923_v10  ;;  %v1137_v33 = vmul.f32 %v923_v10, %v923_v10  ;;  %v4689_v26 = vld [vmem:[%s3508_s29 + $0x108] sm:$0xff] }
 0x12f   : > { %v719_v17 = vadd.f32 %v3143_v58, %v718_v46  ;;  %1825 = vmatmul.mubr.f32.gmra.mxu1 %v4655_v16  ;;  %2010 = vmatmul.mubr.f32.gmra.mxu0 %v4585_v29  ;;  %v626_v53 = vpop.f32.mrf.mxu0  ;;  %v925_v20 = vpop.f32.mrf.mxu1  ;;  %v760_v2 = vmul.f32 %v3146_v21, %v3146_v21 }
 0x130   : > { %v789_v12 = vadd.f32 %v788_v48, %v758_v60  ;;  %1829 = vmatprep.mubr.f32.mxu1 %v4153_v54  ;;  %2014 = vmatprep.mubr.f32.mxu0 %v4036_v6  ;;  %v1168_v28 = vadd.f32 %v1167_v41, %v1137_v33  ;;  %689 = vst [vmem:[%s4470_s9 + $0xc0] sm:$0xff] %v626_v53  ;;  %v5398_v60 = vld [vmem:[#allocation3_spill] sm:$0xff] }
 0x131   : > { %v720_v57 = vadd.f32 %v719_v17, %v626_v53  ;;  %v759_v35 = vmul.f32 %v626_v53, %v626_v53  ;;  %3174 = vmatprep.subr.mxu1 %v5386_v61 }
 0x132   : > { %3206 = vmatpush2.msra.mxu1 %v4283_v0  ;;  %v3149_v52 = vpop.f32.mrf.mxu0  ;;  %v928_v8 = vpop.f32.mrf.mxu1 }
 0x133   : > { %v790_v29 = vadd.f32 %v789_v12, %v759_v35  ;;  %v721_v63 = vadd.f32 %v3146_v21, %v720_v57  ;;  %1830 = vmatmul.mubr.f32.gmra.mxu1 %v4665_v19  ;;  %2015 = vmatmul.mubr.f32.gmra.mxu0 %v4596_v62  ;;  %692 = vst [vmem:[%s4470_s9 + $0xd8] sm:$0xff] %v3149_v52  ;;  %2931 = vst [vmem:[%s4470_s9 + $0x128] sm:$0xff] %v928_v8  ;;  %v4700_v12 = vld [vmem:[%s3508_s29 + $0x110] sm:$0xff] }
 0x134   : > { %v1099_v6 = vadd.f32 %v1098_v27, %v928_v8  ;;  %v1138_v56 = vmul.f32 %v928_v8, %v928_v8  ;;  %1834 = vmatprep.mubr.f32.mxu1 %v4171_v55  ;;  %2019 = vmatprep.mubr.f32.mxu0 %v4054_v32  ;;  %v636_v0 = vpop.f32.mrf.mxu0  ;;  %v930_v23 = vpop.f32.mrf.mxu1  ;;  %v762_v58 = vmul.f32 %v3149_v52, %v3149_v52 }
 0x135   : > { %v791_v45 = vadd.f32 %v790_v29, %v760_v2  ;;  %3175 = vmatprep.subr.mxu1 %v5386_v61  ;;  %691 = vst [vmem:[%s4470_s9 + $0xd0] sm:$0xff] %v636_v0  ;;  %v722_v59 = vadd.f32 %v721_v63, %v636_v0  ;;  %v761_v62 = vmul.f32 %v636_v0, %v636_v0  ;;  %v4716_v63 = vld [vmem:[%s3508_s29 + $0x120] sm:$0xff]  ;;  %v5400_v0 = vld [vmem:[#allocation5_spill] sm:$0xff] }
 0x136   : > { %v1169_v39 = vadd.f32 %v1168_v28, %v1138_v56  ;;  %3207 = vmatpush2.msra.mxu1 %v4304_v25  ;;  %v5399_v28 = vld [vmem:[#allocation4_spill] sm:$0xff] }
 0x137   : > { %1835 = vmatmul.mubr.f32.gmra.mxu1 %v4677_v44  ;;  %2020 = vmatmul.mubr.f32.gmra.mxu0 %v4608_v43  ;;  %v792_v32 = vadd.f32 %v791_v45, %v761_v62  ;;  %v3152_v36 = vpop.f32.mrf.mxu0  ;;  %v933_v47 = vpop.f32.mrf.mxu1  ;;  %v723_v9 = vadd.f32 %v3149_v52, %v722_v59 }
 0x138   : > { %1839 = vmatprep.mubr.f32.mxu1 %v4192_v37  ;;  %2024 = vmatprep.mubr.f32.mxu0 %v4075_v30  ;;  %694 = vst [vmem:[%s4470_s9 + $0xe8] sm:$0xff] %v3152_v36  ;;  %2932 = vst [vmem:[%s4470_s9 + $0x130] sm:$0xff] %v933_v47  ;;  %v1100_v25 = vadd.f32 %v1099_v6, %v933_v47  ;;  %v1139_v38 = vmul.f32 %v933_v47, %v933_v47 }
 0x139   : > { %3176 = vmatprep.subr.mxu1 %v5386_v61  ;;  %v646_v15 = vpop.f32.mrf.mxu0  ;;  %v793_v5 = vadd.f32 %v792_v32, %v762_v58  ;;  %v935_v3 = vpop.f32.mrf.mxu1  ;;  %v764_v30 = vmul.f32 %v3152_v36, %v3152_v36  ;;  %v4727_v58 = vld [vmem:[%s3508_s29 + $0x128] sm:$0xff] }
 0x13a   : > { %v1170_v43 = vadd.f32 %v1169_v39, %v1139_v38  ;;  %3208 = vmatpush2.msra.mxu1 %v4322_v4  ;;  %693 = vst [vmem:[%s4470_s9 + $0xe0] sm:$0xff] %v646_v15  ;;  %v724_v41 = vadd.f32 %v723_v9, %v646_v15  ;;  %v763_v49 = vmul.f32 %v646_v15, %v646_v15  ;;  %v5401_v9 = vld [vmem:[#allocation6_spill] sm:$0xff] }
 0x13b   : > { %1840 = vmatmul.mubr.f32.gmra.mxu1 %v4689_v26  ;;  %2025 = vmatmul.mubr.f32.gmra.mxu0 %v4619_v50  ;;  %v4738_v3 = vld [vmem:[%s3508_s29 + $0x138] sm:$0xff] }
 0x13c   : > { %v794_v46 = vadd.f32 %v793_v5, %v763_v49  ;;  %1844 = vmatprep.mubr.f32.mxu1 %v5398_v60  ;;  %2029 = vmatprep.mubr.f32.mxu0 %v4093_v40  ;;  %v3155_v48 = vpop.f32.mrf.mxu0  ;;  %v938_v21 = vpop.f32.mrf.mxu1  ;;  %v725_v4 = vadd.f32 %v3152_v36, %v724_v41 }
 0x13d   : > { %696 = vst [vmem:[%s4470_s9 + $0xf8] sm:$0xff] %v3155_v48  ;;  %2933 = vst [vmem:[%s4470_s9 + $0x138] sm:$0xff] %v938_v21  ;;  %v1101_v10 = vadd.f32 %v1100_v25, %v938_v21  ;;  %v1140_v27 = vmul.f32 %v938_v21, %v938_v21  ;;  %3177 = vmatprep.subr.mxu1 %v5386_v61 }
 0x13e   : > { %3209 = vmatpush2.msra.mxu1 %v4343_v7  ;;  %v656_v50 = vpop.f32.mrf.mxu0  ;;  %v795_v33 = vadd.f32 %v794_v46, %v764_v30  ;;  %v940_v17 = vpop.f32.mrf.mxu1  ;;  %v766_v7 = vmul.f32 %v3155_v48, %v3155_v48  ;;  %v5402_v30 = vld [vmem:[#allocation7_spill] sm:$0xff] }
 0x13f   : > { %v1171_v53 = vadd.f32 %v1170_v43, %v1140_v27  ;;  %1845 = vmatmul.mubr.f32.gmra.mxu1 %v4700_v12  ;;  %2030 = vmatmul.mubr.f32.gmra.mxu0 %v4631_v18  ;;  %695 = vst [vmem:[%s4470_s9 + $0xf0] sm:$0xff] %v656_v50  ;;  %v726_v40 = vadd.f32 %v725_v4, %v656_v50  ;;  %v5403_v17 = vld [vmem:[#allocation8_spill] sm:$0xff] }
 0x140   : > { %v765_v20 = vmul.f32 %v656_v50, %v656_v50  ;;  %1849 = vmatprep.mubr.f32.mxu1 %v5399_v28  ;;  %2034 = vmatprep.mubr.f32.mxu0 %v4114_v11 }
 0x141   : > { %v4707_v57 = vadd.f32 %v3155_v48, %v726_v40  ;;  %v943_v2 = vpop.f32.mrf.mxu1  ;;  %v1301_v29 = vpop.f32.mrf.mxu0  ;;  %3178 = vmatprep.subr.mxu1 %v5386_v61 }
 0x142   : > { %v796_v35 = vadd.f32 %v795_v33, %v765_v20  ;;  %2934 = vst [vmem:[%s4470_s9 + $0x140] sm:$0xff] %v943_v2  ;;  %v1102_v52 = vadd.f32 %v1101_v10, %v943_v2  ;;  %v1141_v8 = vmul.f32 %v943_v2, %v943_v2  ;;  %2958 = vst [vmem:[%s4470_s9 + $0x200] sm:$0xff] %v1301_v29  ;;  %3210 = vmatpush2.msra.mxu1 %v4361_v42  ;;  %v4749_v10 = vld [vmem:[%s3508_s29 + $0x140] sm:$0xff] }
 0x143   : > { %1850 = vmatmul.mubr.f32.gmra.mxu1 %v4716_v63  ;;  %2035 = vmatmul.mubr.f32.gmra.mxu0 %v4643_v14  ;;  %v945_v11 = vpop.f32.mrf.mxu1  ;;  %v1303_v6 = vpop.f32.mrf.mxu0  ;;  %v1531_v45 = vmul.f32 %v1301_v29, %v1301_v29 }
 0x144   : > { %v4713_v18 = vadd.f32 %v796_v35, %v766_v7  ;;  %v1172_v56 = vadd.f32 %v1171_v53, %v1141_v8  ;;  %1854 = vmatprep.mubr.f32.mxu1 %v5400_v0  ;;  %2039 = vmatprep.mubr.f32.mxu0 %v4132_v34  ;;  %v4760_v35 = vld [vmem:[%s3508_s29 + $0x150] sm:$0xff] }
 0x145   : > { %v948_v23 = vpop.f32.mrf.mxu1  ;;  %v1306_v42 = vpop.f32.mrf.mxu0  ;;  %3179 = vmatprep.subr.mxu1 %v5386_v61  ;;  %v5404_v8 = vld [vmem:[#allocation9_spill] sm:$0xff] }
 0x146   : > { %2935 = vst [vmem:[%s4470_s9 + $0x148] sm:$0xff] %v948_v23  ;;  %v1103_v39 = vadd.f32 %v1102_v52, %v948_v23  ;;  %v1142_v59 = vmul.f32 %v948_v23, %v948_v23  ;;  %2959 = vst [vmem:[%s4470_s9 + $0x208] sm:$0xff] %v1306_v42  ;;  %v1493_v62 = vadd.f32 %v1306_v42, %v1301_v29  ;;  %3211 = vmatpush2.msra.mxu1 %v4383_v13  ;;  %v4771_v23 = vld [vmem:[%s3508_s29 + $0x158] sm:$0xff] }
 0x147   : > { %v1532_v14 = vmul.f32 %v1306_v42, %v1306_v42  ;;  %1855 = vmatmul.mubr.f32.gmra.mxu1 %v4727_v58  ;;  %2040 = vmatmul.mubr.f32.gmra.mxu0 %v4655_v16  ;;  %v950_v34 = vpop.f32.mrf.mxu1  ;;  %v1308_v32 = vpop.f32.mrf.mxu0 }
 0x148   : > { %v1173_v36 = vadd.f32 %v1172_v56, %v1142_v59  ;;  %1859 = vmatprep.mubr.f32.mxu1 %v5401_v9  ;;  %2044 = vmatprep.mubr.f32.mxu0 %v4153_v54 }
 0x149   : > { %v1563_v47 = vadd.f32 %v1532_v14, %v1531_v45  ;;  %v953_v25 = vpop.f32.mrf.mxu1  ;;  %v1311_v38 = vpop.f32.mrf.mxu0  ;;  %3180 = vmatprep.subr.mxu1 %v5386_v61 }
 0x14a   : > { %2936 = vst [vmem:[%s4470_s9 + $0x150] sm:$0xff] %v953_v25  ;;  %v1104_v13 = vadd.f32 %v1103_v39, %v953_v25  ;;  %v1143_v15 = vmul.f32 %v953_v25, %v953_v25  ;;  %2960 = vst [vmem:[%s4470_s9 + $0x210] sm:$0xff] %v1311_v38  ;;  %v1494_v5 = vadd.f32 %v1493_v62, %v1311_v38  ;;  %3212 = vmatpush2.msra.mxu1 %v4399_v51 }
 0x14b   : > { %v1533_v16 = vmul.f32 %v1311_v38, %v1311_v38  ;;  %1860 = vmatmul.mubr.f32.gmra.mxu1 %v4738_v3  ;;  %2045 = vmatmul.mubr.f32.gmra.mxu0 %v4665_v19  ;;  %v955_v54 = vpop.f32.mrf.mxu1  ;;  %v1313_v43 = vpop.f32.mrf.mxu0 }
 0x14c   : > { %v1174_v41 = vadd.f32 %v1173_v36, %v1143_v15  ;;  %1864 = vmatprep.mubr.f32.mxu1 %v5402_v30  ;;  %2049 = vmatprep.mubr.f32.mxu0 %v4171_v55  ;;  %v5405_v36 = vld [vmem:[#allocation11_spill] sm:$0xff]  ;;  %v5406_v15 = vld [vmem:[#allocation10_spill] sm:$0xff] }
 0x14d   : > { %v1564_v49 = vadd.f32 %v1563_v47, %v1533_v16  ;;  %v958_v46 = vpop.f32.mrf.mxu1  ;;  %v1316_v48 = vpop.f32.mrf.mxu0  ;;  %3181 = vmatprep.subr.mxu1 %v5386_v61  ;;  %v3292_v47 = vld [vmem:[%s3508_s29 + $0x168] sm:$0xff] }
 0x14e   : > { %2937 = vst [vmem:[%s4470_s9 + $0x158] sm:$0xff] %v958_v46  ;;  %v1105_v51 = vadd.f32 %v1104_v13, %v958_v46  ;;  %v1144_v21 = vmul.f32 %v958_v46, %v958_v46  ;;  %2961 = vst [vmem:[%s4470_s9 + $0x218] sm:$0xff] %v1316_v48  ;;  %v1495_v4 = vadd.f32 %v1494_v5, %v1316_v48  ;;  %3213 = vmatpush2.msra.mxu1 %v4410_v22  ;;  %v5407_v5 = vld [vmem:[#allocation12_spill] sm:$0xff]  ;;  %v3293_v46 = vld [vmem:[%s3508_s29 + $0x170] sm:$0xff] }
 0x14f   : > { %v1534_v19 = vmul.f32 %v1316_v48, %v1316_v48  ;;  %1865 = vmatmul.mubr.f32.gmra.mxu1 %v4749_v10  ;;  %2050 = vmatmul.mubr.f32.gmra.mxu0 %v4677_v44  ;;  %v960_v55 = vpop.f32.mrf.mxu1  ;;  %v1318_v27 = vpop.f32.mrf.mxu0 }
 0x150   : > { %v1175_v50 = vadd.f32 %v1174_v41, %v1144_v21  ;;  %1869 = vmatprep.mubr.f32.mxu1 %v5403_v17  ;;  %2054 = vmatprep.mubr.f32.mxu0 %v4192_v37  ;;  %v5410_v27 = vld [vmem:[#allocation15_spill] sm:$0xff] }
 0x151   : > { %v1565_v33 = vadd.f32 %v1564_v49, %v1534_v19  ;;  %v963_v53 = vpop.f32.mrf.mxu1  ;;  %v1321_v40 = vpop.f32.mrf.mxu0  ;;  %3182 = vmatprep.subr.mxu1 %v5386_v61  ;;  %v5409_v19 = vld [vmem:[#allocation13_spill] sm:$0xff] }
 0x152   : > { %2938 = vst [vmem:[%s4470_s9 + $0x160] sm:$0xff] %v963_v53  ;;  %v1106_v22 = vadd.f32 %v1105_v51, %v963_v53  ;;  %v1145_v20 = vmul.f32 %v963_v53, %v963_v53  ;;  %2962 = vst [vmem:[%s4470_s9 + $0x220] sm:$0xff] %v1321_v40  ;;  %v1496_v7 = vadd.f32 %v1495_v4, %v1321_v40  ;;  %3214 = vmatpush2.msra.mxu1 %v4419_v31  ;;  %v5408_v4 = vld [vmem:[#allocation14_spill] sm:$0xff]  ;;  %v5411_v53 = vld [vmem:[#allocation16_spill] sm:$0xff] }
 0x153   : > { %v1535_v44 = vmul.f32 %v1321_v40, %v1321_v40  ;;  %1870 = vmatmul.mubr.f32.gmra.mxu1 %v4760_v35  ;;  %2055 = vmatmul.mubr.f32.gmra.mxu0 %v4689_v26  ;;  %v965_v37 = vpop.f32.mrf.mxu1  ;;  %v1323_v2 = vpop.f32.mrf.mxu0  ;;  %v417_v55 = vrot.slane %v5409_v19, 1 }
 0x154   : > { %v1176_v29 = vadd.f32 %v1175_v50, %v1145_v20  ;;  %1874 = vmatprep.mubr.f32.mxu1 %v5404_v8  ;;  %2059 = vmatprep.mubr.f32.mxu0 %v5398_v60  ;;  %v418_v50 = vrot.slane %v5410_v27, 1 }
 0x155   : > { %v1566_v52 = vadd.f32 %v1565_v33, %v1535_v44  ;;  %v968_v11 = vpop.f32.mrf.mxu1  ;;  %v1326_v6 = vpop.f32.mrf.mxu0  ;;  %3183 = vmatprep.subr.mxu1 %v5386_v61 }
 0x156   : > { %2939 = vst [vmem:[%s4470_s9 + $0x168] sm:$0xff] %v968_v11  ;;  %v1107_v31 = vadd.f32 %v1106_v22, %v968_v11  ;;  %v1146_v56 = vmul.f32 %v968_v11, %v968_v11  ;;  %2963 = vst [vmem:[%s4470_s9 + $0x228] sm:$0xff] %v1326_v6  ;;  %v1497_v45 = vadd.f32 %v1496_v7, %v1326_v6  ;;  %3215 = vmatpush2.msra.mxu1 %v4436_v1 }
 0x157   : > { %v1536_v26 = vmul.f32 %v1326_v6, %v1326_v6  ;;  %1875 = vmatmul.mubr.f32.gmra.mxu1 %v4771_v23  ;;  %2060 = vmatmul.mubr.f32.gmra.mxu0 %v4700_v12  ;;  %v970_v60 = vpop.f32.mrf.mxu1  ;;  %v1328_v42 = vpop.f32.mrf.mxu0 }
 0x158   : > { %v1177_v39 = vadd.f32 %v1176_v29, %v1146_v56  ;;  %1879 = vmatprep.mubr.f32.mxu1 %v4348_v24  ;;  %2064 = vmatprep.mubr.f32.mxu0 %v5399_v28 }
 0x159   : > { %v1567_v59 = vadd.f32 %v1566_v52, %v1536_v26  ;;  %v973_v62 = vpop.f32.mrf.mxu1  ;;  %v1331_v14 = vpop.f32.mrf.mxu0  ;;  %3184 = vmatprep.subr.mxu1 %v5386_v61  ;;  %v419_v52 = vsel %vm301_vm0, %v417_v55, %v418_v50 }
 0x15a   : > { %2940 = vst [vmem:[%s4470_s9 + $0x170] sm:$0xff] %v973_v62  ;;  %v1108_v1 = vadd.f32 %v1107_v31, %v973_v62  ;;  %v1147_v34 = vmul.f32 %v973_v62, %v973_v62  ;;  %2964 = vst [vmem:[%s4470_s9 + $0x230] sm:$0xff] %v1331_v14  ;;  %v1498_v32 = vadd.f32 %v1497_v45, %v1331_v14  ;;  %3216 = vmatpush2.msra.mxu1 %v5405_v36 }
 0x15b   : > { %v1537_v12 = vmul.f32 %v1331_v14, %v1331_v14  ;;  %1880 = vmatmul.mubr.f32.gmra.mxu1 %v3292_v47  ;;  %2065 = vmatmul.mubr.f32.gmra.mxu0 %v4716_v63  ;;  %v975_v25 = vpop.f32.mrf.mxu1  ;;  %v1333_v28 = vpop.f32.mrf.mxu0 }
 0x15c   : > { %v1178_v38 = vadd.f32 %v1177_v39, %v1147_v34  ;;  %3185 = vmatprep.subr.mxu1 %v5386_v61  ;;  %1884 = vmatprep.mubr.f32.mxu1 %v5406_v15  ;;  %v3294_v34 = vld [vmem:[%s3508_s29 + $0x180] sm:$0xff] }
 0x15d   : > { %v1568_v13 = vadd.f32 %v1567_v59, %v1537_v12  ;;  %3217 = vmatpush2.msra.mxu1 %v5407_v5  ;;  %2069 = vmatprep.mubr.f32.mxu0 %v5400_v0  ;;  %v978_v16 = vpop.f32.mrf.mxu1  ;;  %v1336_v54 = vpop.f32.mrf.mxu0 }
 0x15e   : > { %2941 = vst [vmem:[%s4470_s9 + $0x178] sm:$0xff] %v978_v16  ;;  %v1109_v43 = vadd.f32 %v1108_v1, %v978_v16  ;;  %v1148_v41 = vmul.f32 %v978_v16, %v978_v16  ;;  %2965 = vst [vmem:[%s4470_s9 + $0x238] sm:$0xff] %v1336_v54  ;;  %v1499_v63 = vadd.f32 %v1498_v32, %v1336_v54  ;;  %3186 = vmatprep.subr.mxu1 %v5386_v61 }
 0x15f   : > { %v1538_v49 = vmul.f32 %v1336_v54, %v1336_v54  ;;  %1885 = vmatmul.mubr.f32.gmra.mxu1 %v3293_v46  ;;  %2070 = vmatmul.mubr.f32.gmra.mxu0 %v4727_v58  ;;  %v980_v48 = vpop.f32.mrf.mxu1  ;;  %v1338_v51 = vpop.f32.mrf.mxu0 }
 0x160   : > { %v1179_v21 = vadd.f32 %v1178_v38, %v1148_v41  ;;  %3218 = vmatpush2.msra.mxu1 %v5408_v4  ;;  %2074 = vmatprep.mubr.f32.mxu0 %v5401_v9  ;;  %v252_v9 = vld [vmem:[%s3508_s29 + $0x190] sm:$0x1] }
 0x161   : > { %v1569_v0 = vadd.f32 %v1568_v13, %v1538_v49  ;;  %3187 = vmatprep.subr.mxu1 %v5386_v61  ;;  %2094 = vmatprep.mubr.f32.mxu1 %v4348_v24  ;;  %v983_v33 = vpop.f32.mrf.mxu1  ;;  %v1341_v58 = vpop.f32.mrf.mxu0  ;;  %v420_v11 = vrot.slane %v252_v9, 1 }
 0x162   : > { %3219 = vmatpush2.msra.mxu1 %v5411_v53  ;;  %2942 = vst [vmem:[%s4470_s9 + $0x180] sm:$0xff] %v983_v33  ;;  %v1110_v40 = vadd.f32 %v1109_v43, %v983_v33  ;;  %v1149_v22 = vmul.f32 %v983_v33, %v983_v33  ;;  %2966 = vst [vmem:[%s4470_s9 + $0x240] sm:$0xff] %v1341_v58  ;;  %v1500_v20 = vadd.f32 %v1499_v63, %v1341_v58 }
 0x163   : > { %v1539_v7 = vmul.f32 %v1341_v58, %v1341_v58  ;;  %2075 = vmatmul.mubr.f32.gmra.mxu0 %v4738_v3  ;;  %2095 = vmatmul.mubr.f32.vlgmr.msra.gmra.mxu1 %v3292_v47  ;;  %v985_v44 = vpop.f32.mrf.mxu1  ;;  %v1343_v61 = vpop.f32.mrf.mxu0  ;;  %v421_v59 = vsel %vm301_vm0, %v418_v50, %v420_v11 }
 0x164   : > { %v1180_v37 = vadd.f32 %v1179_v21, %v1149_v22  ;;  %2079 = vmatprep.mubr.f32.mxu0 %v5402_v30  ;;  %2099 = vmatprep.mubr.f32.mxu1 %v5406_v15  ;;  %v3295_v15 = vld [vmem:[%s3508_s29 + $0x188] sm:$0xff]  ;;  %s2925_s29 = sshll.u32 %s3474_s27, 1  ;;  %s3027_s27 = sshll.u32 (%p3389_p3), %s3326_s14, 8 }
 0x165   : > { %v1570_v24 = vadd.f32 %v1569_v0, %v1539_v7  ;;  %v988_v2 = vpop.f32.mrf.mxu1  ;;  %v1346_v29 = vpop.f32.mrf.mxu0  ;;  %s198_s24 = scalar_lea.vmem %s5357_s3, %s2925_s29  ;;  %s5084_s28 = scalar_lea.vmem (%p3389_p3), %s5356_s2, %s3027_s27 }
 0x166   : > { %2943 = vst [vmem:[%s4470_s9 + $0x188] sm:$0xff] %v988_v2  ;;  %v1111_v6 = vadd.f32 %v1110_v40, %v988_v2  ;;  %v1150_v31 = vmul.f32 %v988_v2, %v988_v2  ;;  %2967 = vst [vmem:[%s4470_s9 + $0x248] sm:$0xff] %v1346_v29  ;;  %v1501_v3 = vadd.f32 %v1500_v20, %v1346_v29 }
 0x167   : > { %v1540_v56 = vmul.f32 %v1346_v29, %v1346_v29  ;;  %2080 = vmatmul.mubr.f32.gmra.mxu0 %v4749_v10  ;;  %2100 = vmatmul.mubr.f32.gmra.mxu1 %v3293_v46  ;;  %v990_v45 = vpop.f32.mrf.mxu1  ;;  %v1348_v30 = vpop.f32.mrf.mxu0 }
 0x168   : > { %v1181_v26 = vadd.f32 %v1180_v37, %v1150_v31  ;;  %2084 = vmatprep.mubr.f32.mxu0 %v5403_v17  ;;  %2104 = vmatprep.mubr.f32.mxu1 %v419_v52 }
 0x169   : > { %v1571_v60 = vadd.f32 %v1570_v24, %v1540_v56  ;;  %v993_v42 = vpop.f32.mrf.mxu1  ;;  %v1351_v39 = vpop.f32.mrf.mxu0 }
 0x16a   : > { %2944 = vst [vmem:[%s4470_s9 + $0x190] sm:$0xff] %v993_v42  ;;  %v1112_v62 = vadd.f32 %v1111_v6, %v993_v42  ;;  %v1151_v14 = vmul.f32 %v993_v42, %v993_v42  ;;  %2968 = vst [vmem:[%s4470_s9 + $0x250] sm:$0xff] %v1351_v39  ;;  %v1502_v1 = vadd.f32 %v1501_v3, %v1351_v39 }
 0x16b   : > { %v1541_v10 = vmul.f32 %v1351_v39, %v1351_v39  ;;  %2085 = vmatmul.mubr.f32.gmra.mxu0 %v4760_v35  ;;  %2105 = vmatmul.mubr.f32.gmra.mxu1 %v3294_v34  ;;  %v995_v32 = vpop.f32.mrf.mxu1  ;;  %v1353_v17 = vpop.f32.mrf.mxu0 }
 0x16c   : > { %v1182_v12 = vadd.f32 %v1181_v26, %v1151_v14  ;;  %2089 = vmatprep.mubr.f32.mxu0 %v5404_v8  ;;  %2109 = vmatprep.mubr.f32.mxu1 %v421_v59 }
 0x16d   : > { %v1572_v36 = vadd.f32 %v1571_v60, %v1541_v10  ;;  %v998_v47 = vpop.f32.mrf.mxu1  ;;  %v1356_v25 = vpop.f32.mrf.mxu0 }
 0x16e   : > { %2945 = vst [vmem:[%s4470_s9 + $0x198] sm:$0xff] %v998_v47  ;;  %v1113_v28 = vadd.f32 %v1112_v62, %v998_v47  ;;  %v1152_v38 = vmul.f32 %v998_v47, %v998_v47  ;;  %2969 = vst [vmem:[%s4470_s9 + $0x258] sm:$0xff] %v1356_v25  ;;  %v1503_v13 = vadd.f32 %v1502_v1, %v1356_v25 }
 0x16f   : > { %v1542_v35 = vmul.f32 %v1356_v25, %v1356_v25  ;;  %2090 = vmatmul.mubr.f32.gmra.mxu0 %v4771_v23  ;;  %2110 = vmatmul.mubr.f32.gmra.mxu1 %v3295_v15  ;;  %v1000_v5 = vpop.f32.mrf.mxu1  ;;  %v1358_v16 = vpop.f32.mrf.mxu0 }
 0x170   : > { %v1183_v54 = vadd.f32 %v1182_v12, %v1152_v38 }
 0x171   : > { %v1573_v8 = vadd.f32 %v1572_v36, %v1542_v35  ;;  %v1003_v43 = vpop.f32.mrf.mxu1  ;;  %v1361_v41 = vpop.f32.mrf.mxu0 }
 0x172   : > { %2946 = vst [vmem:[%s4470_s9 + $0x1a0] sm:$0xff] %v1003_v43  ;;  %v1114_v63 = vadd.f32 %v1113_v28, %v1003_v43  ;;  %v1153_v49 = vmul.f32 %v1003_v43, %v1003_v43  ;;  %2970 = vst [vmem:[%s4470_s9 + $0x260] sm:$0xff] %v1361_v41  ;;  %v1504_v46 = vadd.f32 %v1503_v13, %v1361_v41 }
 0x173   : > { %v1543_v48 = vmul.f32 %v1361_v41, %v1361_v41  ;;  %v1005_v51 = vpop.f32.mrf.mxu1  ;;  %v1363_v21 = vpop.f32.mrf.mxu0 }
 0x174   : > { %v1184_v0 = vadd.f32 %v1183_v54, %v1153_v49 }
 0x175   : > { %v1574_v23 = vadd.f32 %v1573_v8, %v1543_v48  ;;  %v1008_v4 = vpop.f32.mrf.mxu1  ;;  %v1366_v19 = vpop.f32.mrf.mxu0 }
 0x176   : > { %2947 = vst [vmem:[%s4470_s9 + $0x1a8] sm:$0xff] %v1008_v4  ;;  %v1115_v55 = vadd.f32 %v1114_v63, %v1008_v4  ;;  %v1154_v27 = vmul.f32 %v1008_v4, %v1008_v4  ;;  %2971 = vst [vmem:[%s4470_s9 + $0x268] sm:$0xff] %v1366_v19  ;;  %v1505_v50 = vadd.f32 %v1504_v46, %v1366_v19 }
 0x177   : > { %v1544_v33 = vmul.f32 %v1366_v19, %v1366_v19  ;;  %v1010_v58 = vpop.f32.mrf.mxu1  ;;  %v1368_v53 = vpop.f32.mrf.mxu0 }
 0x178   : > { %v1185_v40 = vadd.f32 %v1184_v0, %v1154_v27 }
 0x179   : > { %v1575_v22 = vadd.f32 %v1574_v23, %v1544_v33  ;;  %v1013_v20 = vpop.f32.mrf.mxu1  ;;  %v1371_v7 = vpop.f32.mrf.mxu0 }
 0x17a   : > { %2948 = vst [vmem:[%s4470_s9 + $0x1b0] sm:$0xff] %v1013_v20  ;;  %v1116_v9 = vadd.f32 %v1115_v55, %v1013_v20  ;;  %v1155_v44 = vmul.f32 %v1013_v20, %v1013_v20  ;;  %2972 = vst [vmem:[%s4470_s9 + $0x270] sm:$0xff] %v1371_v7  ;;  %v1506_v61 = vadd.f32 %v1505_v50, %v1371_v7 }
 0x17b   : > { %v1545_v37 = vmul.f32 %v1371_v7, %v1371_v7  ;;  %v1015_v24 = vpop.f32.mrf.mxu1  ;;  %v1373_v2 = vpop.f32.mrf.mxu0 }
 0x17c   : > { %v1186_v29 = vadd.f32 %v1185_v40, %v1155_v44 }
 0x17d   : > { %v1576_v52 = vadd.f32 %v1575_v22, %v1545_v37  ;;  %v1018_v11 = vpop.f32.mrf.mxu1  ;;  %v1376_v6 = vpop.f32.mrf.mxu0 }
 0x17e   : > { %2949 = vst [vmem:[%s4470_s9 + $0x1b8] sm:$0xff] %v1018_v11  ;;  %v1117_v31 = vadd.f32 %v1116_v9, %v1018_v11  ;;  %v1156_v3 = vmul.f32 %v1018_v11, %v1018_v11  ;;  %2973 = vst [vmem:[%s4470_s9 + $0x278] sm:$0xff] %v1376_v6  ;;  %v1507_v56 = vadd.f32 %v1506_v61, %v1376_v6 }
 0x17f   : > { %v1546_v45 = vmul.f32 %v1376_v6, %v1376_v6  ;;  %v1020_v30 = vpop.f32.mrf.mxu1  ;;  %v1378_v26 = vpop.f32.mrf.mxu0 }
 0x180   : > { %v1187_v60 = vadd.f32 %v1186_v29, %v1156_v3  ;;  %v728_v29 = vrot.slane %v4707_v57, 4 }
 0x181   : > { %v1577_v42 = vadd.f32 %v1576_v52, %v1546_v45  ;;  %v1023_v39 = vpop.f32.mrf.mxu1  ;;  %v1381_v59 = vpop.f32.mrf.mxu0 }
 0x182   : > { %2950 = vst [vmem:[%s4470_s9 + $0x1c0] sm:$0xff] %v1023_v39  ;;  %v1118_v62 = vadd.f32 %v1117_v31, %v1023_v39  ;;  %v1157_v14 = vmul.f32 %v1023_v39, %v1023_v39  ;;  %2974 = vst [vmem:[%s4470_s9 + $0x280] sm:$0xff] %v1381_v59  ;;  %v1508_v1 = vadd.f32 %v1507_v56, %v1381_v59  ;;  %v798_v39 = vrot.slane %v4713_v18, 4 }
 0x183   : > { %v1547_v10 = vmul.f32 %v1381_v59, %v1381_v59  ;;  %v1025_v34 = vpop.f32.mrf.mxu1  ;;  %v1383_v32 = vpop.f32.mrf.mxu0 }
 0x184   : > { %v1188_v17 = vadd.f32 %v1187_v60, %v1157_v14 }
 0x185   : > { %v1578_v12 = vadd.f32 %v1577_v42, %v1547_v10  ;;  %v1028_v36 = vpop.f32.mrf.mxu1  ;;  %v1386_v47 = vpop.f32.mrf.mxu0  ;;  %v729_v42 = vadd.f32 %v728_v29, %v4707_v57 }
 0x186   : > { %2951 = vst [vmem:[%s4470_s9 + $0x1c8] sm:$0xff] %v1028_v36  ;;  %v1119_v25 = vadd.f32 %v1118_v62, %v1028_v36  ;;  %v1158_v28 = vmul.f32 %v1028_v36, %v1028_v36  ;;  %2975 = vst [vmem:[%s4470_s9 + $0x288] sm:$0xff] %v1386_v47  ;;  %v1509_v38 = vadd.f32 %v1508_v1, %v1386_v47 }
 0x187   : > { %v1548_v13 = vmul.f32 %v1386_v47, %v1386_v47  ;;  %v1030_v35 = vpop.f32.mrf.mxu1  ;;  %v1388_v15 = vpop.f32.mrf.mxu0  ;;  %v799_v47 = vadd.f32 %v798_v39, %v4713_v18 }
 0x188   : > { %v1189_v5 = vadd.f32 %v1188_v17, %v1158_v28 }
 0x189   : > { %v1579_v16 = vadd.f32 %v1578_v12, %v1548_v13  ;;  %v1033_v54 = vpop.f32.mrf.mxu1  ;;  %v1391_v8 = vpop.f32.mrf.mxu0 }
 0x18a   : > { %2952 = vst [vmem:[%s4470_s9 + $0x1d0] sm:$0xff] %v1033_v54  ;;  %v1120_v43 = vadd.f32 %v1119_v25, %v1033_v54  ;;  %v1159_v41 = vmul.f32 %v1033_v54, %v1033_v54  ;;  %2976 = vst [vmem:[%s4470_s9 + $0x290] sm:$0xff] %v1391_v8  ;;  %v1510_v63 = vadd.f32 %v1509_v38, %v1391_v8  ;;  %v730_v25 = vrot.slane %v729_v42, 2 }
 0x18b   : > { %v1549_v49 = vmul.f32 %v1391_v8, %v1391_v8  ;;  %v1035_v46 = vpop.f32.mrf.mxu1  ;;  %v1393_v48 = vpop.f32.mrf.mxu0  ;;  %v800_v54 = vrot.slane %v799_v47, 2 }
 0x18c   : > { %v1190_v51 = vadd.f32 %v1189_v5, %v1159_v41 }
 0x18d   : > { %v1580_v21 = vadd.f32 %v1579_v16, %v1549_v49  ;;  %v1038_v0 = vpop.f32.mrf.mxu1  ;;  %v1396_v23 = vpop.f32.mrf.mxu0 }
 0x18e   : > { %2953 = vst [vmem:[%s4470_s9 + $0x1d8] sm:$0xff] %v1038_v0  ;;  %v1121_v4 = vadd.f32 %v1120_v43, %v1038_v0  ;;  %v1160_v19 = vmul.f32 %v1038_v0, %v1038_v0  ;;  %2977 = vst [vmem:[%s4470_s9 + $0x298] sm:$0xff] %v1396_v23  ;;  %v1511_v55 = vadd.f32 %v1510_v63, %v1396_v23 }
 0x18f   : > { %v1550_v27 = vmul.f32 %v1396_v23, %v1396_v23  ;;  %v1040_v50 = vpop.f32.mrf.mxu1  ;;  %v1398_v33 = vpop.f32.mrf.mxu0  ;;  %v731_v63 = vadd.f32 %v730_v25, %v729_v42  ;;  %v801_v0 = vadd.f32 %v800_v54, %v799_v47 }
 0x190   : > { %v1191_v58 = vadd.f32 %v1190_v51, %v1160_v19 }
 0x191   : > { %v1581_v53 = vadd.f32 %v1580_v21, %v1550_v27  ;;  %v1043_v40 = vpop.f32.mrf.mxu1  ;;  %v1401_v22 = vpop.f32.mrf.mxu0  ;;  %v732_v50 = vrot.slane %v731_v63, 1 }
 0x192   : > { %2954 = vst [vmem:[%s4470_s9 + $0x1e0] sm:$0xff] %v1043_v40  ;;  %v1122_v20 = vadd.f32 %v1121_v4, %v1043_v40  ;;  %v1161_v7 = vmul.f32 %v1043_v40, %v1043_v40  ;;  %2978 = vst [vmem:[%s4470_s9 + $0x2a0] sm:$0xff] %v1401_v22  ;;  %v1512_v9 = vadd.f32 %v1511_v55, %v1401_v22 }
 0x193   : > { %v1551_v44 = vmul.f32 %v1401_v22, %v1401_v22  ;;  %v1045_v61 = vpop.f32.mrf.mxu1  ;;  %v1403_v37 = vpop.f32.mrf.mxu0 }
 0x194   : > { %v1192_v24 = vadd.f32 %v1191_v58, %v1161_v7  ;;  %v802_v7 = vrot.slane %v801_v0, 1 }
 0x195   : > { %v1582_v2 = vadd.f32 %v1581_v53, %v1551_v44  ;;  %v1048_v52 = vpop.f32.mrf.mxu1  ;;  %v1406_v11 = vpop.f32.mrf.mxu0 }
 0x196   : > { %2955 = vst [vmem:[%s4470_s9 + $0x1e8] sm:$0xff] %v1048_v52  ;;  %v1123_v6 = vadd.f32 %v1122_v20, %v1048_v52  ;;  %v1162_v31 = vmul.f32 %v1048_v52, %v1048_v52  ;;  %2979 = vst [vmem:[%s4470_s9 + $0x2a8] sm:$0xff] %v1406_v11  ;;  %v1513_v3 = vadd.f32 %v1512_v9, %v1406_v11 }
 0x197   : > { %v1552_v56 = vmul.f32 %v1406_v11, %v1406_v11  ;;  %v1050_v45 = vpop.f32.mrf.mxu1  ;;  %v1408_v30 = vpop.f32.mrf.mxu0 }
 0x198   : > { %v1193_v26 = vadd.f32 %v1192_v24, %v1162_v31 }
 0x199   : > { %v1583_v60 = vadd.f32 %v1582_v2, %v1552_v56  ;;  %v1053_v59 = vpop.f32.mrf.mxu1  ;;  %v1411_v62 = vpop.f32.mrf.mxu0  ;;  %v733_v2 = vadd.f32 %v732_v50, %v731_v63  ;;  %v803_v56 = vadd.f32 %v802_v7, %v801_v0 }
 0x19a   : > { %2956 = vst [vmem:[%s4470_s9 + $0x1f0] sm:$0xff] %v1053_v59  ;;  %v1124_v14 = vadd.f32 %v1123_v6, %v1053_v59  ;;  %v1163_v1 = vmul.f32 %v1053_v59, %v1053_v59  ;;  %2980 = vst [vmem:[%s4470_s9 + $0x2b0] sm:$0xff] %v1411_v62  ;;  %v1514_v10 = vadd.f32 %v1513_v3, %v1411_v62 }
 0x19b   : > { %v1553_v34 = vmul.f32 %v1411_v62, %v1411_v62  ;;  %v1055_v32 = vpop.f32.mrf.mxu1  ;;  %v1413_v17 = vpop.f32.mrf.mxu0 }
 0x19c   : > { %v1194_v12 = vadd.f32 %v1193_v26, %v1163_v1 }
 0x19d   : > { %v1584_v36 = vadd.f32 %v1583_v60, %v1553_v34 }
 0x19e   : > { %v1058_v57 = vpop.f32.mrf.mxu1  ;;  %v1416_v28 = vpop.f32.mrf.mxu0 }
 0x19f   : > { %2957 = vst [vmem:[%s4470_s9 + $0x1f8] sm:$0xff] %v1058_v57  ;;  %v1125_v38 = vadd.f32 %v1124_v14, %v1058_v57  ;;  %v1164_v13 = vmul.f32 %v1058_v57, %v1058_v57  ;;  %2981 = vst [vmem:[%s4470_s9 + $0x2b8] sm:$0xff] %v1416_v28  ;;  %v1515_v35 = vadd.f32 %v1514_v10, %v1416_v28 }
 0x1a0   : > { %v1554_v15 = vmul.f32 %v1416_v28, %v1416_v28  ;;  %v1060_v5 = vpop.f32.mrf.mxu1  ;;  %v1418_v16 = vpop.f32.mrf.mxu0 }
 0x1a1   : > { %v1126_v8 = vrot.slane %v1125_v38, 4  ;;  %v1195_v43 = vadd.f32 %v1194_v12, %v1164_v13 }
 0x1a2   : > { %v1585_v41 = vadd.f32 %v1584_v36, %v1554_v15 }
 0x1a3   : > { %v1127_v49 = vadd.f32 %v1126_v8, %v1125_v38  ;;  %v1196_v46 = vrot.slane %v1195_v43, 4  ;;  %v1421_v18 = vpop.f32.mrf.mxu0  ;;  %v4848_v48 = vpop.f32.mrf.mxu1 }
 0x1a4   : > { %2982 = vst [vmem:[%s4470_s9 + $0x2c0] sm:$0xff] %v1421_v18  ;;  %v1516_v51 = vadd.f32 %v1515_v35, %v1421_v18  ;;  %v1555_v21 = vmul.f32 %v1421_v18, %v1421_v18 }
 0x1a5   : > { %v1128_v23 = vrot.slane %v1127_v49, 2  ;;  %v1197_v4 = vadd.f32 %v1196_v46, %v1195_v43  ;;  %v1423_v19 = vpop.f32.mrf.mxu0  ;;  %v1733_v55 = vpop.f32.mrf.mxu1 }
 0x1a6   : > { %v1586_v27 = vadd.f32 %v1585_v41, %v1555_v21 }
 0x1a7   : > { %v1129_v33 = vadd.f32 %v1128_v23, %v1127_v49  ;;  %v1198_v58 = vrot.slane %v1197_v4, 2  ;;  %v1426_v53 = vpop.f32.mrf.mxu0  ;;  %v4851_v40 = vpop.f32.mrf.mxu1 }
 0x1a8   : > { %2983 = vst [vmem:[%s4470_s9 + $0x2c8] sm:$0xff] %v1426_v53  ;;  %v1517_v22 = vadd.f32 %v1516_v51, %v1426_v53  ;;  %v1556_v20 = vmul.f32 %v1426_v53, %v1426_v53 }
 0x1a9   : > { %v1130_v9 = vrot.slane %v1129_v33, 1  ;;  %v1199_v44 = vadd.f32 %v1198_v58, %v1197_v4  ;;  %v1428_v61 = vpop.f32.mrf.mxu0  ;;  %v1738_v37 = vpop.f32.mrf.mxu1 }
 0x1aa   : > { %v1587_v24 = vadd.f32 %v1586_v27, %v1556_v20 }
 0x1ab   : > { %v1131_v29 = vadd.f32 %v1130_v9, %v1129_v33  ;;  %v1200_v52 = vrot.slane %v1199_v44, 1  ;;  %v1431_v11 = vpop.f32.mrf.mxu0  ;;  %v4854_v6 = vpop.f32.mrf.mxu1 }
 0x1ac   : > { %2984 = vst [vmem:[%s4470_s9 + $0x2d0] sm:$0xff] %v1431_v11  ;;  %v1518_v31 = vadd.f32 %v1517_v22, %v1431_v11  ;;  %v1557_v3 = vmul.f32 %v1431_v11, %v1431_v11 }
 0x1ad   : > { %v4857_v45 = vadd.f32 %v1131_v29, %v733_v2  ;;  %v1201_v30 = vadd.f32 %v1200_v52, %v1199_v44  ;;  %v1433_v26 = vpop.f32.mrf.mxu0  ;;  %v1743_v60 = vpop.f32.mrf.mxu1 }
 0x1ae   : > { %v1588_v42 = vadd.f32 %v1587_v24, %v1557_v3 }
 0x1af   : > { %v4859_v39 = vadd.f32 %v1201_v30, %v803_v56  ;;  %v1436_v59 = vpop.f32.mrf.mxu0  ;;  %v4861_v62 = vpop.f32.mrf.mxu1 }
 0x1b0   : > { %2985 = vst [vmem:[%s4470_s9 + $0x2d8] sm:$0xff] %v1436_v59  ;;  %v1519_v14 = vadd.f32 %v1518_v31, %v1436_v59  ;;  %v1558_v1 = vmul.f32 %v1436_v59, %v1436_v59 }
 0x1b1   : > { %v1438_v10 = vpop.f32.mrf.mxu0  ;;  %v1748_v34 = vpop.f32.mrf.mxu1 }
 0x1b2   : > { %v1589_v32 = vadd.f32 %v1588_v42, %v1558_v1 }
 0x1b3   : > { %v1441_v17 = vpop.f32.mrf.mxu0  ;;  %v4864_v12 = vpop.f32.mrf.mxu1 }
 0x1b4   : > { %2986 = vst [vmem:[%s4470_s9 + $0x2e0] sm:$0xff] %v1441_v17  ;;  %v1520_v36 = vadd.f32 %v1519_v14, %v1441_v17  ;;  %v1559_v47 = vmul.f32 %v1441_v17, %v1441_v17 }
 0x1b5   : > { %v1443_v25 = vpop.f32.mrf.mxu0  ;;  %v1753_v57 = vpop.f32.mrf.mxu1 }
 0x1b6   : > { %v1590_v28 = vadd.f32 %v1589_v32, %v1559_v47 }
 0x1b7   : > { %v1446_v38 = vpop.f32.mrf.mxu0  ;;  %v4867_v13 = vpop.f32.mrf.mxu1 }
 0x1b8   : > { %2987 = vst [vmem:[%s4470_s9 + $0x2e8] sm:$0xff] %v1446_v38  ;;  %v1521_v35 = vadd.f32 %v1520_v36, %v1446_v38  ;;  %v1560_v15 = vmul.f32 %v1446_v38, %v1446_v38 }
 0x1b9   : > { %v1448_v5 = vpop.f32.mrf.mxu0  ;;  %v1758_v16 = vpop.f32.mrf.mxu1 }
 0x1ba   : > { %v1591_v54 = vadd.f32 %v1590_v28, %v1560_v15 }
 0x1bb   : > { %v1451_v8 = vpop.f32.mrf.mxu0  ;;  %v4870_v43 = vpop.f32.mrf.mxu1 }
 0x1bc   : > { %2988 = vst [vmem:[%s4470_s9 + $0x2f0] sm:$0xff] %v1451_v8  ;;  %v1522_v41 = vadd.f32 %v1521_v35, %v1451_v8  ;;  %v1561_v63 = vmul.f32 %v1451_v8, %v1451_v8 }
 0x1bd   : > { %v1453_v49 = vpop.f32.mrf.mxu0  ;;  %v1763_v46 = vpop.f32.mrf.mxu1 }
 0x1be   : > { %v1592_v18 = vadd.f32 %v1591_v54, %v1561_v63 }
 0x1bf   : > { %v1456_v51 = vpop.f32.mrf.mxu0  ;;  %v4873_v21 = vpop.f32.mrf.mxu1 }
 0x1c0   : > { %2989 = vst [vmem:[%s4470_s9 + $0x2f8] sm:$0xff] %v1456_v51  ;;  %v1523_v0 = vadd.f32 %v1522_v41, %v1456_v51  ;;  %v1562_v23 = vmul.f32 %v1456_v51, %v1456_v51 }
 0x1c1   : > { %v1458_v4 = vpop.f32.mrf.mxu0  ;;  %v1768_v19 = vpop.f32.mrf.mxu1 }
 0x1c2   : > { %v1524_v55 = vrot.slane %v1523_v0, 4  ;;  %v1593_v27 = vadd.f32 %v1592_v18, %v1562_v23 }
 0x1c3   : > { %v4876_v50 = vpop.f32.mrf.mxu1  ;;  %v1956_v33 = vpop.f32.mrf.mxu0 }
 0x1c4   : > { %v1525_v58 = vadd.f32 %v1524_v55, %v1523_v0  ;;  %v1594_v53 = vrot.slane %v1593_v27, 4  ;;  %v4879_v22 = vadd.f32 %v1956_v33, %v4848_v48 }
 0x1c5   : > { %v1773_v20 = vpop.f32.mrf.mxu1  ;;  %v1958_v7 = vpop.f32.mrf.mxu0 }
 0x1c6   : > { %v1526_v9 = vrot.slane %v1525_v58, 2  ;;  %v1595_v44 = vadd.f32 %v1594_v53, %v1593_v27  ;;  %2990 = vst [vmem:[%s4470_s9 + $0x300] sm:$0xff] %v4879_v22 }
 0x1c7   : > { %v1776_v61 = vpop.f32.mrf.mxu1  ;;  %v1961_v37 = vpop.f32.mrf.mxu0 }
 0x1c8   : > { %v1527_v24 = vadd.f32 %v1526_v9, %v1525_v58  ;;  %v1596_v2 = vrot.slane %v1595_v44, 2  ;;  %v4884_v29 = vadd.f32 %v1961_v37, %v4851_v40 }
 0x1c9   : > { %v1778_v52 = vpop.f32.mrf.mxu1  ;;  %v1963_v11 = vpop.f32.mrf.mxu0 }
 0x1ca   : > { %v1528_v31 = vrot.slane %v1527_v24, 1  ;;  %v1597_v3 = vadd.f32 %v1596_v2, %v1595_v44  ;;  %2991 = vst [vmem:[%s4470_s9 + $0x308] sm:$0xff] %v4884_v29 }
 0x1cb   : > { %v1781_v48 = vpop.f32.mrf.mxu1  ;;  %v1966_v56 = vpop.f32.mrf.mxu0 }
 0x1cc   : > { %v1529_v30 = vadd.f32 %v1528_v31, %v1527_v24  ;;  %v1598_v26 = vrot.slane %v1597_v3, 1  ;;  %v4889_v60 = vadd.f32 %v1966_v56, %v4854_v6 }
 0x1cd   : > { %v1783_v42 = vpop.f32.mrf.mxu1  ;;  %v1968_v59 = vpop.f32.mrf.mxu0 }
 0x1ce   : > { %v4892_v40 = vadd.f32 %v1529_v30, %v4857_v45  ;;  %v1599_v14 = vadd.f32 %v1598_v26, %v1597_v3  ;;  %2992 = vst [vmem:[%s4470_s9 + $0x310] sm:$0xff] %v4889_v60  ;;  %v2187_v26 = vmul.f32 %v4884_v29, %v4884_v29 }
 0x1cf   : > { %v1786_v1 = vpop.f32.mrf.mxu1  ;;  %v1971_v10 = vpop.f32.mrf.mxu0 }
 0x1d0   : > { %v4897_v34 = vadd.f32 %v1599_v14, %v4859_v39  ;;  %v4900_v32 = vadd.f32 %v1971_v10, %v4861_v62  ;;  %v2188_v10 = vmul.f32 %v4889_v60, %v4889_v60 }
 0x1d1   : > { %v1788_v6 = vpop.f32.mrf.mxu1  ;;  %v1973_v17 = vpop.f32.mrf.mxu0 }
 0x1d2   : > { %2993 = vst [vmem:[%s4470_s9 + $0x318] sm:$0xff] %v4900_v32 }
 0x1d3   : > { %v1791_v36 = vpop.f32.mrf.mxu1  ;;  %v1976_v47 = vpop.f32.mrf.mxu0 }
 0x1d4   : > { %v4905_v45 = vadd.f32 %v1976_v47, %v4864_v12 }
 0x1d5   : > { %v1793_v25 = vpop.f32.mrf.mxu1  ;;  %v1978_v57 = vpop.f32.mrf.mxu0 }
 0x1d6   : > { %2994 = vst [vmem:[%s4470_s9 + $0x320] sm:$0xff] %v4905_v45  ;;  %v2189_v25 = vmul.f32 %v4900_v32, %v4900_v32 }
 0x1d7   : > { %v1796_v39 = vpop.f32.mrf.mxu1  ;;  %v1981_v28 = vpop.f32.mrf.mxu0 }
 0x1d8   : > { %v4910_v62 = vadd.f32 %v1981_v28, %v4867_v13 }
 0x1d9   : > { %v1798_v38 = vpop.f32.mrf.mxu1  ;;  %v1983_v35 = vpop.f32.mrf.mxu0 }
 0x1da   : > { %2995 = vst [vmem:[%s4470_s9 + $0x328] sm:$0xff] %v4910_v62 }
 0x1db   : > { %v1801_v15 = vpop.f32.mrf.mxu1  ;;  %v1986_v5 = vpop.f32.mrf.mxu0 }
 0x1dc   : > { %v4915_v12 = vadd.f32 %v1986_v5, %v4870_v43 }
 0x1dd   : > { %v1803_v16 = vpop.f32.mrf.mxu1  ;;  %v1988_v54 = vpop.f32.mrf.mxu0 }
 0x1de   : > { %2996 = vst [vmem:[%s4470_s9 + $0x330] sm:$0xff] %v4915_v12  ;;  %v2191_v54 = vmul.f32 %v4910_v62, %v4910_v62 }
 0x1df   : > { %v1806_v8 = vpop.f32.mrf.mxu1  ;;  %v1991_v41 = vpop.f32.mrf.mxu0 }
 0x1e0   : > { %v4920_v13 = vadd.f32 %v1991_v41, %v4873_v21 }
 0x1e1   : > { %v1808_v63 = vpop.f32.mrf.mxu1  ;;  %v1993_v49 = vpop.f32.mrf.mxu0 }
 0x1e2   : > { %2997 = vst [vmem:[%s4470_s9 + $0x338] sm:$0xff] %v4920_v13 }
 0x1e3   : > { %v4924_v46 = vpop.f32.mrf.mxu1  ;;  %v1996_v18 = vpop.f32.mrf.mxu0 }
 0x1e4   : > { %v4927_v43 = vadd.f32 %v1996_v18, %v4876_v50  ;;  %v2192_v18 = vmul.f32 %v4915_v12, %v4915_v12 }
 0x1e5   : > { %v1813_v51 = vpop.f32.mrf.mxu1  ;;  %v1998_v0 = vpop.f32.mrf.mxu0 }
 0x1e6   : > { %2998 = vst [vmem:[%s4470_s9 + $0x340] sm:$0xff] %v4927_v43 }
 0x1e7   : > { %v4931_v23 = vpop.f32.mrf.mxu1  ;;  %v2001_v4 = vpop.f32.mrf.mxu0 }
 0x1e8   : > { %v4933_v21 = vadd.f32 %v2001_v4, %v1776_v61 }
 0x1e9   : > { %v1818_v19 = vpop.f32.mrf.mxu1  ;;  %v2003_v55 = vpop.f32.mrf.mxu0 }
 0x1ea   : > { %2999 = vst [vmem:[%s4470_s9 + $0x348] sm:$0xff] %v4933_v21  ;;  %v2193_v19 = vmul.f32 %v4920_v13, %v4920_v13 }
 0x1eb   : > { %v4937_v27 = vpop.f32.mrf.mxu1  ;;  %v2006_v33 = vpop.f32.mrf.mxu0 }
 0x1ec   : > { %v4939_v50 = vadd.f32 %v2006_v33, %v1781_v48 }
 0x1ed   : > { %v1823_v58 = vpop.f32.mrf.mxu1  ;;  %v2008_v53 = vpop.f32.mrf.mxu0 }
 0x1ee   : > { %3000 = vst [vmem:[%s4470_s9 + $0x350] sm:$0xff] %v4939_v50  ;;  %v2194_v53 = vmul.f32 %v4927_v43, %v4927_v43 }
 0x1ef   : > { %v4943_v20 = vpop.f32.mrf.mxu1  ;;  %v2011_v7 = vpop.f32.mrf.mxu0 }
 0x1f0   : > { %v4945_v9 = vadd.f32 %v2011_v7, %v1786_v1  ;;  %v2186_v1 = vmul.f32 %v4879_v22, %v4879_v22 }
 0x1f1   : > { %v1828_v44 = vpop.f32.mrf.mxu1  ;;  %v2013_v61 = vpop.f32.mrf.mxu0 }
 0x1f2   : > { %3001 = vst [vmem:[%s4470_s9 + $0x358] sm:$0xff] %v4945_v9  ;;  %v2218_v47 = vadd.f32 %v2187_v26, %v2186_v1  ;;  %v2197_v1 = vmul.f32 %v4945_v9, %v4945_v9 }
 0x1f3   : > { %v4949_v37 = vpop.f32.mrf.mxu1  ;;  %v2016_v24 = vpop.f32.mrf.mxu0 }
 0x1f4   : > { %v4951_v2 = vadd.f32 %v2016_v24, %v1791_v36  ;;  %v2148_v36 = vadd.f32 %v4884_v29, %v4879_v22  ;;  %v2219_v35 = vadd.f32 %v2218_v47, %v2188_v10  ;;  %v2195_v24 = vmul.f32 %v4933_v21, %v4933_v21 }
 0x1f5   : > { %v1833_v52 = vpop.f32.mrf.mxu1  ;;  %v2018_v11 = vpop.f32.mrf.mxu0 }
 0x1f6   : > { %3002 = vst [vmem:[%s4470_s9 + $0x360] sm:$0xff] %v4951_v2  ;;  %v2149_v28 = vadd.f32 %v2148_v36, %v4889_v60  ;;  %v2220_v16 = vadd.f32 %v2219_v35, %v2189_v25  ;;  %v2198_v36 = vmul.f32 %v4951_v2, %v4951_v2 }
 0x1f7   : > { %v4955_v31 = vpop.f32.mrf.mxu1  ;;  %v2021_v3 = vpop.f32.mrf.mxu0 }
 0x1f8   : > { %v4957_v48 = vadd.f32 %v2021_v3, %v1796_v39  ;;  %v2150_v29 = vadd.f32 %v2149_v28, %v4900_v32 }
 0x1f9   : > { %v1838_v56 = vpop.f32.mrf.mxu1  ;;  %v2023_v30 = vpop.f32.mrf.mxu0 }
 0x1fa   : > { %3003 = vst [vmem:[%s4470_s9 + $0x368] sm:$0xff] %v4957_v48  ;;  %v2196_v56 = vmul.f32 %v4939_v50, %v4939_v50  ;;  %v2199_v28 = vmul.f32 %v4957_v48, %v4957_v48 }
 0x1fb   : > { %v4963_v42 = vpop.f32.mrf.mxu1  ;;  %v2026_v59 = vpop.f32.mrf.mxu0 }
 0x1fc   : > { %v4965_v14 = vadd.f32 %v2026_v59, %v1801_v15  ;;  %v2190_v15 = vmul.f32 %v4905_v45, %v4905_v45 }
 0x1fd   : > { %v1843_v6 = vpop.f32.mrf.mxu1  ;;  %v2028_v17 = vpop.f32.mrf.mxu0 }
 0x1fe   : > { %3004 = vst [vmem:[%s4470_s9 + $0x370] sm:$0xff] %v4965_v14  ;;  %v2221_v49 = vadd.f32 %v2220_v16, %v2190_v15 }
 0x1ff   : > { %v4977_v57 = vpop.f32.mrf.mxu1  ;;  %v2031_v39 = vpop.f32.mrf.mxu0 }
 0x200   : > { %v4980_v38 = vadd.f32 %v2031_v39, %v1806_v8  ;;  %v2151_v8 = vadd.f32 %v2150_v29, %v4905_v45  ;;  %v2222_v4 = vadd.f32 %v2221_v49, %v2191_v54 }
 0x201   : > { %v1848_v5 = vpop.f32.mrf.mxu1  ;;  %v2033_v22 = vpop.f32.mrf.mxu0 }
 0x202   : > { %3005 = vst [vmem:[%s4470_s9 + $0x378] sm:$0xff] %v4980_v38  ;;  %v2152_v0 = vadd.f32 %v2151_v8, %v4910_v62  ;;  %v2223_v58 = vadd.f32 %v2222_v4, %v2192_v18  ;;  %v2200_v22 = vmul.f32 %v4965_v14, %v4965_v14 }
 0x203   : > { %v4989_v41 = vpop.f32.mrf.mxu1  ;;  %v2036_v60 = vpop.f32.mrf.mxu0 }
 0x204   : > { %v4993_v63 = vadd.f32 %v2036_v60, %v4924_v46  ;;  %v2153_v46 = vadd.f32 %v2152_v0, %v4915_v12  ;;  %v2224_v61 = vadd.f32 %v2223_v58, %v2193_v19  ;;  %v2201_v60 = vmul.f32 %v4980_v38, %v4980_v38 }
 0x205   : > { %v1853_v32 = vpop.f32.mrf.mxu1  ;;  %v2038_v51 = vpop.f32.mrf.mxu0 }
 0x206   : > { %3006 = vst [vmem:[%s4470_s9 + $0x380] sm:$0xff] %v4993_v63  ;;  %v2154_v44 = vadd.f32 %v2153_v46, %v4920_v13  ;;  %v2225_v3 = vadd.f32 %v2224_v61, %v2194_v53  ;;  %v2202_v32 = vmul.f32 %v4993_v63, %v4993_v63 }
 0x207   : > { %v5002_v55 = vpop.f32.mrf.mxu1  ;;  %v2041_v45 = vpop.f32.mrf.mxu0 }
 0x208   : > { %v5006_v33 = vadd.f32 %v2041_v45, %v4931_v23  ;;  %v2155_v23 = vadd.f32 %v2154_v44, %v4927_v43  ;;  %v2226_v59 = vadd.f32 %v2225_v3, %v2195_v24 }
 0x209   : > { %v1858_v62 = vpop.f32.mrf.mxu1  ;;  %v2043_v7 = vpop.f32.mrf.mxu0 }
 0x20a   : > { %3007 = vst [vmem:[%s4470_s9 + $0x388] sm:$0xff] %v5006_v33  ;;  %v2156_v26 = vadd.f32 %v2155_v23, %v4933_v21  ;;  %v2227_v17 = vadd.f32 %v2226_v59, %v2196_v56  ;;  %v2203_v19 = vmul.f32 %v5006_v33, %v5006_v33 }
 0x20b   : > { %v5015_v52 = vpop.f32.mrf.mxu1  ;;  %v2046_v12 = vpop.f32.mrf.mxu0 }
 0x20c   : > { %v2047_v11 = vadd.f32 %v2046_v12, %v4937_v27  ;;  %v2157_v43 = vadd.f32 %v2156_v26, %v4939_v50  ;;  %v2228_v39 = vadd.f32 %v2227_v17, %v2197_v1 }
 0x20d   : > { %v1863_v30 = vpop.f32.mrf.mxu1  ;;  %v2048_v13 = vpop.f32.mrf.mxu0 }
 0x20e   : > { %3008 = vst [vmem:[%s4470_s9 + $0x390] sm:$0xff] %v2047_v11  ;;  %v2158_v21 = vadd.f32 %v2157_v43, %v4945_v9  ;;  %v2229_v5 = vadd.f32 %v2228_v39, %v2198_v36  ;;  %v2204_v53 = vmul.f32 %v2047_v11, %v2047_v11 }
 0x20f   : > { %v5025_v10 = vpop.f32.mrf.mxu1  ;;  %v2051_v6 = vpop.f32.mrf.mxu0 }
 0x210   : > { %v2052_v27 = vadd.f32 %v2051_v6, %v4943_v20  ;;  %v2159_v50 = vadd.f32 %v2158_v21, %v4951_v2  ;;  %v2230_v54 = vadd.f32 %v2229_v5, %v2199_v28 }
 0x211   : > { %v1868_v47 = vpop.f32.mrf.mxu1  ;;  %v2053_v25 = vpop.f32.mrf.mxu0 }
 0x212   : > { %3009 = vst [vmem:[%s4470_s9 + $0x398] sm:$0xff] %v2052_v27  ;;  %v2160_v9 = vadd.f32 %v2159_v50, %v4957_v48  ;;  %v2231_v18 = vadd.f32 %v2230_v54, %v2200_v22  ;;  %v2205_v61 = vmul.f32 %v2052_v27, %v2052_v27 }
 0x213   : > { %v1871_v35 = vpop.f32.mrf.mxu1  ;;  %v2056_v15 = vpop.f32.mrf.mxu0 }
 0x214   : > { %v2057_v20 = vadd.f32 %v2056_v15, %v4949_v37  ;;  %v2161_v2 = vadd.f32 %v2160_v9, %v4965_v14  ;;  %v2232_v4 = vadd.f32 %v2231_v18, %v2201_v60 }
 0x215   : > { %v1873_v29 = vpop.f32.mrf.mxu1  ;;  %v2058_v16 = vpop.f32.mrf.mxu0 }
 0x216   : > { %3010 = vst [vmem:[%s4470_s9 + $0x3a0] sm:$0xff] %v2057_v20  ;;  %v2162_v48 = vadd.f32 %v2161_v2, %v4980_v38  ;;  %v2233_v58 = vadd.f32 %v2232_v4, %v2202_v32  ;;  %v2206_v30 = vmul.f32 %v2057_v20, %v2057_v20 }
 0x217   : > { %v1876_v8 = vpop.f32.mrf.mxu1  ;;  %v2061_v49 = vpop.f32.mrf.mxu0 }
 0x218   : > { %v2062_v37 = vadd.f32 %v2061_v49, %v4955_v31  ;;  %v2163_v14 = vadd.f32 %v2162_v48, %v4993_v63  ;;  %v2234_v38 = vadd.f32 %v2233_v58, %v2203_v19 }
 0x219   : > { %v1878_v51 = vpop.f32.mrf.mxu1  ;;  %v2063_v0 = vpop.f32.mrf.mxu0 }
 0x21a   : > { %3011 = vst [vmem:[%s4470_s9 + $0x3a8] sm:$0xff] %v2062_v37  ;;  %v2164_v44 = vadd.f32 %v2163_v14, %v5006_v33  ;;  %v2235_v56 = vadd.f32 %v2234_v38, %v2204_v53  ;;  %v2207_v59 = vmul.f32 %v2062_v37, %v2062_v37 }
 0x21b   : > { %v1881_v45 = vpop.f32.mrf.mxu1  ;;  %v2066_v46 = vpop.f32.mrf.mxu0 }
 0x21c   : > { %v2067_v31 = vadd.f32 %v2066_v46, %v4963_v42  ;;  %v2165_v23 = vadd.f32 %v2164_v44, %v2047_v11  ;;  %v2236_v26 = vadd.f32 %v2235_v56, %v2205_v61 }
 0x21d   : > { %v1883_v62 = vpop.f32.mrf.mxu1  ;;  %v2068_v7 = vpop.f32.mrf.mxu0 }
 0x21e   : > { %3012 = vst [vmem:[%s4470_s9 + $0x3b0] sm:$0xff] %v2067_v31  ;;  %v2166_v13 = vadd.f32 %v2165_v23, %v2052_v27  ;;  %v2237_v36 = vadd.f32 %v2236_v26, %v2206_v30  ;;  %v2208_v11 = vmul.f32 %v2067_v31, %v2067_v31 }
 0x21f   : > { %v1886_v24 = vpop.f32.mrf.mxu1  ;;  %v2071_v12 = vpop.f32.mrf.mxu0 }
 0x220   : > { %v2072_v3 = vadd.f32 %v2071_v12, %v4977_v57  ;;  %v2167_v6 = vadd.f32 %v2166_v13, %v2057_v20  ;;  %v2238_v21 = vadd.f32 %v2237_v36, %v2207_v59 }
 0x221   : > { %v1888_v63 = vpop.f32.mrf.mxu1  ;;  %v2073_v42 = vpop.f32.mrf.mxu0 }
 0x222   : > { %3013 = vst [vmem:[%s4470_s9 + $0x3b8] sm:$0xff] %v2072_v3  ;;  %v2168_v25 = vadd.f32 %v2167_v6, %v2062_v37  ;;  %v2209_v27 = vmul.f32 %v2072_v3, %v2072_v3  ;;  %v2239_v5 = vadd.f32 %v2238_v21, %v2208_v11 }
 0x223   : > { %v2076_v1 = vpop.f32.mrf.mxu0  ;;  %v2096_v33 = vpop.f32.mrf.mxu1 }
 0x224   : > { %v2077_v43 = vadd.f32 %v2076_v1, %v4989_v41  ;;  %v2097_v17 = vadd.f32 %v2096_v33, %v1871_v35  ;;  %v2169_v15 = vadd.f32 %v2168_v25, %v2067_v31  ;;  %v2240_v16 = vadd.f32 %v2239_v5, %v2209_v27  ;;  %v2561_v27 = vld [vmem:[%s4470_s9] sm:$0xff] (%p3389_p3) }
 0x225   : > { %v2078_v47 = vpop.f32.mrf.mxu0  ;;  %v2098_v57 = vpop.f32.mrf.mxu1  ;;  %2562 = vst [vmem:[%s5084_s28] sm:$0xff] (%p3389_p3), %v2561_v27  ;;  %v2577_v5 = vld [vmem:[%s4470_s9 + $0x40] sm:$0xff] (%p3389_p3) }
 0x226   : > { %3014 = vst [vmem:[%s4470_s9 + $0x3c0] sm:$0xff] %v2077_v43  ;;  %3018 = vst [vmem:[%s4470_s9 + $0x3e0] sm:$0xff] %v2097_v17  ;;  %v2170_v22 = vadd.f32 %v2169_v15, %v2072_v3  ;;  %v2210_v29 = vmul.f32 %v2077_v43, %v2077_v43  ;;  %v2214_v62 = vmul.f32 %v2097_v17, %v2097_v17  ;;  %v2571_v15 = vld [vmem:[%s4470_s9 + $0x28] sm:$0xff] (%p3389_p3)  ;;  %v2689_v27 = vld [vmem:[%s4470_s9 + $0x200] sm:$0xff] (%p3389_p3) }
 0x227   : > { %v2081_v39 = vpop.f32.mrf.mxu0  ;;  %v2101_v28 = vpop.f32.mrf.mxu1  ;;  %2572 = vst [vmem:[%s5084_s28 + $0x28] sm:$0xff] (%p3389_p3), %v2571_v15  ;;  %2578 = vst [vmem:[%s5084_s28 + $0x40] sm:$0xff] (%p3389_p3), %v2577_v5  ;;  %v2699_v15 = vld [vmem:[%s4470_s9 + $0x228] sm:$0xff] (%p3389_p3)  ;;  %v2705_v5 = vld [vmem:[%s4470_s9 + $0x240] sm:$0xff] (%p3389_p3) }
 0x228   : > { %v2082_v50 = vadd.f32 %v2081_v39, %v5002_v55  ;;  %v2102_v20 = vadd.f32 %v2101_v28, %v1876_v8  ;;  %v2171_v60 = vadd.f32 %v2170_v22, %v2077_v43  ;;  %v2241_v8 = vadd.f32 %v2240_v16, %v2210_v29  ;;  %v2565_v39 = vld [vmem:[%s4470_s9 + $0x10] sm:$0xff] (%p3389_p3)  ;;  %v2569_v28 = vld [vmem:[%s4470_s9 + $0x20] sm:$0xff] (%p3389_p3)  ;;  %v2583_v22 = vld [vmem:[%s4470_s9 + $0x58] sm:$0xff] (%p3389_p3)  ;;  %2690 = vst [vmem:[%s5084_s28 + $0x400] sm:$0xff] (%p3389_p3), %v2689_v27 }
 0x229   : > { %v2083_v41 = vpop.f32.mrf.mxu0  ;;  %v2103_v35 = vpop.f32.mrf.mxu1  ;;  %2566 = vst [vmem:[%s5084_s28 + $0x10] sm:$0xff] (%p3389_p3), %v2565_v39  ;;  %2570 = vst [vmem:[%s5084_s28 + $0x20] sm:$0xff] (%p3389_p3), %v2569_v28  ;;  %v2585_v29 = vld [vmem:[%s4470_s9 + $0x60] sm:$0xff] (%p3389_p3)  ;;  %v2587_v16 = vld [vmem:[%s4470_s9 + $0x68] sm:$0xff] (%p3389_p3) }
 0x22a   : > { %3015 = vst [vmem:[%s4470_s9 + $0x3c8] sm:$0xff] %v2082_v50  ;;  %3019 = vst [vmem:[%s4470_s9 + $0x3e8] sm:$0xff] %v2102_v20  ;;  %v2211_v49 = vmul.f32 %v2082_v50, %v2082_v50  ;;  %v2172_v32 = vadd.f32 %v2171_v60, %v2082_v50  ;;  %v2215_v38 = vmul.f32 %v2102_v20, %v2102_v20  ;;  %v2573_v50 = vld [vmem:[%s4470_s9 + $0x30] sm:$0xff] (%p3389_p3)  ;;  %v2579_v41 = vld [vmem:[%s4470_s9 + $0x48] sm:$0xff] (%p3389_p3) }
 0x22b   : > { %v2086_v9 = vpop.f32.mrf.mxu0  ;;  %v2106_v54 = vpop.f32.mrf.mxu1  ;;  %2574 = vst [vmem:[%s5084_s28 + $0x30] sm:$0xff] (%p3389_p3), %v2573_v50  ;;  %v2581_v35 = vld [vmem:[%s4470_s9 + $0x50] sm:$0xff] (%p3389_p3)  ;;  %2580 = vst [vmem:[%s5084_s28 + $0x48] sm:$0xff] (%p3389_p3), %v2579_v41  ;;  %v2593_v60 = vld [vmem:[%s4470_s9 + $0x80] sm:$0xff] (%p3389_p3) }
 0x22c   : > { %v2087_v2 = vadd.f32 %v2086_v9, %v5015_v52  ;;  %v2107_v37 = vadd.f32 %v2106_v54, %v1881_v45  ;;  %v2242_v4 = vadd.f32 %v2241_v8, %v2211_v49  ;;  %2582 = vst [vmem:[%s5084_s28 + $0x50] sm:$0xff] (%p3389_p3), %v2581_v35  ;;  %2584 = vst [vmem:[%s5084_s28 + $0x58] sm:$0xff] (%p3389_p3), %v2583_v22  ;;  %v2589_v9 = vld [vmem:[%s4470_s9 + $0x70] sm:$0xff] (%p3389_p3)  ;;  %v2591_v54 = vld [vmem:[%s4470_s9 + $0x78] sm:$0xff] (%p3389_p3) }
 0x22d   : > { %v2088_v18 = vpop.f32.mrf.mxu0  ;;  %v2108_v55 = vpop.f32.mrf.mxu1  ;;  %2586 = vst [vmem:[%s5084_s28 + $0x60] sm:$0xff] (%p3389_p3), %v2585_v29  ;;  %2588 = vst [vmem:[%s5084_s28 + $0x68] sm:$0xff] (%p3389_p3), %v2587_v16  ;;  %v2595_v49 = vld [vmem:[%s4470_s9 + $0x88] sm:$0xff] (%p3389_p3)  ;;  %v2605_v8 = vld [vmem:[%s4470_s9 + $0xb0] sm:$0xff] (%p3389_p3) }
 0x22e   : > { %3016 = vst [vmem:[%s4470_s9 + $0x3d0] sm:$0xff] %v2087_v2  ;;  %v2212_v51 = vmul.f32 %v2087_v2, %v2087_v2  ;;  %3020 = vst [vmem:[%s4470_s9 + $0x3f0] sm:$0xff] %v2107_v37  ;;  %v2173_v19 = vadd.f32 %v2172_v32, %v2087_v2  ;;  %v2216_v23 = vmul.f32 %v2107_v37, %v2107_v37  ;;  %v2597_v2 = vld [vmem:[%s4470_s9 + $0x90] sm:$0xff] (%p3389_p3)  ;;  %v2601_v18 = vld [vmem:[%s4470_s9 + $0xa0] sm:$0xff] (%p3389_p3) }
 0x22f   : > { %v2091_v0 = vpop.f32.mrf.mxu0  ;;  %v2111_v48 = vpop.f32.mrf.mxu1  ;;  %2590 = vst [vmem:[%s5084_s28 + $0x70] sm:$0xff] (%p3389_p3), %v2589_v9  ;;  %2592 = vst [vmem:[%s5084_s28 + $0x78] sm:$0xff] (%p3389_p3), %v2591_v54  ;;  %v2603_v55 = vld [vmem:[%s4470_s9 + $0xa8] sm:$0xff] (%p3389_p3)  ;;  %v2607_v32 = vld [vmem:[%s4470_s9 + $0xb8] sm:$0xff] (%p3389_p3) }
 0x230   : > { %v2092_v46 = vadd.f32 %v2091_v0, %v5025_v10  ;;  %v2112_v14 = vadd.f32 %v2111_v48, %v1886_v24  ;;  %v2243_v52 = vadd.f32 %v2242_v4, %v2212_v51  ;;  %2594 = vst [vmem:[%s5084_s28 + $0x80] sm:$0xff] (%p3389_p3), %v2593_v60  ;;  %2596 = vst [vmem:[%s5084_s28 + $0x88] sm:$0xff] (%p3389_p3), %v2595_v49  ;;  %v2609_v51 = vld [vmem:[%s4470_s9 + $0xc0] sm:$0xff] (%p3389_p3)  ;;  %v2611_v0 = vld [vmem:[%s4470_s9 + $0xc8] sm:$0xff] (%p3389_p3) }
 0x231   : > { %v2093_v31 = vpop.f32.mrf.mxu0  ;;  %v2113_v58 = vpop.f32.mrf.mxu1  ;;  %2598 = vst [vmem:[%s5084_s28 + $0x90] sm:$0xff] (%p3389_p3), %v2597_v2  ;;  %2602 = vst [vmem:[%s5084_s28 + $0xa0] sm:$0xff] (%p3389_p3), %v2601_v18  ;;  %v2613_v48 = vld [vmem:[%s4470_s9 + $0xd0] sm:$0xff] (%p3389_p3)  ;;  %v2615_v4 = vld [vmem:[%s4470_s9 + $0xd8] sm:$0xff] (%p3389_p3) }
 0x232   : > { %3017 = vst [vmem:[%s4470_s9 + $0x3d8] sm:$0xff] %v2092_v46  ;;  %v2174_v45 = vadd.f32 %v2173_v19, %v2092_v46  ;;  %v2213_v53 = vmul.f32 %v2092_v46, %v2092_v46  ;;  %3021 = vst [vmem:[%s4470_s9 + $0x3f8] sm:$0xff] %v2112_v14  ;;  %v2217_v10 = vmul.f32 %v2112_v14, %v2112_v14  ;;  %v2617_v19 = vld [vmem:[%s4470_s9 + $0xe0] sm:$0xff] (%p3389_p3)  ;;  %v2619_v46 = vld [vmem:[%s4470_s9 + $0xe8] sm:$0xff] (%p3389_p3) }
 0x233   : > { %2604 = vst [vmem:[%s5084_s28 + $0xa8] sm:$0xff] (%p3389_p3), %v2603_v55  ;;  %2606 = vst [vmem:[%s5084_s28 + $0xb0] sm:$0xff] (%p3389_p3), %v2605_v8  ;;  %v2623_v31 = vld [vmem:[%s4470_s9 + $0xf8] sm:$0xff] (%p3389_p3)  ;;  %v2625_v58 = vld [vmem:[%s4470_s9 + $0x100] sm:$0xff] (%p3389_p3) }
 0x234   : > { %v2175_v7 = vadd.f32 %v2174_v45, %v2097_v17  ;;  %v2244_v44 = vadd.f32 %v2243_v52, %v2213_v53  ;;  %2608 = vst [vmem:[%s5084_s28 + $0xb8] sm:$0xff] (%p3389_p3), %v2607_v32  ;;  %2610 = vst [vmem:[%s5084_s28 + $0xc0] sm:$0xff] (%p3389_p3), %v2609_v51  ;;  %v2627_v52 = vld [vmem:[%s4470_s9 + $0x108] sm:$0xff] (%p3389_p3)  ;;  %v2629_v45 = vld [vmem:[%s4470_s9 + $0x110] sm:$0xff] (%p3389_p3) }
 0x235   : > { %2612 = vst [vmem:[%s5084_s28 + $0xc8] sm:$0xff] (%p3389_p3), %v2611_v0  ;;  %2614 = vst [vmem:[%s5084_s28 + $0xd0] sm:$0xff] (%p3389_p3), %v2613_v48  ;;  %v2631_v53 = vld [vmem:[%s4470_s9 + $0x118] sm:$0xff] (%p3389_p3)  ;;  %v2693_v39 = vld [vmem:[%s4470_s9 + $0x210] sm:$0xff] (%p3389_p3) }
 0x236   : > { %v2245_v61 = vadd.f32 %v2244_v44, %v2214_v62  ;;  %v2176_v12 = vadd.f32 %v2175_v7, %v2102_v20  ;;  %v2575_v20 = vld [vmem:[%s4470_s9 + $0x38] sm:$0xff] (%p3389_p3)  ;;  %2616 = vst [vmem:[%s5084_s28 + $0xd8] sm:$0xff] (%p3389_p3), %v2615_v4  ;;  %2618 = vst [vmem:[%s5084_s28 + $0xe0] sm:$0xff] (%p3389_p3), %v2617_v19  ;;  %v2633_v62 = vld [vmem:[%s4470_s9 + $0x120] sm:$0xff] (%p3389_p3) }
 0x237   : > { %2576 = vst [vmem:[%s5084_s28 + $0x38] sm:$0xff] (%p3389_p3), %v2575_v20  ;;  %2620 = vst [vmem:[%s5084_s28 + $0xe8] sm:$0xff] (%p3389_p3), %v2619_v46  ;;  %v2635_v7 = vld [vmem:[%s4470_s9 + $0x128] sm:$0xff] (%p3389_p3)  ;;  %v2637_v44 = vld [vmem:[%s4470_s9 + $0x130] sm:$0xff] (%p3389_p3) }
 0x238   : > { %v2177_v3 = vadd.f32 %v2176_v12, %v2107_v37  ;;  %v2246_v56 = vadd.f32 %v2245_v61, %v2215_v38  ;;  %v2599_v37 = vld [vmem:[%s4470_s9 + $0x98] sm:$0xff] (%p3389_p3)  ;;  %2624 = vst [vmem:[%s5084_s28 + $0xf8] sm:$0xff] (%p3389_p3), %v2623_v31  ;;  %2626 = vst [vmem:[%s5084_s28 + $0x200] sm:$0xff] (%p3389_p3), %v2625_v58  ;;  %v2641_v61 = vld [vmem:[%s4470_s9 + $0x140] sm:$0xff] (%p3389_p3) }
 0x239   : > { %2600 = vst [vmem:[%s5084_s28 + $0x98] sm:$0xff] (%p3389_p3), %v2599_v37  ;;  %2628 = vst [vmem:[%s5084_s28 + $0x208] sm:$0xff] (%p3389_p3), %v2627_v52  ;;  %v2639_v38 = vld [vmem:[%s4470_s9 + $0x138] sm:$0xff] (%p3389_p3)  ;;  %v2643_v12 = vld [vmem:[%s4470_s9 + $0x148] sm:$0xff] (%p3389_p3) }
 0x23a   : > { %v2178_v30 = vadd.f32 %v2177_v3, %v2112_v14  ;;  %v2247_v24 = vadd.f32 %v2246_v56, %v2216_v23  ;;  %v2621_v14 = vld [vmem:[%s4470_s9 + $0xf0] sm:$0xff] (%p3389_p3)  ;;  %2630 = vst [vmem:[%s5084_s28 + $0x210] sm:$0xff] (%p3389_p3), %v2629_v45  ;;  %2632 = vst [vmem:[%s5084_s28 + $0x218] sm:$0xff] (%p3389_p3), %v2631_v53  ;;  %v2647_v3 = vld [vmem:[%s4470_s9 + $0x158] sm:$0xff] (%p3389_p3) }
 0x23b   : > { %2622 = vst [vmem:[%s5084_s28 + $0xf0] sm:$0xff] (%p3389_p3), %v2621_v14  ;;  %2634 = vst [vmem:[%s5084_s28 + $0x220] sm:$0xff] (%p3389_p3), %v2633_v62  ;;  %v2645_v23 = vld [vmem:[%s4470_s9 + $0x150] sm:$0xff] (%p3389_p3)  ;;  %v2649_v56 = vld [vmem:[%s4470_s9 + $0x160] sm:$0xff] (%p3389_p3) }
 0x23c   : > { %v2179_v63 = vrot.slane %v2178_v30, 4  ;;  %v2248_v42 = vadd.f32 %v2247_v24, %v2217_v10  ;;  %2636 = vst [vmem:[%s5084_s28 + $0x228] sm:$0xff] (%p3389_p3), %v2635_v7  ;;  %2638 = vst [vmem:[%s5084_s28 + $0x230] sm:$0xff] (%p3389_p3), %v2637_v44  ;;  %v2653_v10 = vld [vmem:[%s4470_s9 + $0x170] sm:$0xff] (%p3389_p3)  ;;  %v2655_v24 = vld [vmem:[%s4470_s9 + $0x178] sm:$0xff] (%p3389_p3) }
 0x23d   : > { %2640 = vst [vmem:[%s5084_s28 + $0x238] sm:$0xff] (%p3389_p3), %v2639_v38  ;;  %2642 = vst [vmem:[%s5084_s28 + $0x240] sm:$0xff] (%p3389_p3), %v2641_v61  ;;  %v2697_v28 = vld [vmem:[%s4470_s9 + $0x220] sm:$0xff] (%p3389_p3)  ;;  %v2701_v50 = vld [vmem:[%s4470_s9 + $0x230] sm:$0xff] (%p3389_p3) }
 0x23e   : > { %v2180_v13 = vadd.f32 %v2179_v63, %v2178_v30  ;;  %v2249_v26 = vrot.slane %v2248_v42, 4  ;;  %2644 = vst [vmem:[%s5084_s28 + $0x248] sm:$0xff] (%p3389_p3), %v2643_v12  ;;  %2646 = vst [vmem:[%s5084_s28 + $0x250] sm:$0xff] (%p3389_p3), %v2645_v23  ;;  %v2651_v30 = vld [vmem:[%s4470_s9 + $0x168] sm:$0xff] (%p3389_p3)  ;;  %v2657_v63 = vld [vmem:[%s4470_s9 + $0x180] sm:$0xff] (%p3389_p3) }
 0x23f   : > { %2648 = vst [vmem:[%s5084_s28 + $0x258] sm:$0xff] (%p3389_p3), %v2647_v3  ;;  %2650 = vst [vmem:[%s5084_s28 + $0x260] sm:$0xff] (%p3389_p3), %v2649_v56  ;;  %v2703_v20 = vld [vmem:[%s4470_s9 + $0x238] sm:$0xff] (%p3389_p3)  ;;  %v2707_v41 = vld [vmem:[%s4470_s9 + $0x248] sm:$0xff] (%p3389_p3) }
 0x240   : > { %v2181_v59 = vrot.slane %v2180_v13, 2  ;;  %v2250_v1 = vadd.f32 %v2249_v26, %v2248_v42  ;;  %2652 = vst [vmem:[%s5084_s28 + $0x268] sm:$0xff] (%p3389_p3), %v2651_v30  ;;  %2654 = vst [vmem:[%s5084_s28 + $0x270] sm:$0xff] (%p3389_p3), %v2653_v10  ;;  %v2659_v42 = vld [vmem:[%s4470_s9 + $0x188] sm:$0xff] (%p3389_p3)  ;;  %v2663_v26 = vld [vmem:[%s4470_s9 + $0x198] sm:$0xff] (%p3389_p3) }
 0x241   : > { %2656 = vst [vmem:[%s5084_s28 + $0x278] sm:$0xff] (%p3389_p3), %v2655_v24  ;;  %2658 = vst [vmem:[%s5084_s28 + $0x280] sm:$0xff] (%p3389_p3), %v2657_v63  ;;  %v2709_v35 = vld [vmem:[%s4470_s9 + $0x250] sm:$0xff] (%p3389_p3)  ;;  %v2711_v22 = vld [vmem:[%s4470_s9 + $0x258] sm:$0xff] (%p3389_p3) }
 0x242   : > { %v2182_v33 = vadd.f32 %v2181_v59, %v2180_v13  ;;  %v2251_v6 = vrot.slane %v2250_v1, 2  ;;  %v2661_v13 = vld [vmem:[%s4470_s9 + $0x190] sm:$0xff] (%p3389_p3)  ;;  %2660 = vst [vmem:[%s5084_s28 + $0x288] sm:$0xff] (%p3389_p3), %v2659_v42  ;;  %v2665_v59 = vld [vmem:[%s4470_s9 + $0x1a0] sm:$0xff] (%p3389_p3)  ;;  %2664 = vst [vmem:[%s5084_s28 + $0x298] sm:$0xff] (%p3389_p3), %v2663_v26 }
 0x243   : > { %2662 = vst [vmem:[%s5084_s28 + $0x290] sm:$0xff] (%p3389_p3), %v2661_v13  ;;  %2666 = vst [vmem:[%s5084_s28 + $0x2a0] sm:$0xff] (%p3389_p3), %v2665_v59  ;;  %v2713_v29 = vld [vmem:[%s4470_s9 + $0x260] sm:$0xff] (%p3389_p3)  ;;  %v2715_v16 = vld [vmem:[%s4470_s9 + $0x268] sm:$0xff] (%p3389_p3) }
 0x244   : > { %v2183_v43 = vrot.slane %v2182_v33, 1  ;;  %v2252_v17 = vadd.f32 %v2251_v6, %v2250_v1  ;;  %v2667_v1 = vld [vmem:[%s4470_s9 + $0x1a8] sm:$0xff] (%p3389_p3)  ;;  %v2671_v6 = vld [vmem:[%s4470_s9 + $0x1b8] sm:$0xff] (%p3389_p3)  ;;  %2694 = vst [vmem:[%s5084_s28 + $0x410] sm:$0xff] (%p3389_p3), %v2693_v39  ;;  %2698 = vst [vmem:[%s5084_s28 + $0x420] sm:$0xff] (%p3389_p3), %v2697_v28 }
 0x245   : > { %2668 = vst [vmem:[%s5084_s28 + $0x2a8] sm:$0xff] (%p3389_p3), %v2667_v1  ;;  %2672 = vst [vmem:[%s5084_s28 + $0x2b8] sm:$0xff] (%p3389_p3), %v2671_v6  ;;  %v2717_v9 = vld [vmem:[%s4470_s9 + $0x270] sm:$0xff] (%p3389_p3)  ;;  %v2719_v54 = vld [vmem:[%s4470_s9 + $0x278] sm:$0xff] (%p3389_p3) }
 0x246   : > { %v2184_v36 = vadd.f32 %v2183_v43, %v2182_v33  ;;  %v2253_v11 = vrot.slane %v2252_v17, 1  ;;  %v2669_v33 = vld [vmem:[%s4470_s9 + $0x1b0] sm:$0xff] (%p3389_p3)  ;;  %v2673_v43 = vld [vmem:[%s4470_s9 + $0x1c0] sm:$0xff] (%p3389_p3)  ;;  %2700 = vst [vmem:[%s5084_s28 + $0x428] sm:$0xff] (%p3389_p3), %v2699_v15  ;;  %2702 = vst [vmem:[%s5084_s28 + $0x430] sm:$0xff] (%p3389_p3), %v2701_v50 }
 0x247   : > { %2670 = vst [vmem:[%s5084_s28 + $0x2b0] sm:$0xff] (%p3389_p3), %v2669_v33  ;;  %2674 = vst [vmem:[%s5084_s28 + $0x2c0] sm:$0xff] (%p3389_p3), %v2673_v43  ;;  %v2721_v60 = vld [vmem:[%s4470_s9 + $0x280] sm:$0xff] (%p3389_p3)  ;;  %v2723_v49 = vld [vmem:[%s4470_s9 + $0x288] sm:$0xff] (%p3389_p3) }
 0x248   : > { %v2254_v47 = vadd.f32 %v2253_v11, %v2252_v17  ;;  %v2185_v57 = vadd.f32 %v2184_v36, %v4892_v40  ;;  %v2563_v40 = vld [vmem:[%s4470_s9 + $0x8] sm:$0xff] (%p3389_p3)  ;;  %v2677_v36 = vld [vmem:[%s4470_s9 + $0x1d0] sm:$0xff] (%p3389_p3)  ;;  %v2679_v11 = vld [vmem:[%s4470_s9 + $0x1d8] sm:$0xff] (%p3389_p3)  ;;  %2704 = vst [vmem:[%s5084_s28 + $0x438] sm:$0xff] (%p3389_p3), %v2703_v20 }
 0x249   : > { %2272 = sbr.rel (!%p3389_p3) target bundleno = 619 (0x26b), region = 32  ;;  %2564 = vst [vmem:[%s5084_s28 + $0x8] sm:$0xff] (%p3389_p3), %v2563_v40  ;;  %v2675_v17 = vld [vmem:[%s4470_s9 + $0x1c8] sm:$0xff] (%p3389_p3)  ;;  %2678 = vst [vmem:[%s5084_s28 + $0x2d0] sm:$0xff] (%p3389_p3), %v2677_v36  ;;  %v2725_v2 = vld [vmem:[%s4470_s9 + $0x290] sm:$0xff] (%p3389_p3) }
 0x24a   : > { %v2255_v25 = vadd.f32 %v2254_v47, %v4897_v34  ;;  %v2567_v34 = vld [vmem:[%s4470_s9 + $0x18] sm:$0xff] (%p3389_p3)  ;;  %2676 = vst [vmem:[%s5084_s28 + $0x2c8] sm:$0xff] (%p3389_p3), %v2675_v17  ;;  %2680 = vst [vmem:[%s5084_s28 + $0x2d8] sm:$0xff] (%p3389_p3), %v2679_v11  ;;  %v2681_v47 = vld [vmem:[%s4470_s9 + $0x1e0] sm:$0xff] (%p3389_p3) }
 0x24b   : > { %2568 = vst [vmem:[%s5084_s28 + $0x18] sm:$0xff] (%p3389_p3), %v2567_v34  ;;  %2682 = vst [vmem:[%s5084_s28 + $0x2e0] sm:$0xff] (%p3389_p3), %v2681_v47  ;;  %v2691_v40 = vld [vmem:[%s4470_s9 + $0x208] sm:$0xff] (%p3389_p3)  ;;  %v2695_v34 = vld [vmem:[%s4470_s9 + $0x218] sm:$0xff] (%p3389_p3) }
 0x24c   : > { %v2257_v21 = vsel %vm2256_vm1, %v2185_v57, %v2255_v25  ;;  %v2683_v57 = vld [vmem:[%s4470_s9 + $0x1e8] sm:$0xff] (%p3389_p3)  ;;  %v2685_v25 = vld [vmem:[%s4470_s9 + $0x1f0] sm:$0xff] (%p3389_p3)  ;;  %2692 = vst [vmem:[%s5084_s28 + $0x408] sm:$0xff] (%p3389_p3), %v2691_v40  ;;  %2696 = vst [vmem:[%s5084_s28 + $0x418] sm:$0xff] (%p3389_p3), %v2695_v34 }
 0x24d   : > { %2258 = vst [vmem:[%s198_s24] sm:$0x3] %v2257_v21  ;;  %2684 = vst [vmem:[%s5084_s28 + $0x2e8] sm:$0xff] (%p3389_p3), %v2683_v57  ;;  %v2687_v21 = vld [vmem:[%s4470_s9 + $0x1f8] sm:$0xff] (%p3389_p3)  ;;  %v2729_v18 = vld [vmem:[%s4470_s9 + $0x2a0] sm:$0xff] (%p3389_p3) }
 0x24e   : > { %2686 = vst [vmem:[%s5084_s28 + $0x2f0] sm:$0xff] %v2685_v25  ;;  %2688 = vst [vmem:[%s5084_s28 + $0x2f8] sm:$0xff] %v2687_v21  ;;  %v2727_v37 = vld [vmem:[%s4470_s9 + $0x298] sm:$0xff]  ;;  %v2731_v55 = vld [vmem:[%s4470_s9 + $0x2a8] sm:$0xff] }
 0x24f   : > { %2706 = vst [vmem:[%s5084_s28 + $0x440] sm:$0xff] %v2705_v5  ;;  %2708 = vst [vmem:[%s5084_s28 + $0x448] sm:$0xff] %v2707_v41  ;;  %v2733_v8 = vld [vmem:[%s4470_s9 + $0x2b0] sm:$0xff]  ;;  %v2735_v32 = vld [vmem:[%s4470_s9 + $0x2b8] sm:$0xff] }
 0x250   : > { %2710 = vst [vmem:[%s5084_s28 + $0x450] sm:$0xff] %v2709_v35  ;;  %2712 = vst [vmem:[%s5084_s28 + $0x458] sm:$0xff] %v2711_v22  ;;  %v2737_v51 = vld [vmem:[%s4470_s9 + $0x2c0] sm:$0xff]  ;;  %v2739_v0 = vld [vmem:[%s4470_s9 + $0x2c8] sm:$0xff] }
 0x251   : > { %2714 = vst [vmem:[%s5084_s28 + $0x460] sm:$0xff] %v2713_v29  ;;  %2716 = vst [vmem:[%s5084_s28 + $0x468] sm:$0xff] %v2715_v16  ;;  %v2741_v48 = vld [vmem:[%s4470_s9 + $0x2d0] sm:$0xff]  ;;  %v2743_v4 = vld [vmem:[%s4470_s9 + $0x2d8] sm:$0xff] }
 0x252   : > { %2718 = vst [vmem:[%s5084_s28 + $0x470] sm:$0xff] %v2717_v9  ;;  %2720 = vst [vmem:[%s5084_s28 + $0x478] sm:$0xff] %v2719_v54  ;;  %v2745_v19 = vld [vmem:[%s4470_s9 + $0x2e0] sm:$0xff]  ;;  %v2747_v46 = vld [vmem:[%s4470_s9 + $0x2e8] sm:$0xff] }
 0x253   : > { %2722 = vst [vmem:[%s5084_s28 + $0x480] sm:$0xff] %v2721_v60  ;;  %2724 = vst [vmem:[%s5084_s28 + $0x488] sm:$0xff] %v2723_v49  ;;  %v2749_v14 = vld [vmem:[%s4470_s9 + $0x2f0] sm:$0xff]  ;;  %v2751_v31 = vld [vmem:[%s4470_s9 + $0x2f8] sm:$0xff] }
 0x254   : > { %2726 = vst [vmem:[%s5084_s28 + $0x490] sm:$0xff] %v2725_v2  ;;  %2728 = vst [vmem:[%s5084_s28 + $0x498] sm:$0xff] %v2727_v37  ;;  %v2753_v58 = vld [vmem:[%s4470_s9 + $0x300] sm:$0xff]  ;;  %v2755_v52 = vld [vmem:[%s4470_s9 + $0x308] sm:$0xff] }
 0x255   : > { %2730 = vst [vmem:[%s5084_s28 + $0x4a0] sm:$0xff] %v2729_v18  ;;  %2732 = vst [vmem:[%s5084_s28 + $0x4a8] sm:$0xff] %v2731_v55  ;;  %v2757_v45 = vld [vmem:[%s4470_s9 + $0x310] sm:$0xff]  ;;  %v2759_v53 = vld [vmem:[%s4470_s9 + $0x318] sm:$0xff] }
 0x256   : > { %2734 = vst [vmem:[%s5084_s28 + $0x4b0] sm:$0xff] %v2733_v8  ;;  %2736 = vst [vmem:[%s5084_s28 + $0x4b8] sm:$0xff] %v2735_v32  ;;  %v2761_v62 = vld [vmem:[%s4470_s9 + $0x320] sm:$0xff]  ;;  %v2763_v7 = vld [vmem:[%s4470_s9 + $0x328] sm:$0xff] }
 0x257   : > { %2738 = vst [vmem:[%s5084_s28 + $0x4c0] sm:$0xff] %v2737_v51  ;;  %2740 = vst [vmem:[%s5084_s28 + $0x4c8] sm:$0xff] %v2739_v0  ;;  %v2765_v44 = vld [vmem:[%s4470_s9 + $0x330] sm:$0xff]  ;;  %v2767_v38 = vld [vmem:[%s4470_s9 + $0x338] sm:$0xff] }
 0x258   : > { %2742 = vst [vmem:[%s5084_s28 + $0x4d0] sm:$0xff] %v2741_v48  ;;  %2744 = vst [vmem:[%s5084_s28 + $0x4d8] sm:$0xff] %v2743_v4  ;;  %v2769_v61 = vld [vmem:[%s4470_s9 + $0x340] sm:$0xff]  ;;  %v2771_v12 = vld [vmem:[%s4470_s9 + $0x348] sm:$0xff] }
 0x259   : > { %2746 = vst [vmem:[%s5084_s28 + $0x4e0] sm:$0xff] %v2745_v19  ;;  %2748 = vst [vmem:[%s5084_s28 + $0x4e8] sm:$0xff] %v2747_v46  ;;  %v2773_v23 = vld [vmem:[%s4470_s9 + $0x350] sm:$0xff]  ;;  %v2775_v3 = vld [vmem:[%s4470_s9 + $0x358] sm:$0xff] }
 0x25a   : > { %2750 = vst [vmem:[%s5084_s28 + $0x4f0] sm:$0xff] %v2749_v14  ;;  %2752 = vst [vmem:[%s5084_s28 + $0x4f8] sm:$0xff] %v2751_v31  ;;  %v2777_v56 = vld [vmem:[%s4470_s9 + $0x360] sm:$0xff]  ;;  %v2779_v30 = vld [vmem:[%s4470_s9 + $0x368] sm:$0xff] }
 0x25b   : > { %2754 = vst [vmem:[%s5084_s28 + $0x600] sm:$0xff] %v2753_v58  ;;  %2756 = vst [vmem:[%s5084_s28 + $0x608] sm:$0xff] %v2755_v52  ;;  %v2781_v10 = vld [vmem:[%s4470_s9 + $0x370] sm:$0xff]  ;;  %v2783_v24 = vld [vmem:[%s4470_s9 + $0x378] sm:$0xff] }
 0x25c   : > { %2758 = vst [vmem:[%s5084_s28 + $0x610] sm:$0xff] %v2757_v45  ;;  %2760 = vst [vmem:[%s5084_s28 + $0x618] sm:$0xff] %v2759_v53  ;;  %v2785_v63 = vld [vmem:[%s4470_s9 + $0x380] sm:$0xff]  ;;  %v2787_v42 = vld [vmem:[%s4470_s9 + $0x388] sm:$0xff] }
 0x25d   : > { %2762 = vst [vmem:[%s5084_s28 + $0x620] sm:$0xff] %v2761_v62  ;;  %2764 = vst [vmem:[%s5084_s28 + $0x628] sm:$0xff] %v2763_v7  ;;  %v2789_v13 = vld [vmem:[%s4470_s9 + $0x390] sm:$0xff]  ;;  %v2791_v26 = vld [vmem:[%s4470_s9 + $0x398] sm:$0xff] }
 0x25e   : > { %2766 = vst [vmem:[%s5084_s28 + $0x630] sm:$0xff] %v2765_v44  ;;  %2768 = vst [vmem:[%s5084_s28 + $0x638] sm:$0xff] %v2767_v38  ;;  %v2793_v59 = vld [vmem:[%s4470_s9 + $0x3a0] sm:$0xff]  ;;  %v2795_v1 = vld [vmem:[%s4470_s9 + $0x3a8] sm:$0xff] }
 0x25f   : > { %2770 = vst [vmem:[%s5084_s28 + $0x640] sm:$0xff] %v2769_v61  ;;  %2772 = vst [vmem:[%s5084_s28 + $0x648] sm:$0xff] %v2771_v12  ;;  %v2797_v33 = vld [vmem:[%s4470_s9 + $0x3b0] sm:$0xff]  ;;  %v2799_v6 = vld [vmem:[%s4470_s9 + $0x3b8] sm:$0xff] }
 0x260   : > { %2774 = vst [vmem:[%s5084_s28 + $0x650] sm:$0xff] %v2773_v23  ;;  %2776 = vst [vmem:[%s5084_s28 + $0x658] sm:$0xff] %v2775_v3  ;;  %v2801_v43 = vld [vmem:[%s4470_s9 + $0x3c0] sm:$0xff]  ;;  %v2803_v17 = vld [vmem:[%s4470_s9 + $0x3c8] sm:$0xff] }
 0x261   : > { %2778 = vst [vmem:[%s5084_s28 + $0x660] sm:$0xff] %v2777_v56  ;;  %2780 = vst [vmem:[%s5084_s28 + $0x668] sm:$0xff] %v2779_v30  ;;  %v2805_v36 = vld [vmem:[%s4470_s9 + $0x3d0] sm:$0xff]  ;;  %v2807_v11 = vld [vmem:[%s4470_s9 + $0x3d8] sm:$0xff] }
 0x262   : > { %2782 = vst [vmem:[%s5084_s28 + $0x670] sm:$0xff] %v2781_v10  ;;  %2784 = vst [vmem:[%s5084_s28 + $0x678] sm:$0xff] %v2783_v24  ;;  %v2809_v47 = vld [vmem:[%s4470_s9 + $0x3e0] sm:$0xff]  ;;  %v2811_v57 = vld [vmem:[%s4470_s9 + $0x3e8] sm:$0xff] }
 0x263   : > { %2786 = vst [vmem:[%s5084_s28 + $0x680] sm:$0xff] %v2785_v63  ;;  %2788 = vst [vmem:[%s5084_s28 + $0x688] sm:$0xff] %v2787_v42  ;;  %v2813_v25 = vld [vmem:[%s4470_s9 + $0x3f0] sm:$0xff]  ;;  %v2815_v21 = vld [vmem:[%s4470_s9 + $0x3f8] sm:$0xff] }
 0x264   : > { %2790 = vst [vmem:[%s5084_s28 + $0x690] sm:$0xff] %v2789_v13  ;;  %2792 = vst [vmem:[%s5084_s28 + $0x698] sm:$0xff] %v2791_v26 }
 0x265   : > { %2794 = vst [vmem:[%s5084_s28 + $0x6a0] sm:$0xff] %v2793_v59  ;;  %2796 = vst [vmem:[%s5084_s28 + $0x6a8] sm:$0xff] %v2795_v1 }
 0x266   : > { %2798 = vst [vmem:[%s5084_s28 + $0x6b0] sm:$0xff] %v2797_v33  ;;  %2800 = vst [vmem:[%s5084_s28 + $0x6b8] sm:$0xff] %v2799_v6 }
 0x267   : > { %2802 = vst [vmem:[%s5084_s28 + $0x6c0] sm:$0xff] %v2801_v43  ;;  %2804 = vst [vmem:[%s5084_s28 + $0x6c8] sm:$0xff] %v2803_v17 }
 0x268   : > { %2806 = vst [vmem:[%s5084_s28 + $0x6d0] sm:$0xff] %v2805_v36  ;;  %2808 = vst [vmem:[%s5084_s28 + $0x6d8] sm:$0xff] %v2807_v11 }
 0x269   : > { %2810 = vst [vmem:[%s5084_s28 + $0x6e0] sm:$0xff] %v2809_v47  ;;  %2812 = vst [vmem:[%s5084_s28 + $0x6e8] sm:$0xff] %v2811_v57 }
 0x26a   : > { %2814 = vst [vmem:[%s5084_s28 + $0x6f0] sm:$0xff] %v2813_v25  ;;  %2816 = vst [vmem:[%s5084_s28 + $0x6f8] sm:$0xff] %v2815_v21 }
 0x26b PF: > { %s14_s16 = sadd.s32 1, %s3334_s16   ;;  %s5412_s12 = smov %s3322_s13 }
 0x26c   : > { %p11_p9 = scmp.ge.s32.totalorder %s14_s16, 4   ;;  %s5413_s13 = smov %s3398_s22 }
 0x26d   : > { %s5414_s14 = smov %s3330_s15  ;;  %s5415_s15 = smov %s5417_s18 }
 0x26e   :  { %13 = sbr.rel (!%p11_p9) target bundleno = 3 (0x3), region = 112 }

</bundles_post_ra>
